<compile_context>
chip_gen: v7x
topology: tpu7x:2x2x1
jax: 0.10.0
libtpu: 0.0.40
codegen_flags: <defaults>
</compile_context>

<pallas_src>
import functools

import jax
import jax.numpy as jnp
from jax import lax
from jax.experimental import pallas as pl
from jax.experimental.pallas import tpu as pltpu


_TAPS = tuple((dh, dw) for dh in (-1, 0, 1) for dw in (-1, 0, 1))


# --------------------------------- kernel ------------------------------------

def _block_kernel(H, W, C, TB, compute_dtype,
                  x_ref, mask_ref, rw_ref, rbias_ref,
                  cw1_ref, cb1_ref, cw2_ref, cb2_ref, cw3_ref, cb3_ref,
                  o_ref):
    L = TB * H * W

    x = x_ref[...]                      # (C, L), input dtype
    mask = mask_ref[...]                # (9, L) f32 boundary masks, hoisted

    def cdt(a):
        # single hoisted cast per activation; identity when compute_dtype=f32
        return a if a.dtype == compute_dtype else a.astype(compute_dtype)

    def conv3x3(inp, widx):
        # Grouped 9-tap conv: for each row offset dh, stack the 3 column taps
        # into a (3C, L) slab and hit the MXU once with the matching (C, 3C)
        # group-major weight slab; accumulate the 3 groups in f32.
        acc = None
        for g, dh in enumerate((-1, 0, 1)):
            taps = []
            for j, dw in enumerate((-1, 0, 1)):
                off = dh * W + dw
                xs = inp if off == 0 else pltpu.roll(inp, (-off) % L, axis=1)
                if (dh, dw) != (0, 0):           # center-tap mask is all ones
                    xs = xs * mask[3 * g + j:3 * g + j + 1, :]
                taps.append(xs)
            stack = cdt(jnp.concatenate(taps, axis=0))        # (3C, L)
            d = jnp.dot(rw_ref[widx, g], stack,               # (C, 3C) @ (3C, L)
                        preferred_element_type=jnp.float32)
            acc = d if acc is None else acc + d
        return acc + rbias_ref[widx]                          # (C, 1) f32 bias

    def residual_block(inp, bidx):
        h = jnp.maximum(conv3x3(inp, 2 * bidx), 0.0)
        h = conv3x3(h, 2 * bidx + 1)
        return jnp.maximum(h + inp, 0.0)

    def conv1x1(chunks, w_ref, b_ref):
        # Dense fusion conv over channel-concatenated activations, computed as
        # a sum of per-chunk (C,C)@(C,L) dots — no (kC, L) concat materialized.
        acc = None
        for k, ch in enumerate(chunks):
            d = jnp.dot(w_ref[k], ch, preferred_element_type=jnp.float32)
            acc = d if acc is None else acc + d
        return acc + b_ref[...]

    c0 = x
    c0c = cdt(c0)
    b1 = residual_block(c0, 0)
    b1c = cdt(b1)
    o1 = conv1x1([c0c, b1c], cw1_ref, cb1_ref)
    b2 = residual_block(o1, 1)
    b2c = cdt(b2)
    o2 = conv1x1([c0c, b1c, b2c], cw2_ref, cb2_ref)
    b3 = residual_block(o2, 2)
    b3c = cdt(b3)
    o3 = conv1x1([c0c, b1c, b2c, b3c], cw3_ref, cb3_ref)
    o_ref[...] = o3.astype(o_ref.dtype)


# ------------------------------ tiling helpers --------------------------------

def _device_kind():
    try:
        return jax.devices()[0].device_kind.lower()
    except Exception:
        return ""


def _min_grid_steps():
    # v7x has 2 TensorCores per chip: want >= 4 "parallel" steps so each core
    # keeps a double-buffered pipeline.  v5e/v6e are single-TC: one fat step
    # is best (fewer per-step overheads, fatter lane-dense DMAs).
    return 4 if "v7" in _device_kind() else 1


def _vmem_budget_bytes():
    try:
        cap = int(pltpu.get_tpu_info().vmem_capacity_bytes)
    except Exception:
        cap = 64 << 20               # conservative fallback (v7x per-core VMEM)
    return int(cap * 3 // 4)         # headroom for compiler scratch / spills


def _working_set_bytes(tb, HW, C, in_itemsize, cd_itemsize):
    """Generous per-grid-step VMEM estimate: live f32 activations, the
    grouped tap-stack temps, cast copies, double-buffered in/out blocks,
    and the hoisted boundary masks."""
    L = tb * HW
    act_f32 = 12 * C * L * 4                    # c0,b1..b3,o1..o3,h,acc,taps
    act_cd = 8 * C * L * cd_itemsize            # cast copies + (3C,L) stacks
    io = 2 * 2 * C * L * in_itemsize            # double-buffered in/out blocks
    msk = 2 * 9 * L * 4
    return act_f32 + act_cd + io + msk


def _pick_tile_batch(N, HW, C, in_itemsize, cd_itemsize, budget, min_steps):
    """Largest TB (divisor of N) whose working set fits the VMEM budget,
    respecting lane alignment (TB*HW % 128 when the grid has >1 step) and
    the per-generation minimum step count (relaxed if impossible)."""
    def ok(tb, need_steps):
        steps = N // tb
        if N % tb or steps < need_steps:
            return False
        if steps > 1 and (tb * HW) % 128 != 0:
            return False            # last BlockSpec dim must be 128-divisible
        return _working_set_bytes(tb, HW, C, in_itemsize,
                                  cd_itemsize) <= budget

    needs = sorted({n for n in (min_steps, 2, 1) if n <= min_steps},
                   reverse=True)
    for need in needs:
        cands = [t for t in range(1, N + 1) if ok(t, need)]
        if need > 1:
            even = [t for t in cands if (N // t) % 2 == 0]
            cands = even or cands   # prefer an even number of steps (v7x)
        if cands:
            return max(cands)
    # TODO(synk): pad N*HW up to a lane multiple for shapes where no aligned
    # tiling exists instead of falling back to a single (possibly fat) step.
    return N


def _tap_masks(H, W, TB):
    """(9, TB*H*W) float32 validity masks for the 9 conv taps, derived from
    PER-IMAGE coordinates so shifted taps never read a neighboring image."""
    HW = H * W
    q = jnp.arange(TB * HW, dtype=jnp.int32) % HW
    hh = q // W
    ww = q % W
    rows = []
    for dh, dw in _TAPS:
        valid = ((hh + dh >= 0) & (hh + dh < H) &
                 (ww + dw >= 0) & (ww + dw < W))
        rows.append(valid)
    return jnp.stack(rows, axis=0).astype(jnp.float32)


# ------------------------------- entry points ---------------------------------

def pcarn_block_apply(x_cmaj, params, *, N, H, W,
                      compute_dtype=jnp.float32):
    """Channel-major Block forward: x_cmaj is (C, N*H*W).

    Use this form when stacking PCARN Blocks so the NCHW <-> channel-major
    transposes happen only at the network edges (they are pure HBM passes).

    params (kernel layout):
      rw:    (6, 3, C, 3C)  group-major fused 3x3 weights (dh-major, then
                            columns dw-major, C input channels per tap)
      rbias: (6, C, 1)
      cw1/cw2/cw3: (2, C, C) / (3, C, C) / (4, C, C)  chunk-major 1x1 weights
      cb1/cb2/cb3: (C, 1)
    """
    C = x_cmaj.shape[0]
    HW = H * W
    assert x_cmaj.shape == (C, N * HW), (x_cmaj.shape, (C, N * HW))

    cd = jnp.dtype(compute_dtype)
    in_itemsize = x_cmaj.dtype.itemsize

    budget = _vmem_budget_bytes()
    TB = _pick_tile_batch(N, HW, C, in_itemsize, cd.itemsize, budget,
                          _min_grid_steps())
    L = TB * HW
    steps = N // TB

    mask = _tap_masks(H, W, TB)                         # (9, L) f32, hoisted

    # Pre-cast MXU weight operands once in the wrapper: removes ~15 per-step
    # in-kernel VPU casts and halves weight DMA bytes when compute_dtype=bf16.
    rw = params["rw"].astype(cd)
    cw1 = params["cw1"].astype(cd)
    cw2 = params["cw2"].astype(cd)
    cw3 = params["cw3"].astype(cd)
    rbias = params["rbias"].astype(jnp.float32)
    cb1 = params["cb1"].astype(jnp.float32)
    cb2 = params["cb2"].astype(jnp.float32)
    cb3 = params["cb3"].astype(jnp.float32)

    kernel = functools.partial(_block_kernel, H, W, C, TB, cd)

    def full_spec(arr):
        nd = arr.ndim
        return pl.BlockSpec(arr.shape, lambda n, _nd=nd: (0,) * _nd)

    flops = 2 * C * C * (6 * 9 + 2 + 3 + 4) * N * HW
    weight_bytes = sum(int(a.size) * a.dtype.itemsize
                       for a in (rw, rbias, cw1, cb1, cw2, cb2, cw3, cb3))
    cost = pl.CostEstimate(
        flops=flops, transcendentals=0,
        bytes_accessed=2 * N * C * HW * in_itemsize + weight_bytes
        + int(mask.size) * mask.dtype.itemsize)

    out = pl.pallas_call(
        kernel,
        out_shape=jax.ShapeDtypeStruct((C, N * HW), x_cmaj.dtype),
        grid_spec=pltpu.PrefetchScalarGridSpec(
            num_scalar_prefetch=0,
            grid=(steps,),
            in_specs=[
                pl.BlockSpec((C, L), lambda n: (0, n)),   # TB images / step
                full_spec(mask),
                full_spec(rw), full_spec(rbias),
                full_spec(cw1), full_spec(cb1),
                full_spec(cw2), full_spec(cb2),
                full_spec(cw3), full_spec(cb3),
            ],
            out_specs=pl.BlockSpec((C, L), lambda n: (0, n)),
        ),
        compiler_params=pltpu.CompilerParams(
            dimension_semantics=("parallel",),
            vmem_limit_bytes=budget),
        cost_estimate=cost,
    )(x_cmaj, mask, rw, rbias, cw1, cb1, cw2, cb2, cw3, cb3)
    return out


def pcarn_block_forward(x_nchw, params, *, compute_dtype=jnp.float32):
    """PyTorch-interface wrapper (NCHW in / NCHW out).

    NOTE: when stacking many Blocks, keep activations channel-major and call
    pcarn_block_apply directly — the two transposes below are per-Block HBM
    passes that exist only to match the NCHW interface."""
    N, C, H, W = x_nchw.shape
    x_cmaj = jnp.transpose(x_nchw, (1, 0, 2, 3)).reshape(C, N * H * W)
    out = pcarn_block_apply(x_cmaj, params, N=N, H=H, W=W,
                            compute_dtype=compute_dtype)
    return jnp.transpose(out.reshape(C, N, H, W), (1, 0, 2, 3))


# ---------------- pure-JAX reference (NCHW, matches PyTorch semantics) --------

def _conv2d_ref(x, w, b, pad):
    y = lax.conv_general_dilated(
        x, w, window_strides=(1, 1),
        padding=[(pad, pad), (pad, pad)],
        dimension_numbers=("NCHW", "OIHW", "NCHW"))
    return y + b[None, :, None, None]


def block_reference(x, p):
    rw, rb = p["rw_oihw"], p["rb"]

    def res(inp, i):
        h = _conv2d_ref(inp, rw[2 * i], rb[2 * i], 1)
        h = jax.nn.relu(h)
        h = _conv2d_ref(h, rw[2 * i + 1], rb[2 * i + 1], 1)
        return jax.nn.relu(h + inp)

    c0 = x
    b1 = res(c0, 0)
    c1 = jnp.concatenate([c0, b1], axis=1)
    o1 = _conv2d_ref(c1, p["cw1_oihw"], p["cb1"], 0)
    b2 = res(o1, 1)
    c2 = jnp.concatenate([c1, b2], axis=1)
    o2 = _conv2d_ref(c2, p["cw2_oihw"], p["cb2"], 0)
    b3 = res(o2, 2)
    c3 = jnp.concatenate([c2, b3], axis=1)
    o3 = _conv2d_ref(c3, p["cw3_oihw"], p["cb3"], 0)
    return o3


# ---------------------------------- test -------------------------------------

def _to_kernel_params(rw_oihw, rb, cw1_oihw, cb1, cw2_oihw, cb2,
                      cw3_oihw, cb3, C):
    # (6, Cout, Cin, 3, 3) -> (6, dh, Cout, 3*Cin), group-major over dh with
    # columns dw-major, matching the in-kernel grouped tap-stack order.
    rw_grp = jnp.transpose(rw_oihw, (0, 3, 1, 4, 2)).reshape(6, 3, C, 3 * C)

    def chunk_major(cw_oihw, k):
        # (Cout, k*Cin, 1, 1) -> (k, Cout, Cin)
        return jnp.transpose(cw_oihw[:, :, 0, 0].reshape(C, k, C), (1, 0, 2))

    return {
        "rw": rw_grp, "rbias": rb.reshape(6, C, 1),
        "cw1": chunk_major(cw1_oihw, 2), "cb1": cb1.reshape(C, 1),
        "cw2": chunk_major(cw2_oihw, 3), "cb2": cb2.reshape(C, 1),
        "cw3": chunk_major(cw3_oihw, 4), "cb3": cb3.reshape(C, 1),
    }


def _make_case(key, N, C, H, W):
    ks = jax.random.split(key, 9)
    x = jax.random.normal(ks[0], (N, C, H, W), jnp.float32)

    rw_oihw = 0.1 * jax.random.normal(ks[1], (6, C, C, 3, 3), jnp.float32)
    rb = 0.1 * jax.random.normal(ks[2], (6, C), jnp.float32)
    cw1_oihw = 0.1 * jax.random.normal(ks[3], (C, 2 * C, 1, 1), jnp.float32)
    cb1 = 0.1 * jax.random.normal(ks[4], (C,), jnp.float32)
    cw2_oihw = 0.1 * jax.random.normal(ks[5], (C, 3 * C, 1, 1), jnp.float32)
    cb2 = 0.1 * jax.random.normal(ks[6], (C,), jnp.float32)
    cw3_oihw = 0.1 * jax.random.normal(ks[7], (C, 4 * C, 1, 1), jnp.float32)
    cb3 = 0.1 * jax.random.normal(ks[8], (C,), jnp.float32)

    kernel_params = _to_kernel_params(rw_oihw, rb, cw1_oihw, cb1,
                                      cw2_oihw, cb2, cw3_oihw, cb3, C)
    ref_params = {
        "rw_oihw": rw_oihw, "rb": rb,
        "cw1_oihw": cw1_oihw, "cb1": cb1,
        "cw2_oihw": cw2_oihw, "cb2": cb2,
        "cw3_oihw": cw3_oihw, "cb3": cb3,
    }
    return x, kernel_params, ref_params


def _check(x, kparams, rparams, *, compute_dtype=jnp.float32,
           atol=1e-3, rtol=0.0):
    out = jax.block_until_ready(
        pcarn_block_forward(x, kparams, compute_dtype=compute_dtype))
    ref = block_reference(x, rparams)
    assert out.shape == x.shape, (out.shape, x.shape)
    max_ref = float(jnp.max(jnp.abs(ref)))
    max_err = float(jnp.max(jnp.abs(out - ref)))
    tol = atol + rtol * max_ref
    if max_err > tol:
        raise AssertionError(
            f"Pallas output mismatch ({jnp.dtype(compute_dtype)}): "
            f"max_err={max_err} > tol={tol}")


if __name__ == "__main__":
    key = jax.random.PRNGKey(0)
    k1, k2 = jax.random.split(key)

    case1 = _make_case(k1, 2, 8, 16, 16)   # small case
    case2 = _make_case(k2, 8, 8, 16, 16)   # batched slab path

    # f32 operands: bit-safe vs the tight tolerance.
    _check(*case1, compute_dtype=jnp.float32, atol=1e-3)
    _check(*case2, compute_dtype=jnp.float32, atol=1e-3)

    # bf16 MXU-operand path (v6e/v7x throughput knob) with loosened tolerance:
    # six chained convs accumulate bf16 operand rounding (f32 accumulation).
    _check(*case2, compute_dtype=jnp.bfloat16, atol=5e-2, rtol=0.1)

    print("KERNEL_OK")
</pallas_src>

<mosaic_0001>
module attributes {stable_mosaic.version = 11 : i64} {
  func.func @_block_kernel(%arg0: i32, %arg1: memref<8x512xf32, #tpu.memory_space<vmem>>, %arg2: memref<9x512xf32, #tpu.memory_space<vmem>>, %arg3: memref<6x3x8x24xf32, #tpu.memory_space<vmem>>, %arg4: memref<6x8x1xf32, #tpu.memory_space<vmem>>, %arg5: memref<2x8x8xf32, #tpu.memory_space<vmem>>, %arg6: memref<8x1xf32, #tpu.memory_space<vmem>>, %arg7: memref<3x8x8xf32, #tpu.memory_space<vmem>>, %arg8: memref<8x1xf32, #tpu.memory_space<vmem>>, %arg9: memref<4x8x8xf32, #tpu.memory_space<vmem>>, %arg10: memref<8x1xf32, #tpu.memory_space<vmem>>, %arg11: memref<8x512xf32, #tpu.memory_space<vmem>>) attributes {dimension_semantics = [#tpu.dimension_semantics<parallel>], iteration_bounds = array<i64: 1>, scalar_prefetch = 0 : i64, scratch_operands = 0 : i64, tpu.core_type = #tpu.core_type<tc>, window_params = [{transform_indices = @transform_0, window_bounds = array<i64: 8, 512>}, {pipeline_mode = #tpu.pipeline_mode<synchronous>, transform_indices = @transform_1, window_bounds = array<i64: 9, 512>}, {pipeline_mode = #tpu.pipeline_mode<synchronous>, transform_indices = @transform_2, window_bounds = array<i64: 6, 3, 8, 24>}, {pipeline_mode = #tpu.pipeline_mode<synchronous>, transform_indices = @transform_3, window_bounds = array<i64: 6, 8, 1>}, {pipeline_mode = #tpu.pipeline_mode<synchronous>, transform_indices = @transform_4, window_bounds = array<i64: 2, 8, 8>}, {pipeline_mode = #tpu.pipeline_mode<synchronous>, transform_indices = @transform_5, window_bounds = array<i64: 8, 1>}, {pipeline_mode = #tpu.pipeline_mode<synchronous>, transform_indices = @transform_6, window_bounds = array<i64: 3, 8, 8>}, {pipeline_mode = #tpu.pipeline_mode<synchronous>, transform_indices = @transform_7, window_bounds = array<i64: 8, 1>}, {pipeline_mode = #tpu.pipeline_mode<synchronous>, transform_indices = @transform_8, window_bounds = array<i64: 4, 8, 8>}, {pipeline_mode = #tpu.pipeline_mode<synchronous>, transform_indices = @transform_9, window_bounds = array<i64: 8, 1>}, {transform_indices = @transform_10, window_bounds = array<i64: 8, 512>}]} {
    %c0 = arith.constant 0 : index
    %c0_0 = arith.constant 0 : index
    %0 = vector.load %arg1[%c0, %c0_0] : memref<8x512xf32, #tpu.memory_space<vmem>>, vector<8x512xf32>
    %c0_1 = arith.constant 0 : index
    %c0_2 = arith.constant 0 : index
    %1 = vector.load %arg2[%c0_1, %c0_2] : memref<9x512xf32, #tpu.memory_space<vmem>>, vector<9x512xf32>
    %c17_i32 = arith.constant 17 : i32
    %2 = tpu.dynamic_rotate %0 by %c17_i32 dim 1 : vector<8x512xf32>, i32 -> vector<8x512xf32>
    %3 = vector.extract_strided_slice %1 {offsets = [0, 0], sizes = [1, 512], strides = [1, 1]} : vector<9x512xf32> to vector<1x512xf32>
    %4 = vector.broadcast %3 : vector<1x512xf32> to vector<8x512xf32>
    %5 = arith.mulf %2, %4 : vector<8x512xf32>
    %c16_i32 = arith.constant 16 : i32
    %6 = tpu.dynamic_rotate %0 by %c16_i32 dim 1 : vector<8x512xf32>, i32 -> vector<8x512xf32>
    %7 = vector.extract_strided_slice %1 {offsets = [1, 0], sizes = [1, 512], strides = [1, 1]} : vector<9x512xf32> to vector<1x512xf32>
    %8 = vector.broadcast %7 : vector<1x512xf32> to vector<8x512xf32>
    %9 = arith.mulf %6, %8 : vector<8x512xf32>
    %c15_i32 = arith.constant 15 : i32
    %10 = tpu.dynamic_rotate %0 by %c15_i32 dim 1 : vector<8x512xf32>, i32 -> vector<8x512xf32>
    %11 = vector.extract_strided_slice %1 {offsets = [2, 0], sizes = [1, 512], strides = [1, 1]} : vector<9x512xf32> to vector<1x512xf32>
    %12 = vector.broadcast %11 : vector<1x512xf32> to vector<8x512xf32>
    %13 = arith.mulf %10, %12 : vector<8x512xf32>
    %14 = tpu.concatenate %5, %9, %13 in 0 : vector<8x512xf32>, vector<8x512xf32>, vector<8x512xf32> -> vector<24x512xf32>
    %c0_3 = arith.constant 0 : index
    %c0_4 = arith.constant 0 : index
    %c0_5 = arith.constant 0 : index
    %c0_6 = arith.constant 0 : index
    %15 = vector.load %arg3[%c0_3, %c0_4, %c0_5, %c0_6] : memref<6x3x8x24xf32, #tpu.memory_space<vmem>>, vector<1x1x8x24xf32>
    %16 = vector.shape_cast %15 : vector<1x1x8x24xf32> to vector<8x24xf32>
    %cst = arith.constant dense<0.000000e+00> : vector<8x512xf32>
    %17 = tpu.matmul %16, %14, %cst {dimension_numbers = #tpu.dot_dimension_numbers<[1], [0], [0], [1], [0, 0, 1, 1], [], []>} : vector<8x24xf32>, vector<24x512xf32>, vector<8x512xf32> -> vector<8x512xf32>
    %c1_i32 = arith.constant 1 : i32
    %18 = tpu.dynamic_rotate %0 by %c1_i32 dim 1 : vector<8x512xf32>, i32 -> vector<8x512xf32>
    %19 = vector.extract_strided_slice %1 {offsets = [3, 0], sizes = [1, 512], strides = [1, 1]} : vector<9x512xf32> to vector<1x512xf32>
    %20 = vector.broadcast %19 : vector<1x512xf32> to vector<8x512xf32>
    %21 = arith.mulf %18, %20 : vector<8x512xf32>
    %c511_i32 = arith.constant 511 : i32
    %22 = tpu.dynamic_rotate %0 by %c511_i32 dim 1 : vector<8x512xf32>, i32 -> vector<8x512xf32>
    %23 = vector.extract_strided_slice %1 {offsets = [5, 0], sizes = [1, 512], strides = [1, 1]} : vector<9x512xf32> to vector<1x512xf32>
    %24 = vector.broadcast %23 : vector<1x512xf32> to vector<8x512xf32>
    %25 = arith.mulf %22, %24 : vector<8x512xf32>
    %26 = tpu.concatenate %21, %0, %25 in 0 : vector<8x512xf32>, vector<8x512xf32>, vector<8x512xf32> -> vector<24x512xf32>
    %c0_7 = arith.constant 0 : index
    %c1 = arith.constant 1 : index
    %c0_8 = arith.constant 0 : index
    %c0_9 = arith.constant 0 : index
    %27 = vector.load %arg3[%c0_7, %c1, %c0_8, %c0_9] : memref<6x3x8x24xf32, #tpu.memory_space<vmem>>, vector<1x1x8x24xf32>
    %28 = vector.shape_cast %27 : vector<1x1x8x24xf32> to vector<8x24xf32>
    %cst_10 = arith.constant dense<0.000000e+00> : vector<8x512xf32>
    %29 = tpu.matmul %28, %26, %cst_10 {dimension_numbers = #tpu.dot_dimension_numbers<[1], [0], [0], [1], [0, 0, 1, 1], [], []>} : vector<8x24xf32>, vector<24x512xf32>, vector<8x512xf32> -> vector<8x512xf32>
    %30 = arith.addf %17, %29 : vector<8x512xf32>
    %c497_i32 = arith.constant 497 : i32
    %31 = tpu.dynamic_rotate %0 by %c497_i32 dim 1 : vector<8x512xf32>, i32 -> vector<8x512xf32>
    %32 = vector.extract_strided_slice %1 {offsets = [6, 0], sizes = [1, 512], strides = [1, 1]} : vector<9x512xf32> to vector<1x512xf32>
    %33 = vector.broadcast %32 : vector<1x512xf32> to vector<8x512xf32>
    %34 = arith.mulf %31, %33 : vector<8x512xf32>
    %c496_i32 = arith.constant 496 : i32
    %35 = tpu.dynamic_rotate %0 by %c496_i32 dim 1 : vector<8x512xf32>, i32 -> vector<8x512xf32>
    %36 = vector.extract_strided_slice %1 {offsets = [7, 0], sizes = [1, 512], strides = [1, 1]} : vector<9x512xf32> to vector<1x512xf32>
    %37 = vector.broadcast %36 : vector<1x512xf32> to vector<8x512xf32>
    %38 = arith.mulf %35, %37 : vector<8x512xf32>
    %c495_i32 = arith.constant 495 : i32
    %39 = tpu.dynamic_rotate %0 by %c495_i32 dim 1 : vector<8x512xf32>, i32 -> vector<8x512xf32>
    %40 = vector.extract_strided_slice %1 {offsets = [8, 0], sizes = [1, 512], strides = [1, 1]} : vector<9x512xf32> to vector<1x512xf32>
    %41 = vector.broadcast %40 : vector<1x512xf32> to vector<8x512xf32>
    %42 = arith.mulf %39, %41 : vector<8x512xf32>
    %43 = tpu.concatenate %34, %38, %42 in 0 : vector<8x512xf32>, vector<8x512xf32>, vector<8x512xf32> -> vector<24x512xf32>
    %c0_11 = arith.constant 0 : index
    %c2 = arith.constant 2 : index
    %c0_12 = arith.constant 0 : index
    %c0_13 = arith.constant 0 : index
    %44 = vector.load %arg3[%c0_11, %c2, %c0_12, %c0_13] : memref<6x3x8x24xf32, #tpu.memory_space<vmem>>, vector<1x1x8x24xf32>
    %45 = vector.shape_cast %44 : vector<1x1x8x24xf32> to vector<8x24xf32>
    %cst_14 = arith.constant dense<0.000000e+00> : vector<8x512xf32>
    %46 = tpu.matmul %45, %43, %cst_14 {dimension_numbers = #tpu.dot_dimension_numbers<[1], [0], [0], [1], [0, 0, 1, 1], [], []>} : vector<8x24xf32>, vector<24x512xf32>, vector<8x512xf32> -> vector<8x512xf32>
    %47 = arith.addf %30, %46 : vector<8x512xf32>
    %c0_15 = arith.constant 0 : index
    %c0_16 = arith.constant 0 : index
    %c0_17 = arith.constant 0 : index
    %48 = vector.load %arg4[%c0_15, %c0_16, %c0_17] : memref<6x8x1xf32, #tpu.memory_space<vmem>>, vector<1x8x1xf32>
    %49 = vector.shape_cast %48 : vector<1x8x1xf32> to vector<8x1xf32>
    %50 = vector.broadcast %49 : vector<8x1xf32> to vector<8x512xf32>
    %51 = arith.addf %47, %50 : vector<8x512xf32>
    %cst_18 = arith.constant 0.000000e+00 : f32
    %52 = vector.broadcast %cst_18 : f32 to vector<8x512xf32>
    %53 = arith.maximumf %51, %52 : vector<8x512xf32>
    %c17_i32_19 = arith.constant 17 : i32
    %54 = tpu.dynamic_rotate %53 by %c17_i32_19 dim 1 : vector<8x512xf32>, i32 -> vector<8x512xf32>
    %55 = vector.extract_strided_slice %1 {offsets = [0, 0], sizes = [1, 512], strides = [1, 1]} : vector<9x512xf32> to vector<1x512xf32>
    %56 = vector.broadcast %55 : vector<1x512xf32> to vector<8x512xf32>
    %57 = arith.mulf %54, %56 : vector<8x512xf32>
    %c16_i32_20 = arith.constant 16 : i32
    %58 = tpu.dynamic_rotate %53 by %c16_i32_20 dim 1 : vector<8x512xf32>, i32 -> vector<8x512xf32>
    %59 = vector.extract_strided_slice %1 {offsets = [1, 0], sizes = [1, 512], strides = [1, 1]} : vector<9x512xf32> to vector<1x512xf32>
    %60 = vector.broadcast %59 : vector<1x512xf32> to vector<8x512xf32>
    %61 = arith.mulf %58, %60 : vector<8x512xf32>
    %c15_i32_21 = arith.constant 15 : i32
    %62 = tpu.dynamic_rotate %53 by %c15_i32_21 dim 1 : vector<8x512xf32>, i32 -> vector<8x512xf32>
    %63 = vector.extract_strided_slice %1 {offsets = [2, 0], sizes = [1, 512], strides = [1, 1]} : vector<9x512xf32> to vector<1x512xf32>
    %64 = vector.broadcast %63 : vector<1x512xf32> to vector<8x512xf32>
    %65 = arith.mulf %62, %64 : vector<8x512xf32>
    %66 = tpu.concatenate %57, %61, %65 in 0 : vector<8x512xf32>, vector<8x512xf32>, vector<8x512xf32> -> vector<24x512xf32>
    %c1_22 = arith.constant 1 : index
    %c0_23 = arith.constant 0 : index
    %c0_24 = arith.constant 0 : index
    %c0_25 = arith.constant 0 : index
    %67 = vector.load %arg3[%c1_22, %c0_23, %c0_24, %c0_25] : memref<6x3x8x24xf32, #tpu.memory_space<vmem>>, vector<1x1x8x24xf32>
    %68 = vector.shape_cast %67 : vector<1x1x8x24xf32> to vector<8x24xf32>
    %cst_26 = arith.constant dense<0.000000e+00> : vector<8x512xf32>
    %69 = tpu.matmul %68, %66, %cst_26 {dimension_numbers = #tpu.dot_dimension_numbers<[1], [0], [0], [1], [0, 0, 1, 1], [], []>} : vector<8x24xf32>, vector<24x512xf32>, vector<8x512xf32> -> vector<8x512xf32>
    %c1_i32_27 = arith.constant 1 : i32
    %70 = tpu.dynamic_rotate %53 by %c1_i32_27 dim 1 : vector<8x512xf32>, i32 -> vector<8x512xf32>
    %71 = vector.extract_strided_slice %1 {offsets = [3, 0], sizes = [1, 512], strides = [1, 1]} : vector<9x512xf32> to vector<1x512xf32>
    %72 = vector.broadcast %71 : vector<1x512xf32> to vector<8x512xf32>
    %73 = arith.mulf %70, %72 : vector<8x512xf32>
    %c511_i32_28 = arith.constant 511 : i32
    %74 = tpu.dynamic_rotate %53 by %c511_i32_28 dim 1 : vector<8x512xf32>, i32 -> vector<8x512xf32>
    %75 = vector.extract_strided_slice %1 {offsets = [5, 0], sizes = [1, 512], strides = [1, 1]} : vector<9x512xf32> to vector<1x512xf32>
    %76 = vector.broadcast %75 : vector<1x512xf32> to vector<8x512xf32>
    %77 = arith.mulf %74, %76 : vector<8x512xf32>
    %78 = tpu.concatenate %73, %53, %77 in 0 : vector<8x512xf32>, vector<8x512xf32>, vector<8x512xf32> -> vector<24x512xf32>
    %c1_29 = arith.constant 1 : index
    %c1_30 = arith.constant 1 : index
    %c0_31 = arith.constant 0 : index
    %c0_32 = arith.constant 0 : index
    %79 = vector.load %arg3[%c1_29, %c1_30, %c0_31, %c0_32] : memref<6x3x8x24xf32, #tpu.memory_space<vmem>>, vector<1x1x8x24xf32>
    %80 = vector.shape_cast %79 : vector<1x1x8x24xf32> to vector<8x24xf32>
    %cst_33 = arith.constant dense<0.000000e+00> : vector<8x512xf32>
    %81 = tpu.matmul %80, %78, %cst_33 {dimension_numbers = #tpu.dot_dimension_numbers<[1], [0], [0], [1], [0, 0, 1, 1], [], []>} : vector<8x24xf32>, vector<24x512xf32>, vector<8x512xf32> -> vector<8x512xf32>
    %82 = arith.addf %69, %81 : vector<8x512xf32>
    %c497_i32_34 = arith.constant 497 : i32
    %83 = tpu.dynamic_rotate %53 by %c497_i32_34 dim 1 : vector<8x512xf32>, i32 -> vector<8x512xf32>
    %84 = vector.extract_strided_slice %1 {offsets = [6, 0], sizes = [1, 512], strides = [1, 1]} : vector<9x512xf32> to vector<1x512xf32>
    %85 = vector.broadcast %84 : vector<1x512xf32> to vector<8x512xf32>
    %86 = arith.mulf %83, %85 : vector<8x512xf32>
    %c496_i32_35 = arith.constant 496 : i32
    %87 = tpu.dynamic_rotate %53 by %c496_i32_35 dim 1 : vector<8x512xf32>, i32 -> vector<8x512xf32>
    %88 = vector.extract_strided_slice %1 {offsets = [7, 0], sizes = [1, 512], strides = [1, 1]} : vector<9x512xf32> to vector<1x512xf32>
    %89 = vector.broadcast %88 : vector<1x512xf32> to vector<8x512xf32>
    %90 = arith.mulf %87, %89 : vector<8x512xf32>
    %c495_i32_36 = arith.constant 495 : i32
    %91 = tpu.dynamic_rotate %53 by %c495_i32_36 dim 1 : vector<8x512xf32>, i32 -> vector<8x512xf32>
    %92 = vector.extract_strided_slice %1 {offsets = [8, 0], sizes = [1, 512], strides = [1, 1]} : vector<9x512xf32> to vector<1x512xf32>
    %93 = vector.broadcast %92 : vector<1x512xf32> to vector<8x512xf32>
    %94 = arith.mulf %91, %93 : vector<8x512xf32>
    %95 = tpu.concatenate %86, %90, %94 in 0 : vector<8x512xf32>, vector<8x512xf32>, vector<8x512xf32> -> vector<24x512xf32>
    %c1_37 = arith.constant 1 : index
    %c2_38 = arith.constant 2 : index
    %c0_39 = arith.constant 0 : index
    %c0_40 = arith.constant 0 : index
    %96 = vector.load %arg3[%c1_37, %c2_38, %c0_39, %c0_40] : memref<6x3x8x24xf32, #tpu.memory_space<vmem>>, vector<1x1x8x24xf32>
    %97 = vector.shape_cast %96 : vector<1x1x8x24xf32> to vector<8x24xf32>
    %cst_41 = arith.constant dense<0.000000e+00> : vector<8x512xf32>
    %98 = tpu.matmul %97, %95, %cst_41 {dimension_numbers = #tpu.dot_dimension_numbers<[1], [0], [0], [1], [0, 0, 1, 1], [], []>} : vector<8x24xf32>, vector<24x512xf32>, vector<8x512xf32> -> vector<8x512xf32>
    %99 = arith.addf %82, %98 : vector<8x512xf32>
    %c1_42 = arith.constant 1 : index
    %c0_43 = arith.constant 0 : index
    %c0_44 = arith.constant 0 : index
    %100 = vector.load %arg4[%c1_42, %c0_43, %c0_44] : memref<6x8x1xf32, #tpu.memory_space<vmem>>, vector<1x8x1xf32>
    %101 = vector.shape_cast %100 : vector<1x8x1xf32> to vector<8x1xf32>
    %102 = vector.broadcast %101 : vector<8x1xf32> to vector<8x512xf32>
    %103 = arith.addf %99, %102 : vector<8x512xf32>
    %104 = arith.addf %103, %0 : vector<8x512xf32>
    %cst_45 = arith.constant 0.000000e+00 : f32
    %105 = vector.broadcast %cst_45 : f32 to vector<8x512xf32>
    %106 = arith.maximumf %104, %105 : vector<8x512xf32>
    %c0_46 = arith.constant 0 : index
    %c0_47 = arith.constant 0 : index
    %c0_48 = arith.constant 0 : index
    %107 = vector.load %arg5[%c0_46, %c0_47, %c0_48] : memref<2x8x8xf32, #tpu.memory_space<vmem>>, vector<1x8x8xf32>
    %108 = vector.shape_cast %107 : vector<1x8x8xf32> to vector<8x8xf32>
    %cst_49 = arith.constant dense<0.000000e+00> : vector<8x512xf32>
    %109 = tpu.matmul %108, %0, %cst_49 {dimension_numbers = #tpu.dot_dimension_numbers<[1], [0], [0], [1], [0, 0, 1, 1], [], []>} : vector<8x8xf32>, vector<8x512xf32>, vector<8x512xf32> -> vector<8x512xf32>
    %c1_50 = arith.constant 1 : index
    %c0_51 = arith.constant 0 : index
    %c0_52 = arith.constant 0 : index
    %110 = vector.load %arg5[%c1_50, %c0_51, %c0_52] : memref<2x8x8xf32, #tpu.memory_space<vmem>>, vector<1x8x8xf32>
    %111 = vector.shape_cast %110 : vector<1x8x8xf32> to vector<8x8xf32>
    %cst_53 = arith.constant dense<0.000000e+00> : vector<8x512xf32>
    %112 = tpu.matmul %111, %106, %cst_53 {dimension_numbers = #tpu.dot_dimension_numbers<[1], [0], [0], [1], [0, 0, 1, 1], [], []>} : vector<8x8xf32>, vector<8x512xf32>, vector<8x512xf32> -> vector<8x512xf32>
    %113 = arith.addf %109, %112 : vector<8x512xf32>
    %c0_54 = arith.constant 0 : index
    %c0_55 = arith.constant 0 : index
    %114 = vector.load %arg6[%c0_54, %c0_55] : memref<8x1xf32, #tpu.memory_space<vmem>>, vector<8x1xf32>
    %115 = vector.broadcast %114 : vector<8x1xf32> to vector<8x512xf32>
    %116 = arith.addf %113, %115 : vector<8x512xf32>
    %c17_i32_56 = arith.constant 17 : i32
    %117 = tpu.dynamic_rotate %116 by %c17_i32_56 dim 1 : vector<8x512xf32>, i32 -> vector<8x512xf32>
    %118 = vector.extract_strided_slice %1 {offsets = [0, 0], sizes = [1, 512], strides = [1, 1]} : vector<9x512xf32> to vector<1x512xf32>
    %119 = vector.broadcast %118 : vector<1x512xf32> to vector<8x512xf32>
    %120 = arith.mulf %117, %119 : vector<8x512xf32>
    %c16_i32_57 = arith.constant 16 : i32
    %121 = tpu.dynamic_rotate %116 by %c16_i32_57 dim 1 : vector<8x512xf32>, i32 -> vector<8x512xf32>
    %122 = vector.extract_strided_slice %1 {offsets = [1, 0], sizes = [1, 512], strides = [1, 1]} : vector<9x512xf32> to vector<1x512xf32>
    %123 = vector.broadcast %122 : vector<1x512xf32> to vector<8x512xf32>
    %124 = arith.mulf %121, %123 : vector<8x512xf32>
    %c15_i32_58 = arith.constant 15 : i32
    %125 = tpu.dynamic_rotate %116 by %c15_i32_58 dim 1 : vector<8x512xf32>, i32 -> vector<8x512xf32>
    %126 = vector.extract_strided_slice %1 {offsets = [2, 0], sizes = [1, 512], strides = [1, 1]} : vector<9x512xf32> to vector<1x512xf32>
    %127 = vector.broadcast %126 : vector<1x512xf32> to vector<8x512xf32>
    %128 = arith.mulf %125, %127 : vector<8x512xf32>
    %129 = tpu.concatenate %120, %124, %128 in 0 : vector<8x512xf32>, vector<8x512xf32>, vector<8x512xf32> -> vector<24x512xf32>
    %c2_59 = arith.constant 2 : index
    %c0_60 = arith.constant 0 : index
    %c0_61 = arith.constant 0 : index
    %c0_62 = arith.constant 0 : index
    %130 = vector.load %arg3[%c2_59, %c0_60, %c0_61, %c0_62] : memref<6x3x8x24xf32, #tpu.memory_space<vmem>>, vector<1x1x8x24xf32>
    %131 = vector.shape_cast %130 : vector<1x1x8x24xf32> to vector<8x24xf32>
    %cst_63 = arith.constant dense<0.000000e+00> : vector<8x512xf32>
    %132 = tpu.matmul %131, %129, %cst_63 {dimension_numbers = #tpu.dot_dimension_numbers<[1], [0], [0], [1], [0, 0, 1, 1], [], []>} : vector<8x24xf32>, vector<24x512xf32>, vector<8x512xf32> -> vector<8x512xf32>
    %c1_i32_64 = arith.constant 1 : i32
    %133 = tpu.dynamic_rotate %116 by %c1_i32_64 dim 1 : vector<8x512xf32>, i32 -> vector<8x512xf32>
    %134 = vector.extract_strided_slice %1 {offsets = [3, 0], sizes = [1, 512], strides = [1, 1]} : vector<9x512xf32> to vector<1x512xf32>
    %135 = vector.broadcast %134 : vector<1x512xf32> to vector<8x512xf32>
    %136 = arith.mulf %133, %135 : vector<8x512xf32>
    %c511_i32_65 = arith.constant 511 : i32
    %137 = tpu.dynamic_rotate %116 by %c511_i32_65 dim 1 : vector<8x512xf32>, i32 -> vector<8x512xf32>
    %138 = vector.extract_strided_slice %1 {offsets = [5, 0], sizes = [1, 512], strides = [1, 1]} : vector<9x512xf32> to vector<1x512xf32>
    %139 = vector.broadcast %138 : vector<1x512xf32> to vector<8x512xf32>
    %140 = arith.mulf %137, %139 : vector<8x512xf32>
    %141 = tpu.concatenate %136, %116, %140 in 0 : vector<8x512xf32>, vector<8x512xf32>, vector<8x512xf32> -> vector<24x512xf32>
    %c2_66 = arith.constant 2 : index
    %c1_67 = arith.constant 1 : index
    %c0_68 = arith.constant 0 : index
    %c0_69 = arith.constant 0 : index
    %142 = vector.load %arg3[%c2_66, %c1_67, %c0_68, %c0_69] : memref<6x3x8x24xf32, #tpu.memory_space<vmem>>, vector<1x1x8x24xf32>
    %143 = vector.shape_cast %142 : vector<1x1x8x24xf32> to vector<8x24xf32>
    %cst_70 = arith.constant dense<0.000000e+00> : vector<8x512xf32>
    %144 = tpu.matmul %143, %141, %cst_70 {dimension_numbers = #tpu.dot_dimension_numbers<[1], [0], [0], [1], [0, 0, 1, 1], [], []>} : vector<8x24xf32>, vector<24x512xf32>, vector<8x512xf32> -> vector<8x512xf32>
    %145 = arith.addf %132, %144 : vector<8x512xf32>
    %c497_i32_71 = arith.constant 497 : i32
    %146 = tpu.dynamic_rotate %116 by %c497_i32_71 dim 1 : vector<8x512xf32>, i32 -> vector<8x512xf32>
    %147 = vector.extract_strided_slice %1 {offsets = [6, 0], sizes = [1, 512], strides = [1, 1]} : vector<9x512xf32> to vector<1x512xf32>
    %148 = vector.broadcast %147 : vector<1x512xf32> to vector<8x512xf32>
    %149 = arith.mulf %146, %148 : vector<8x512xf32>
    %c496_i32_72 = arith.constant 496 : i32
    %150 = tpu.dynamic_rotate %116 by %c496_i32_72 dim 1 : vector<8x512xf32>, i32 -> vector<8x512xf32>
    %151 = vector.extract_strided_slice %1 {offsets = [7, 0], sizes = [1, 512], strides = [1, 1]} : vector<9x512xf32> to vector<1x512xf32>
    %152 = vector.broadcast %151 : vector<1x512xf32> to vector<8x512xf32>
    %153 = arith.mulf %150, %152 : vector<8x512xf32>
    %c495_i32_73 = arith.constant 495 : i32
    %154 = tpu.dynamic_rotate %116 by %c495_i32_73 dim 1 : vector<8x512xf32>, i32 -> vector<8x512xf32>
    %155 = vector.extract_strided_slice %1 {offsets = [8, 0], sizes = [1, 512], strides = [1, 1]} : vector<9x512xf32> to vector<1x512xf32>
    %156 = vector.broadcast %155 : vector<1x512xf32> to vector<8x512xf32>
    %157 = arith.mulf %154, %156 : vector<8x512xf32>
    %158 = tpu.concatenate %149, %153, %157 in 0 : vector<8x512xf32>, vector<8x512xf32>, vector<8x512xf32> -> vector<24x512xf32>
    %c2_74 = arith.constant 2 : index
    %c2_75 = arith.constant 2 : index
    %c0_76 = arith.constant 0 : index
    %c0_77 = arith.constant 0 : index
    %159 = vector.load %arg3[%c2_74, %c2_75, %c0_76, %c0_77] : memref<6x3x8x24xf32, #tpu.memory_space<vmem>>, vector<1x1x8x24xf32>
    %160 = vector.shape_cast %159 : vector<1x1x8x24xf32> to vector<8x24xf32>
    %cst_78 = arith.constant dense<0.000000e+00> : vector<8x512xf32>
    %161 = tpu.matmul %160, %158, %cst_78 {dimension_numbers = #tpu.dot_dimension_numbers<[1], [0], [0], [1], [0, 0, 1, 1], [], []>} : vector<8x24xf32>, vector<24x512xf32>, vector<8x512xf32> -> vector<8x512xf32>
    %162 = arith.addf %145, %161 : vector<8x512xf32>
    %c2_79 = arith.constant 2 : index
    %c0_80 = arith.constant 0 : index
    %c0_81 = arith.constant 0 : index
    %163 = vector.load %arg4[%c2_79, %c0_80, %c0_81] : memref<6x8x1xf32, #tpu.memory_space<vmem>>, vector<1x8x1xf32>
    %164 = vector.shape_cast %163 : vector<1x8x1xf32> to vector<8x1xf32>
    %165 = vector.broadcast %164 : vector<8x1xf32> to vector<8x512xf32>
    %166 = arith.addf %162, %165 : vector<8x512xf32>
    %cst_82 = arith.constant 0.000000e+00 : f32
    %167 = vector.broadcast %cst_82 : f32 to vector<8x512xf32>
    %168 = arith.maximumf %166, %167 : vector<8x512xf32>
    %c17_i32_83 = arith.constant 17 : i32
    %169 = tpu.dynamic_rotate %168 by %c17_i32_83 dim 1 : vector<8x512xf32>, i32 -> vector<8x512xf32>
    %170 = vector.extract_strided_slice %1 {offsets = [0, 0], sizes = [1, 512], strides = [1, 1]} : vector<9x512xf32> to vector<1x512xf32>
    %171 = vector.broadcast %170 : vector<1x512xf32> to vector<8x512xf32>
    %172 = arith.mulf %169, %171 : vector<8x512xf32>
    %c16_i32_84 = arith.constant 16 : i32
    %173 = tpu.dynamic_rotate %168 by %c16_i32_84 dim 1 : vector<8x512xf32>, i32 -> vector<8x512xf32>
    %174 = vector.extract_strided_slice %1 {offsets = [1, 0], sizes = [1, 512], strides = [1, 1]} : vector<9x512xf32> to vector<1x512xf32>
    %175 = vector.broadcast %174 : vector<1x512xf32> to vector<8x512xf32>
    %176 = arith.mulf %173, %175 : vector<8x512xf32>
    %c15_i32_85 = arith.constant 15 : i32
    %177 = tpu.dynamic_rotate %168 by %c15_i32_85 dim 1 : vector<8x512xf32>, i32 -> vector<8x512xf32>
    %178 = vector.extract_strided_slice %1 {offsets = [2, 0], sizes = [1, 512], strides = [1, 1]} : vector<9x512xf32> to vector<1x512xf32>
    %179 = vector.broadcast %178 : vector<1x512xf32> to vector<8x512xf32>
    %180 = arith.mulf %177, %179 : vector<8x512xf32>
    %181 = tpu.concatenate %172, %176, %180 in 0 : vector<8x512xf32>, vector<8x512xf32>, vector<8x512xf32> -> vector<24x512xf32>
    %c3 = arith.constant 3 : index
    %c0_86 = arith.constant 0 : index
    %c0_87 = arith.constant 0 : index
    %c0_88 = arith.constant 0 : index
    %182 = vector.load %arg3[%c3, %c0_86, %c0_87, %c0_88] : memref<6x3x8x24xf32, #tpu.memory_space<vmem>>, vector<1x1x8x24xf32>
    %183 = vector.shape_cast %182 : vector<1x1x8x24xf32> to vector<8x24xf32>
    %cst_89 = arith.constant dense<0.000000e+00> : vector<8x512xf32>
    %184 = tpu.matmul %183, %181, %cst_89 {dimension_numbers = #tpu.dot_dimension_numbers<[1], [0], [0], [1], [0, 0, 1, 1], [], []>} : vector<8x24xf32>, vector<24x512xf32>, vector<8x512xf32> -> vector<8x512xf32>
    %c1_i32_90 = arith.constant 1 : i32
    %185 = tpu.dynamic_rotate %168 by %c1_i32_90 dim 1 : vector<8x512xf32>, i32 -> vector<8x512xf32>
    %186 = vector.extract_strided_slice %1 {offsets = [3, 0], sizes = [1, 512], strides = [1, 1]} : vector<9x512xf32> to vector<1x512xf32>
    %187 = vector.broadcast %186 : vector<1x512xf32> to vector<8x512xf32>
    %188 = arith.mulf %185, %187 : vector<8x512xf32>
    %c511_i32_91 = arith.constant 511 : i32
    %189 = tpu.dynamic_rotate %168 by %c511_i32_91 dim 1 : vector<8x512xf32>, i32 -> vector<8x512xf32>
    %190 = vector.extract_strided_slice %1 {offsets = [5, 0], sizes = [1, 512], strides = [1, 1]} : vector<9x512xf32> to vector<1x512xf32>
    %191 = vector.broadcast %190 : vector<1x512xf32> to vector<8x512xf32>
    %192 = arith.mulf %189, %191 : vector<8x512xf32>
    %193 = tpu.concatenate %188, %168, %192 in 0 : vector<8x512xf32>, vector<8x512xf32>, vector<8x512xf32> -> vector<24x512xf32>
    %c3_92 = arith.constant 3 : index
    %c1_93 = arith.constant 1 : index
    %c0_94 = arith.constant 0 : index
    %c0_95 = arith.constant 0 : index
    %194 = vector.load %arg3[%c3_92, %c1_93, %c0_94, %c0_95] : memref<6x3x8x24xf32, #tpu.memory_space<vmem>>, vector<1x1x8x24xf32>
    %195 = vector.shape_cast %194 : vector<1x1x8x24xf32> to vector<8x24xf32>
    %cst_96 = arith.constant dense<0.000000e+00> : vector<8x512xf32>
    %196 = tpu.matmul %195, %193, %cst_96 {dimension_numbers = #tpu.dot_dimension_numbers<[1], [0], [0], [1], [0, 0, 1, 1], [], []>} : vector<8x24xf32>, vector<24x512xf32>, vector<8x512xf32> -> vector<8x512xf32>
    %197 = arith.addf %184, %196 : vector<8x512xf32>
    %c497_i32_97 = arith.constant 497 : i32
    %198 = tpu.dynamic_rotate %168 by %c497_i32_97 dim 1 : vector<8x512xf32>, i32 -> vector<8x512xf32>
    %199 = vector.extract_strided_slice %1 {offsets = [6, 0], sizes = [1, 512], strides = [1, 1]} : vector<9x512xf32> to vector<1x512xf32>
    %200 = vector.broadcast %199 : vector<1x512xf32> to vector<8x512xf32>
    %201 = arith.mulf %198, %200 : vector<8x512xf32>
    %c496_i32_98 = arith.constant 496 : i32
    %202 = tpu.dynamic_rotate %168 by %c496_i32_98 dim 1 : vector<8x512xf32>, i32 -> vector<8x512xf32>
    %203 = vector.extract_strided_slice %1 {offsets = [7, 0], sizes = [1, 512], strides = [1, 1]} : vector<9x512xf32> to vector<1x512xf32>
    %204 = vector.broadcast %203 : vector<1x512xf32> to vector<8x512xf32>
    %205 = arith.mulf %202, %204 : vector<8x512xf32>
    %c495_i32_99 = arith.constant 495 : i32
    %206 = tpu.dynamic_rotate %168 by %c495_i32_99 dim 1 : vector<8x512xf32>, i32 -> vector<8x512xf32>
    %207 = vector.extract_strided_slice %1 {offsets = [8, 0], sizes = [1, 512], strides = [1, 1]} : vector<9x512xf32> to vector<1x512xf32>
    %208 = vector.broadcast %207 : vector<1x512xf32> to vector<8x512xf32>
    %209 = arith.mulf %206, %208 : vector<8x512xf32>
    %210 = tpu.concatenate %201, %205, %209 in 0 : vector<8x512xf32>, vector<8x512xf32>, vector<8x512xf32> -> vector<24x512xf32>
    %c3_100 = arith.constant 3 : index
    %c2_101 = arith.constant 2 : index
    %c0_102 = arith.constant 0 : index
    %c0_103 = arith.constant 0 : index
    %211 = vector.load %arg3[%c3_100, %c2_101, %c0_102, %c0_103] : memref<6x3x8x24xf32, #tpu.memory_space<vmem>>, vector<1x1x8x24xf32>
    %212 = vector.shape_cast %211 : vector<1x1x8x24xf32> to vector<8x24xf32>
    %cst_104 = arith.constant dense<0.000000e+00> : vector<8x512xf32>
    %213 = tpu.matmul %212, %210, %cst_104 {dimension_numbers = #tpu.dot_dimension_numbers<[1], [0], [0], [1], [0, 0, 1, 1], [], []>} : vector<8x24xf32>, vector<24x512xf32>, vector<8x512xf32> -> vector<8x512xf32>
    %214 = arith.addf %197, %213 : vector<8x512xf32>
    %c3_105 = arith.constant 3 : index
    %c0_106 = arith.constant 0 : index
    %c0_107 = arith.constant 0 : index
    %215 = vector.load %arg4[%c3_105, %c0_106, %c0_107] : memref<6x8x1xf32, #tpu.memory_space<vmem>>, vector<1x8x1xf32>
    %216 = vector.shape_cast %215 : vector<1x8x1xf32> to vector<8x1xf32>
    %217 = vector.broadcast %216 : vector<8x1xf32> to vector<8x512xf32>
    %218 = arith.addf %214, %217 : vector<8x512xf32>
    %219 = arith.addf %218, %116 : vector<8x512xf32>
    %cst_108 = arith.constant 0.000000e+00 : f32
    %220 = vector.broadcast %cst_108 : f32 to vector<8x512xf32>
    %221 = arith.maximumf %219, %220 : vector<8x512xf32>
    %c0_109 = arith.constant 0 : index
    %c0_110 = arith.constant 0 : index
    %c0_111 = arith.constant 0 : index
    %222 = vector.load %arg7[%c0_109, %c0_110, %c0_111] : memref<3x8x8xf32, #tpu.memory_space<vmem>>, vector<1x8x8xf32>
    %223 = vector.shape_cast %222 : vector<1x8x8xf32> to vector<8x8xf32>
    %cst_112 = arith.constant dense<0.000000e+00> : vector<8x512xf32>
    %224 = tpu.matmul %223, %0, %cst_112 {dimension_numbers = #tpu.dot_dimension_numbers<[1], [0], [0], [1], [0, 0, 1, 1], [], []>} : vector<8x8xf32>, vector<8x512xf32>, vector<8x512xf32> -> vector<8x512xf32>
    %c1_113 = arith.constant 1 : index
    %c0_114 = arith.constant 0 : index
    %c0_115 = arith.constant 0 : index
    %225 = vector.load %arg7[%c1_113, %c0_114, %c0_115] : memref<3x8x8xf32, #tpu.memory_space<vmem>>, vector<1x8x8xf32>
    %226 = vector.shape_cast %225 : vector<1x8x8xf32> to vector<8x8xf32>
    %cst_116 = arith.constant dense<0.000000e+00> : vector<8x512xf32>
    %227 = tpu.matmul %226, %106, %cst_116 {dimension_numbers = #tpu.dot_dimension_numbers<[1], [0], [0], [1], [0, 0, 1, 1], [], []>} : vector<8x8xf32>, vector<8x512xf32>, vector<8x512xf32> -> vector<8x512xf32>
    %228 = arith.addf %224, %227 : vector<8x512xf32>
    %c2_117 = arith.constant 2 : index
    %c0_118 = arith.constant 0 : index
    %c0_119 = arith.constant 0 : index
    %229 = vector.load %arg7[%c2_117, %c0_118, %c0_119] : memref<3x8x8xf32, #tpu.memory_space<vmem>>, vector<1x8x8xf32>
    %230 = vector.shape_cast %229 : vector<1x8x8xf32> to vector<8x8xf32>
    %cst_120 = arith.constant dense<0.000000e+00> : vector<8x512xf32>
    %231 = tpu.matmul %230, %221, %cst_120 {dimension_numbers = #tpu.dot_dimension_numbers<[1], [0], [0], [1], [0, 0, 1, 1], [], []>} : vector<8x8xf32>, vector<8x512xf32>, vector<8x512xf32> -> vector<8x512xf32>
    %232 = arith.addf %228, %231 : vector<8x512xf32>
    %c0_121 = arith.constant 0 : index
    %c0_122 = arith.constant 0 : index
    %233 = vector.load %arg8[%c0_121, %c0_122] : memref<8x1xf32, #tpu.memory_space<vmem>>, vector<8x1xf32>
    %234 = vector.broadcast %233 : vector<8x1xf32> to vector<8x512xf32>
    %235 = arith.addf %232, %234 : vector<8x512xf32>
    %c17_i32_123 = arith.constant 17 : i32
    %236 = tpu.dynamic_rotate %235 by %c17_i32_123 dim 1 : vector<8x512xf32>, i32 -> vector<8x512xf32>
    %237 = vector.extract_strided_slice %1 {offsets = [0, 0], sizes = [1, 512], strides = [1, 1]} : vector<9x512xf32> to vector<1x512xf32>
    %238 = vector.broadcast %237 : vector<1x512xf32> to vector<8x512xf32>
    %239 = arith.mulf %236, %238 : vector<8x512xf32>
    %c16_i32_124 = arith.constant 16 : i32
    %240 = tpu.dynamic_rotate %235 by %c16_i32_124 dim 1 : vector<8x512xf32>, i32 -> vector<8x512xf32>
    %241 = vector.extract_strided_slice %1 {offsets = [1, 0], sizes = [1, 512], strides = [1, 1]} : vector<9x512xf32> to vector<1x512xf32>
    %242 = vector.broadcast %241 : vector<1x512xf32> to vector<8x512xf32>
    %243 = arith.mulf %240, %242 : vector<8x512xf32>
    %c15_i32_125 = arith.constant 15 : i32
    %244 = tpu.dynamic_rotate %235 by %c15_i32_125 dim 1 : vector<8x512xf32>, i32 -> vector<8x512xf32>
    %245 = vector.extract_strided_slice %1 {offsets = [2, 0], sizes = [1, 512], strides = [1, 1]} : vector<9x512xf32> to vector<1x512xf32>
    %246 = vector.broadcast %245 : vector<1x512xf32> to vector<8x512xf32>
    %247 = arith.mulf %244, %246 : vector<8x512xf32>
    %248 = tpu.concatenate %239, %243, %247 in 0 : vector<8x512xf32>, vector<8x512xf32>, vector<8x512xf32> -> vector<24x512xf32>
    %c4 = arith.constant 4 : index
    %c0_126 = arith.constant 0 : index
    %c0_127 = arith.constant 0 : index
    %c0_128 = arith.constant 0 : index
    %249 = vector.load %arg3[%c4, %c0_126, %c0_127, %c0_128] : memref<6x3x8x24xf32, #tpu.memory_space<vmem>>, vector<1x1x8x24xf32>
    %250 = vector.shape_cast %249 : vector<1x1x8x24xf32> to vector<8x24xf32>
    %cst_129 = arith.constant dense<0.000000e+00> : vector<8x512xf32>
    %251 = tpu.matmul %250, %248, %cst_129 {dimension_numbers = #tpu.dot_dimension_numbers<[1], [0], [0], [1], [0, 0, 1, 1], [], []>} : vector<8x24xf32>, vector<24x512xf32>, vector<8x512xf32> -> vector<8x512xf32>
    %c1_i32_130 = arith.constant 1 : i32
    %252 = tpu.dynamic_rotate %235 by %c1_i32_130 dim 1 : vector<8x512xf32>, i32 -> vector<8x512xf32>
    %253 = vector.extract_strided_slice %1 {offsets = [3, 0], sizes = [1, 512], strides = [1, 1]} : vector<9x512xf32> to vector<1x512xf32>
    %254 = vector.broadcast %253 : vector<1x512xf32> to vector<8x512xf32>
    %255 = arith.mulf %252, %254 : vector<8x512xf32>
    %c511_i32_131 = arith.constant 511 : i32
    %256 = tpu.dynamic_rotate %235 by %c511_i32_131 dim 1 : vector<8x512xf32>, i32 -> vector<8x512xf32>
    %257 = vector.extract_strided_slice %1 {offsets = [5, 0], sizes = [1, 512], strides = [1, 1]} : vector<9x512xf32> to vector<1x512xf32>
    %258 = vector.broadcast %257 : vector<1x512xf32> to vector<8x512xf32>
    %259 = arith.mulf %256, %258 : vector<8x512xf32>
    %260 = tpu.concatenate %255, %235, %259 in 0 : vector<8x512xf32>, vector<8x512xf32>, vector<8x512xf32> -> vector<24x512xf32>
    %c4_132 = arith.constant 4 : index
    %c1_133 = arith.constant 1 : index
    %c0_134 = arith.constant 0 : index
    %c0_135 = arith.constant 0 : index
    %261 = vector.load %arg3[%c4_132, %c1_133, %c0_134, %c0_135] : memref<6x3x8x24xf32, #tpu.memory_space<vmem>>, vector<1x1x8x24xf32>
    %262 = vector.shape_cast %261 : vector<1x1x8x24xf32> to vector<8x24xf32>
    %cst_136 = arith.constant dense<0.000000e+00> : vector<8x512xf32>
    %263 = tpu.matmul %262, %260, %cst_136 {dimension_numbers = #tpu.dot_dimension_numbers<[1], [0], [0], [1], [0, 0, 1, 1], [], []>} : vector<8x24xf32>, vector<24x512xf32>, vector<8x512xf32> -> vector<8x512xf32>
    %264 = arith.addf %251, %263 : vector<8x512xf32>
    %c497_i32_137 = arith.constant 497 : i32
    %265 = tpu.dynamic_rotate %235 by %c497_i32_137 dim 1 : vector<8x512xf32>, i32 -> vector<8x512xf32>
    %266 = vector.extract_strided_slice %1 {offsets = [6, 0], sizes = [1, 512], strides = [1, 1]} : vector<9x512xf32> to vector<1x512xf32>
    %267 = vector.broadcast %266 : vector<1x512xf32> to vector<8x512xf32>
    %268 = arith.mulf %265, %267 : vector<8x512xf32>
    %c496_i32_138 = arith.constant 496 : i32
    %269 = tpu.dynamic_rotate %235 by %c496_i32_138 dim 1 : vector<8x512xf32>, i32 -> vector<8x512xf32>
    %270 = vector.extract_strided_slice %1 {offsets = [7, 0], sizes = [1, 512], strides = [1, 1]} : vector<9x512xf32> to vector<1x512xf32>
    %271 = vector.broadcast %270 : vector<1x512xf32> to vector<8x512xf32>
    %272 = arith.mulf %269, %271 : vector<8x512xf32>
    %c495_i32_139 = arith.constant 495 : i32
    %273 = tpu.dynamic_rotate %235 by %c495_i32_139 dim 1 : vector<8x512xf32>, i32 -> vector<8x512xf32>
    %274 = vector.extract_strided_slice %1 {offsets = [8, 0], sizes = [1, 512], strides = [1, 1]} : vector<9x512xf32> to vector<1x512xf32>
    %275 = vector.broadcast %274 : vector<1x512xf32> to vector<8x512xf32>
    %276 = arith.mulf %273, %275 : vector<8x512xf32>
    %277 = tpu.concatenate %268, %272, %276 in 0 : vector<8x512xf32>, vector<8x512xf32>, vector<8x512xf32> -> vector<24x512xf32>
    %c4_140 = arith.constant 4 : index
    %c2_141 = arith.constant 2 : index
    %c0_142 = arith.constant 0 : index
    %c0_143 = arith.constant 0 : index
    %278 = vector.load %arg3[%c4_140, %c2_141, %c0_142, %c0_143] : memref<6x3x8x24xf32, #tpu.memory_space<vmem>>, vector<1x1x8x24xf32>
    %279 = vector.shape_cast %278 : vector<1x1x8x24xf32> to vector<8x24xf32>
    %cst_144 = arith.constant dense<0.000000e+00> : vector<8x512xf32>
    %280 = tpu.matmul %279, %277, %cst_144 {dimension_numbers = #tpu.dot_dimension_numbers<[1], [0], [0], [1], [0, 0, 1, 1], [], []>} : vector<8x24xf32>, vector<24x512xf32>, vector<8x512xf32> -> vector<8x512xf32>
    %281 = arith.addf %264, %280 : vector<8x512xf32>
    %c4_145 = arith.constant 4 : index
    %c0_146 = arith.constant 0 : index
    %c0_147 = arith.constant 0 : index
    %282 = vector.load %arg4[%c4_145, %c0_146, %c0_147] : memref<6x8x1xf32, #tpu.memory_space<vmem>>, vector<1x8x1xf32>
    %283 = vector.shape_cast %282 : vector<1x8x1xf32> to vector<8x1xf32>
    %284 = vector.broadcast %283 : vector<8x1xf32> to vector<8x512xf32>
    %285 = arith.addf %281, %284 : vector<8x512xf32>
    %cst_148 = arith.constant 0.000000e+00 : f32
    %286 = vector.broadcast %cst_148 : f32 to vector<8x512xf32>
    %287 = arith.maximumf %285, %286 : vector<8x512xf32>
    %c17_i32_149 = arith.constant 17 : i32
    %288 = tpu.dynamic_rotate %287 by %c17_i32_149 dim 1 : vector<8x512xf32>, i32 -> vector<8x512xf32>
    %289 = vector.extract_strided_slice %1 {offsets = [0, 0], sizes = [1, 512], strides = [1, 1]} : vector<9x512xf32> to vector<1x512xf32>
    %290 = vector.broadcast %289 : vector<1x512xf32> to vector<8x512xf32>
    %291 = arith.mulf %288, %290 : vector<8x512xf32>
    %c16_i32_150 = arith.constant 16 : i32
    %292 = tpu.dynamic_rotate %287 by %c16_i32_150 dim 1 : vector<8x512xf32>, i32 -> vector<8x512xf32>
    %293 = vector.extract_strided_slice %1 {offsets = [1, 0], sizes = [1, 512], strides = [1, 1]} : vector<9x512xf32> to vector<1x512xf32>
    %294 = vector.broadcast %293 : vector<1x512xf32> to vector<8x512xf32>
    %295 = arith.mulf %292, %294 : vector<8x512xf32>
    %c15_i32_151 = arith.constant 15 : i32
    %296 = tpu.dynamic_rotate %287 by %c15_i32_151 dim 1 : vector<8x512xf32>, i32 -> vector<8x512xf32>
    %297 = vector.extract_strided_slice %1 {offsets = [2, 0], sizes = [1, 512], strides = [1, 1]} : vector<9x512xf32> to vector<1x512xf32>
    %298 = vector.broadcast %297 : vector<1x512xf32> to vector<8x512xf32>
    %299 = arith.mulf %296, %298 : vector<8x512xf32>
    %300 = tpu.concatenate %291, %295, %299 in 0 : vector<8x512xf32>, vector<8x512xf32>, vector<8x512xf32> -> vector<24x512xf32>
    %c5 = arith.constant 5 : index
    %c0_152 = arith.constant 0 : index
    %c0_153 = arith.constant 0 : index
    %c0_154 = arith.constant 0 : index
    %301 = vector.load %arg3[%c5, %c0_152, %c0_153, %c0_154] : memref<6x3x8x24xf32, #tpu.memory_space<vmem>>, vector<1x1x8x24xf32>
    %302 = vector.shape_cast %301 : vector<1x1x8x24xf32> to vector<8x24xf32>
    %cst_155 = arith.constant dense<0.000000e+00> : vector<8x512xf32>
    %303 = tpu.matmul %302, %300, %cst_155 {dimension_numbers = #tpu.dot_dimension_numbers<[1], [0], [0], [1], [0, 0, 1, 1], [], []>} : vector<8x24xf32>, vector<24x512xf32>, vector<8x512xf32> -> vector<8x512xf32>
    %c1_i32_156 = arith.constant 1 : i32
    %304 = tpu.dynamic_rotate %287 by %c1_i32_156 dim 1 : vector<8x512xf32>, i32 -> vector<8x512xf32>
    %305 = vector.extract_strided_slice %1 {offsets = [3, 0], sizes = [1, 512], strides = [1, 1]} : vector<9x512xf32> to vector<1x512xf32>
    %306 = vector.broadcast %305 : vector<1x512xf32> to vector<8x512xf32>
    %307 = arith.mulf %304, %306 : vector<8x512xf32>
    %c511_i32_157 = arith.constant 511 : i32
    %308 = tpu.dynamic_rotate %287 by %c511_i32_157 dim 1 : vector<8x512xf32>, i32 -> vector<8x512xf32>
    %309 = vector.extract_strided_slice %1 {offsets = [5, 0], sizes = [1, 512], strides = [1, 1]} : vector<9x512xf32> to vector<1x512xf32>
    %310 = vector.broadcast %309 : vector<1x512xf32> to vector<8x512xf32>
    %311 = arith.mulf %308, %310 : vector<8x512xf32>
    %312 = tpu.concatenate %307, %287, %311 in 0 : vector<8x512xf32>, vector<8x512xf32>, vector<8x512xf32> -> vector<24x512xf32>
    %c5_158 = arith.constant 5 : index
    %c1_159 = arith.constant 1 : index
    %c0_160 = arith.constant 0 : index
    %c0_161 = arith.constant 0 : index
    %313 = vector.load %arg3[%c5_158, %c1_159, %c0_160, %c0_161] : memref<6x3x8x24xf32, #tpu.memory_space<vmem>>, vector<1x1x8x24xf32>
    %314 = vector.shape_cast %313 : vector<1x1x8x24xf32> to vector<8x24xf32>
    %cst_162 = arith.constant dense<0.000000e+00> : vector<8x512xf32>
    %315 = tpu.matmul %314, %312, %cst_162 {dimension_numbers = #tpu.dot_dimension_numbers<[1], [0], [0], [1], [0, 0, 1, 1], [], []>} : vector<8x24xf32>, vector<24x512xf32>, vector<8x512xf32> -> vector<8x512xf32>
    %316 = arith.addf %303, %315 : vector<8x512xf32>
    %c497_i32_163 = arith.constant 497 : i32
    %317 = tpu.dynamic_rotate %287 by %c497_i32_163 dim 1 : vector<8x512xf32>, i32 -> vector<8x512xf32>
    %318 = vector.extract_strided_slice %1 {offsets = [6, 0], sizes = [1, 512], strides = [1, 1]} : vector<9x512xf32> to vector<1x512xf32>
    %319 = vector.broadcast %318 : vector<1x512xf32> to vector<8x512xf32>
    %320 = arith.mulf %317, %319 : vector<8x512xf32>
    %c496_i32_164 = arith.constant 496 : i32
    %321 = tpu.dynamic_rotate %287 by %c496_i32_164 dim 1 : vector<8x512xf32>, i32 -> vector<8x512xf32>
    %322 = vector.extract_strided_slice %1 {offsets = [7, 0], sizes = [1, 512], strides = [1, 1]} : vector<9x512xf32> to vector<1x512xf32>
    %323 = vector.broadcast %322 : vector<1x512xf32> to vector<8x512xf32>
    %324 = arith.mulf %321, %323 : vector<8x512xf32>
    %c495_i32_165 = arith.constant 495 : i32
    %325 = tpu.dynamic_rotate %287 by %c495_i32_165 dim 1 : vector<8x512xf32>, i32 -> vector<8x512xf32>
    %326 = vector.extract_strided_slice %1 {offsets = [8, 0], sizes = [1, 512], strides = [1, 1]} : vector<9x512xf32> to vector<1x512xf32>
    %327 = vector.broadcast %326 : vector<1x512xf32> to vector<8x512xf32>
    %328 = arith.mulf %325, %327 : vector<8x512xf32>
    %329 = tpu.concatenate %320, %324, %328 in 0 : vector<8x512xf32>, vector<8x512xf32>, vector<8x512xf32> -> vector<24x512xf32>
    %c5_166 = arith.constant 5 : index
    %c2_167 = arith.constant 2 : index
    %c0_168 = arith.constant 0 : index
    %c0_169 = arith.constant 0 : index
    %330 = vector.load %arg3[%c5_166, %c2_167, %c0_168, %c0_169] : memref<6x3x8x24xf32, #tpu.memory_space<vmem>>, vector<1x1x8x24xf32>
    %331 = vector.shape_cast %330 : vector<1x1x8x24xf32> to vector<8x24xf32>
    %cst_170 = arith.constant dense<0.000000e+00> : vector<8x512xf32>
    %332 = tpu.matmul %331, %329, %cst_170 {dimension_numbers = #tpu.dot_dimension_numbers<[1], [0], [0], [1], [0, 0, 1, 1], [], []>} : vector<8x24xf32>, vector<24x512xf32>, vector<8x512xf32> -> vector<8x512xf32>
    %333 = arith.addf %316, %332 : vector<8x512xf32>
    %c5_171 = arith.constant 5 : index
    %c0_172 = arith.constant 0 : index
    %c0_173 = arith.constant 0 : index
    %334 = vector.load %arg4[%c5_171, %c0_172, %c0_173] : memref<6x8x1xf32, #tpu.memory_space<vmem>>, vector<1x8x1xf32>
    %335 = vector.shape_cast %334 : vector<1x8x1xf32> to vector<8x1xf32>
    %336 = vector.broadcast %335 : vector<8x1xf32> to vector<8x512xf32>
    %337 = arith.addf %333, %336 : vector<8x512xf32>
    %338 = arith.addf %337, %235 : vector<8x512xf32>
    %cst_174 = arith.constant 0.000000e+00 : f32
    %339 = vector.broadcast %cst_174 : f32 to vector<8x512xf32>
    %340 = arith.maximumf %338, %339 : vector<8x512xf32>
    %c0_175 = arith.constant 0 : index
    %c0_176 = arith.constant 0 : index
    %c0_177 = arith.constant 0 : index
    %341 = vector.load %arg9[%c0_175, %c0_176, %c0_177] : memref<4x8x8xf32, #tpu.memory_space<vmem>>, vector<1x8x8xf32>
    %342 = vector.shape_cast %341 : vector<1x8x8xf32> to vector<8x8xf32>
    %cst_178 = arith.constant dense<0.000000e+00> : vector<8x512xf32>
    %343 = tpu.matmul %342, %0, %cst_178 {dimension_numbers = #tpu.dot_dimension_numbers<[1], [0], [0], [1], [0, 0, 1, 1], [], []>} : vector<8x8xf32>, vector<8x512xf32>, vector<8x512xf32> -> vector<8x512xf32>
    %c1_179 = arith.constant 1 : index
    %c0_180 = arith.constant 0 : index
    %c0_181 = arith.constant 0 : index
    %344 = vector.load %arg9[%c1_179, %c0_180, %c0_181] : memref<4x8x8xf32, #tpu.memory_space<vmem>>, vector<1x8x8xf32>
    %345 = vector.shape_cast %344 : vector<1x8x8xf32> to vector<8x8xf32>
    %cst_182 = arith.constant dense<0.000000e+00> : vector<8x512xf32>
    %346 = tpu.matmul %345, %106, %cst_182 {dimension_numbers = #tpu.dot_dimension_numbers<[1], [0], [0], [1], [0, 0, 1, 1], [], []>} : vector<8x8xf32>, vector<8x512xf32>, vector<8x512xf32> -> vector<8x512xf32>
    %347 = arith.addf %343, %346 : vector<8x512xf32>
    %c2_183 = arith.constant 2 : index
    %c0_184 = arith.constant 0 : index
    %c0_185 = arith.constant 0 : index
    %348 = vector.load %arg9[%c2_183, %c0_184, %c0_185] : memref<4x8x8xf32, #tpu.memory_space<vmem>>, vector<1x8x8xf32>
    %349 = vector.shape_cast %348 : vector<1x8x8xf32> to vector<8x8xf32>
    %cst_186 = arith.constant dense<0.000000e+00> : vector<8x512xf32>
    %350 = tpu.matmul %349, %221, %cst_186 {dimension_numbers = #tpu.dot_dimension_numbers<[1], [0], [0], [1], [0, 0, 1, 1], [], []>} : vector<8x8xf32>, vector<8x512xf32>, vector<8x512xf32> -> vector<8x512xf32>
    %351 = arith.addf %347, %350 : vector<8x512xf32>
    %c3_187 = arith.constant 3 : index
    %c0_188 = arith.constant 0 : index
    %c0_189 = arith.constant 0 : index
    %352 = vector.load %arg9[%c3_187, %c0_188, %c0_189] : memref<4x8x8xf32, #tpu.memory_space<vmem>>, vector<1x8x8xf32>
    %353 = vector.shape_cast %352 : vector<1x8x8xf32> to vector<8x8xf32>
    %cst_190 = arith.constant dense<0.000000e+00> : vector<8x512xf32>
    %354 = tpu.matmul %353, %340, %cst_190 {dimension_numbers = #tpu.dot_dimension_numbers<[1], [0], [0], [1], [0, 0, 1, 1], [], []>} : vector<8x8xf32>, vector<8x512xf32>, vector<8x512xf32> -> vector<8x512xf32>
    %355 = arith.addf %351, %354 : vector<8x512xf32>
    %c0_191 = arith.constant 0 : index
    %c0_192 = arith.constant 0 : index
    %356 = vector.load %arg10[%c0_191, %c0_192] : memref<8x1xf32, #tpu.memory_space<vmem>>, vector<8x1xf32>
    %357 = vector.broadcast %356 : vector<8x1xf32> to vector<8x512xf32>
    %358 = arith.addf %355, %357 : vector<8x512xf32>
    %c0_193 = arith.constant 0 : index
    %c0_194 = arith.constant 0 : index
    %359 = vector.load %arg11[%c0_193, %c0_194] : memref<8x512xf32, #tpu.memory_space<vmem>>, vector<8x512xf32>
    tpu.vector_store %arg11[%c0_193, %c0_194], %358 {strides = array<i32>} : memref<8x512xf32, #tpu.memory_space<vmem>>, vector<8x512xf32>,
    return
  }
  func.func @transform_0(%arg0: i32) -> (i32, i32) {
    %c0_i32 = arith.constant 0 : i32
    %c0_i32_0 = arith.constant 0 : i32
    return %c0_i32, %arg0 : i32, i32
  }
  func.func @transform_1(%arg0: i32) -> (i32, i32) {
    %c0_i32 = arith.constant 0 : i32
    %c0_i32_0 = arith.constant 0 : i32
    %c0_i32_1 = arith.constant 0 : i32
    return %c0_i32, %c0_i32_0 : i32, i32
  }
  func.func @transform_2(%arg0: i32) -> (i32, i32, i32, i32) {
    %c0_i32 = arith.constant 0 : i32
    %c0_i32_0 = arith.constant 0 : i32
    %c0_i32_1 = arith.constant 0 : i32
    %c0_i32_2 = arith.constant 0 : i32
    %c0_i32_3 = arith.constant 0 : i32
    return %c0_i32, %c0_i32_0, %c0_i32_1, %c0_i32_2 : i32, i32, i32, i32
  }
  func.func @transform_3(%arg0: i32) -> (i32, i32, i32) {
    %c0_i32 = arith.constant 0 : i32
    %c0_i32_0 = arith.constant 0 : i32
    %c0_i32_1 = arith.constant 0 : i32
    %c0_i32_2 = arith.constant 0 : i32
    return %c0_i32, %c0_i32_0, %c0_i32_1 : i32, i32, i32
  }
  func.func @transform_4(%arg0: i32) -> (i32, i32, i32) {
    %c0_i32 = arith.constant 0 : i32
    %c0_i32_0 = arith.constant 0 : i32
    %c0_i32_1 = arith.constant 0 : i32
    %c0_i32_2 = arith.constant 0 : i32
    return %c0_i32, %c0_i32_0, %c0_i32_1 : i32, i32, i32
  }
  func.func @transform_5(%arg0: i32) -> (i32, i32) {
    %c0_i32 = arith.constant 0 : i32
    %c0_i32_0 = arith.constant 0 : i32
    %c0_i32_1 = arith.constant 0 : i32
    return %c0_i32, %c0_i32_0 : i32, i32
  }
  func.func @transform_6(%arg0: i32) -> (i32, i32, i32) {
    %c0_i32 = arith.constant 0 : i32
    %c0_i32_0 = arith.constant 0 : i32
    %c0_i32_1 = arith.constant 0 : i32
    %c0_i32_2 = arith.constant 0 : i32
    return %c0_i32, %c0_i32_0, %c0_i32_1 : i32, i32, i32
  }
  func.func @transform_7(%arg0: i32) -> (i32, i32) {
    %c0_i32 = arith.constant 0 : i32
    %c0_i32_0 = arith.constant 0 : i32
    %c0_i32_1 = arith.constant 0 : i32
    return %c0_i32, %c0_i32_0 : i32, i32
  }
  func.func @transform_8(%arg0: i32) -> (i32, i32, i32) {
    %c0_i32 = arith.constant 0 : i32
    %c0_i32_0 = arith.constant 0 : i32
    %c0_i32_1 = arith.constant 0 : i32
    %c0_i32_2 = arith.constant 0 : i32
    return %c0_i32, %c0_i32_0, %c0_i32_1 : i32, i32, i32
  }
  func.func @transform_9(%arg0: i32) -> (i32, i32) {
    %c0_i32 = arith.constant 0 : i32
    %c0_i32_0 = arith.constant 0 : i32
    %c0_i32_1 = arith.constant 0 : i32
    return %c0_i32, %c0_i32_0 : i32, i32
  }
  func.func @transform_10(%arg0: i32) -> (i32, i32) {
    %c0_i32 = arith.constant 0 : i32
    %c0_i32_0 = arith.constant 0 : i32
    return %c0_i32, %arg0 : i32, i32
  }
}

</mosaic_0001>

<bundles_post_ra>
// kernel: tpu_custom_call.1
= control target key start
LH: loop header
LB: loop body
LE: loop exit
PB: predicated region body
PF: predicated region fallthrough
CT: control target
= control target key end

     0   :  { %15 = vsyncpa [#allocation3], 0  ;;  %s7042_s0 = inlined_call_operand.hbm [shape: f32[8,512], index: 0, kind: input, shape index: {}]   ;;  %s7043_s1 = inlined_call_operand.vmem [shape: f32[9,512], index: 1, kind: input, shape index: {}]   ;;  %s7044_s2 = inlined_call_operand.hbm [shape: f32[6,3,8,24], index: 2, kind: input, shape index: {}]   ;;  %s7045_s3 = inlined_call_operand.vmem [shape: f32[6,8,1], index: 3, kind: input, shape index: {}]   ;;  %s7046_s4 = inlined_call_operand.hbm [shape: f32[2,8,8], index: 4, kind: input, shape index: {}]   ;;  %s7047_s5 = inlined_call_operand.vmem [shape: f32[8,1], index: 5, kind: input, shape index: {}]   ;;  %s7048_s6 = inlined_call_operand.hbm [shape: f32[3,8,8], index: 6, kind: input, shape index: {}]   ;;  %s7049_s7 = inlined_call_operand.vmem [shape: f32[8,1], index: 7, kind: input, shape index: {}]   ;;  %s7050_s8 = inlined_call_operand.vmem [shape: f32[4,8,8], index: 8, kind: input, shape index: {}]   ;;  %s7051_s9 = inlined_call_operand.vmem [shape: f32[8,1], index: 9, kind: input, shape index: {}]   ;;  %s7052_s10 = inlined_call_operand.hbm [shape: f32[8,512], index: 10, kind: output, shape index: {}]  }
   0x1   :  { %16 = vsyncpa [#allocation6], 0 }
   0x2   :  { %17 = vsyncpa [#allocation9], 0 }
   0x3   :  { %18 = vsyncpa [#allocation4], 0  ;;  %s5589_s13 = smov [#allocation5]   ;;  %s5471_s17 = scalar_lea.hbm %s7044_s2, 2304 }
   0x4   :  { %s36_s14 = sshll.u32 %s5589_s13, 4  ;;  %p5472_p0 = scmp.ne.s32.totalorder %s7044_s2, %s5471_s17  ;;  %s37_s14 = int_to_ptr.vmem [resolvable:$true] %s36_s14 }
   0x5   :  { %p5475_p1 = scmp.lt.u32.totalorder %s5471_s17, %s7044_s2 }
   0x7   :  { %p5477_p2 = pnand %p5475_p1, %p5472_p0 }
   0x9   :  { %5480 = shalt.err (!%p5477_p2)
}
   0xa   :  { %s5481_s22 = scalar_lea.vmem %s37_s14, 2304  ;;  %p5486_p4 = scmp.lt.s32.totalorder %s37_s14, %s37_s14 }
   0xb   :  { %p5482_p3 = scmp.ne.s32.totalorder %s37_s14, %s5481_s22  ;;  %p5487_p5 = scmp.lt.s32.totalorder %s5481_s22, %s5481_s22 }
   0xd   :  { %p5488_p6 = por %p5487_p5, %p5486_p4 }
   0xf   :  { %p5489_p7 = pnand %p5488_p6, %p5482_p3 }
  0x11   :  { %5492 = shalt.err (!%p5489_p7)
}
  0x12   :  { %s5590_s23 = smov 128   ;;  %s5591_s24 = smov 8  }
  0x13   :  { %42 = dma.hbm_to_vmem [thread:$0]  %s7044_s2, 2304, %s37_s14, [#allocation6], %s5590_s23, %s5590_s23, %s5591_s24  }
  0x14   :  { %s5592_s27 = smov [#allocation2]   ;;  %s5593_s29 = smov [#allocation7]  }
  0x15   :  { %s25_s28 = sshll.u32 %s5592_s27, 4  ;;  %s50_s30 = sshll.u32 %s5593_s29, 4  ;;  %s26_s28 = int_to_ptr.vmem [resolvable:$true] %s25_s28  ;;  %s51_s30 = int_to_ptr.vmem [resolvable:$true] %s50_s30 }
  0x16   :  { %s5493_s13 = scalar_lea.hbm %s7042_s0, 512 }
  0x17   :  { %p5494_p8 = scmp.ne.s32.totalorder %s7042_s0, %s5493_s13  ;;  %p5497_p9 = scmp.lt.u32.totalorder %s5493_s13, %s7042_s0 }
  0x19   :  { %p5499_p10 = pnand %p5497_p9, %p5494_p8 }
  0x1b   :  { %5502 = shalt.err (!%p5499_p10)
}
  0x1c   :  { %s5503_s2 = scalar_lea.vmem %s26_s28, 512  ;;  %p5508_p12 = scmp.lt.s32.totalorder %s26_s28, %s26_s28 }
  0x1d   :  { %p5504_p11 = scmp.ne.s32.totalorder %s26_s28, %s5503_s2  ;;  %p5509_p13 = scmp.lt.s32.totalorder %s5503_s2, %s5503_s2 }
  0x1f   :  { %p5510_p0 = por %p5509_p13, %p5508_p12 }
  0x21   :  { %p5511_p1 = pnand %p5510_p0, %p5504_p11 }
  0x23   :  { %5514 = shalt.err (!%p5511_p1)
}
  0x24   :  { %28 = dma.hbm_to_vmem [thread:$0]  %s7042_s0, 512, %s26_s28, [#allocation3]  }
  0x25   :  { %s5515_s22 = scalar_lea.hbm %s7046_s4, 256 }
  0x26   :  { %p5516_p2 = scmp.ne.s32.totalorder %s7046_s4, %s5515_s22  ;;  %p5519_p3 = scmp.lt.u32.totalorder %s5515_s22, %s7046_s4 }
  0x28   :  { %p5521_p4 = pnand %p5519_p3, %p5516_p2 }
  0x2a   :  { %5524 = shalt.err (!%p5521_p4)
}
  0x2b   :  { %s5525_s11 = scalar_lea.vmem %s51_s30, 256  ;;  %p5530_p6 = scmp.lt.s32.totalorder %s51_s30, %s51_s30 }
  0x2c   :  { %p5526_p5 = scmp.ne.s32.totalorder %s51_s30, %s5525_s11  ;;  %p5531_p7 = scmp.lt.s32.totalorder %s5525_s11, %s5525_s11 }
  0x2e   :  { %p5532_p8 = por %p5531_p7, %p5530_p6 }
  0x30   :  { %p5533_p9 = pnand %p5532_p8, %p5526_p5 }
  0x32   :  { %5536 = shalt.err (!%p5533_p9)
}
  0x33   :  { %56 = dma.hbm_to_vmem [thread:$0]  %s7046_s4, 256, %s51_s30, [#allocation6], %s5590_s23, %s5590_s23, %s5591_s24  }
  0x34   :  { %s5594_s12 = smov [#allocation8]   ;;  %s5537_s17 = scalar_lea.hbm %s7048_s6, 384 }
  0x35   :  { %s64_s13 = sshll.u32 %s5594_s12, 4  ;;  %p5538_p10 = scmp.ne.s32.totalorder %s7048_s6, %s5537_s17  ;;  %s65_s13 = int_to_ptr.vmem [resolvable:$true] %s64_s13 }
  0x36   :  { %p5541_p11 = scmp.lt.u32.totalorder %s5537_s17, %s7048_s6 }
  0x38   :  { %p5543_p12 = pnand %p5541_p11, %p5538_p10 }
  0x3a   :  { %5546 = shalt.err (!%p5543_p12)
}
  0x3b   :  { %s5547_s20 = scalar_lea.vmem %s65_s13, 384  ;;  %p5552_p0 = scmp.lt.s32.totalorder %s65_s13, %s65_s13 }
  0x3c   :  { %p5548_p13 = scmp.ne.s32.totalorder %s65_s13, %s5547_s20  ;;  %p5553_p1 = scmp.lt.s32.totalorder %s5547_s20, %s5547_s20 }
  0x3e   :  { %p5554_p2 = por %p5553_p1, %p5552_p0 }
  0x40   :  { %p5555_p3 = pnand %p5554_p2, %p5548_p13 }
  0x42   :  { %5558 = shalt.err (!%p5555_p3)
}
  0x43   :  { %70 = dma.hbm_to_vmem [thread:$0]  %s7048_s6, 384, %s65_s13, [#allocation9], %s5590_s23, %s5590_s23, %s5591_s24  }
  0x44   :  { %5581 = dma.done.wait [#allocation3], 512  }
  0x45   :  { %5582 = vsyncadd [#allocation3], 4294966784 }
  0x46   :  { %5583 = dma.done.wait [#allocation6], 2560  }
  0x47   :  { %5584 = vsyncadd [#allocation6], 4294964736 }
  0x48   :  { %5585 = dma.done.wait [#allocation9], 384  }
  0x49   :  { %5586 = vsyncadd [#allocation9], 4294966912  ;;  %v5718_v0 = vld [vmem:[#allocation2 + $0x10] sm:$0xff]  ;;  %v5720_v1 = vld [vmem:[#allocation2] sm:$0xff]  ;;  %s5595_s21 = smov 1   ;;  %s5596_s6 = smov 127   ;;  %v109_v7 = vlaneseq }
  0x4a   :  { %207 = vrot.lane.b32.xlu1 %v5718_v0, %s5595_s21  ;;  %203 = vrot.lane.b32.xlu0 %v5720_v1, %s5595_s21  ;;  %v5726_v2 = vld [vmem:[#allocation2 + $0x18] sm:$0xff]  ;;  %v5728_v3 = vld [vmem:[#allocation2 + $0x8] sm:$0xff]  ;;  %s5597_s23 = smov 17   ;;  %v7057_v4 = vmov 0.0   ;;  %s5599_s24 = smov 16   ;;  %v5603_v5 = vmov 0  }
  0x4b   :  { %339 = vmatprep.mubr.f32.mxu0 %v7057_v4  ;;  %410 = vmatprep.mubr.f32.mxu1 %v7057_v4  ;;  %s5600_s22 = smov 15   ;;  %s5601_s25 = smov 113   ;;  %v812_v6 = vld [vmem:[%s7045_s3] sm:$0xff]  ;;  %v5795_v8 = vshrl.u32 %v109_v7, 7  ;;  %v5797_v9 = vand.u32 127, %v109_v7  ;;  %v5802_v10 = vld [vmem:[%s7043_s1 + $0x8] sm:$0xff] }
  0x4c   :  { %s5602_s26 = smov 112   ;;  %5461 = vset.pattern.permute.xlu0 %v5603_v5  ;;  %5462 = vset.pattern.permute.xlu1 %v5603_v5  ;;  %s5604_s27 = smov 111   ;;  %v5808_v12 = vld [vmem:[%s7043_s1 + $0x18] sm:$0xff]  ;;  %v5813_v13 = vld [vmem:[%s7043_s1] sm:$0xff]  ;;  %v5818_v14 = vld [vmem:[%s7043_s1 + $0x10] sm:$0xff]  ;;  %vm271_vm2 = vcmask 195584  }
  0x4d   :  { %v218_v11 = vsub.s32 3, %v5795_v8  ;;  %vm211_vm0 = vcmp.lt.s32.totalorder %v5797_v9, 1  ;;  %v251_v31 = vsub.s32 5, %v5795_v8  ;;  %vm244_vm1 = vcmp.lt.s32.totalorder %v5797_v9, 127  ;;  %v270_v52 = vld [vmem:[#allocation5 + $0x8] sm:$0xff]  ;;  %s5605_s13 = smov [#allocation10]  }
  0x4e   :  { %209 = vrot.lane.b32.xlu1 %v5726_v2, %s5595_s21  ;;  %205 = vrot.lane.b32.xlu0 %v5728_v3, %s5595_s21  ;;  %v118_v55 = vsub.s32 0, %v5795_v8  ;;  %v151_v56 = vsub.s32 1, %v5795_v8  ;;  %vm111_vm3 = vcmp.lt.s32.totalorder %v5797_v9, 17  ;;  %vm144_vm4 = vcmp.lt.s32.totalorder %v5797_v9, 16 }
  0x4f   :  { %v5822_v17 = vrot.slane %v5802_v10, %v218_v11  ;;  %v5825_v18 = vrot.slane %v5808_v12, %v218_v11  ;;  %v5828_v19 = vrot.slane %v5813_v13, %v218_v11  ;;  %v5831_v20 = vrot.slane %v5818_v14, %v218_v11 }
  0x50   :  { %v5852_v38 = vrot.slane %v5802_v10, %v251_v31  ;;  %v5855_v39 = vrot.slane %v5808_v12, %v251_v31  ;;  %v5858_v40 = vrot.slane %v5818_v14, %v251_v31  ;;  %v5861_v41 = vrot.slane %v5813_v13, %v251_v31 }
  0x51   :  { %v5884_v59 = vrot.slane %v5802_v10, %v118_v55  ;;  %v5887_v60 = vrot.slane %v5802_v10, %v151_v56  ;;  %v5892_v62 = vrot.slane %v5813_v13, %v118_v55  ;;  %v5895_v63 = vrot.slane %v5818_v14, %v118_v55 }
  0x52   :  { %238 = vrot.lane.b32.xlu1 %v5728_v3, %s5596_s6  ;;  %236 = vrot.lane.b32.xlu0 %v5720_v1, %s5596_s6  ;;  %v5898_v5 = vrot.slane %v5808_v12, %v118_v55  ;;  %v184_v11 = vsub.s32 2, %v5795_v8  ;;  %vm177_vm5 = vcmp.lt.s32.totalorder %v5797_v9, 15  ;;  %vm603_vm6 = vcmp.lt.s32.totalorder %v5797_v9, 112 }
  0x53   :  { %vm570_vm7 = vcmp.lt.s32.totalorder %v5797_v9, 113  ;;  %vm636_vm8 = vcmp.lt.s32.totalorder %v5797_v9, 111  ;;  %vm1421_vm9 = vcmask 64512   ;;  %v5217_v9 = vld [vmem:[%s7050_s8 + $0x8] sm:$0xff] }
  0x56   :  { %242 = vrot.lane.b32.xlu1 %v5726_v2, %s5596_s6  ;;  %240 = vrot.lane.b32.xlu0 %v5718_v0, %s5596_s6 }
  0x5a   :  { %103 = vrot.lane.b32.xlu1 %v5728_v3, %s5597_s23  ;;  %101 = vrot.lane.b32.xlu0 %v5720_v1, %s5597_s23 }
  0x5e   :  { %107 = vrot.lane.b32.xlu1 %v5726_v2, %s5597_s23  ;;  %105 = vrot.lane.b32.xlu0 %v5718_v0, %s5597_s23 }
  0x62   :  { %138 = vrot.lane.b32.xlu1 %v5728_v3, %s5599_s24  ;;  %136 = vrot.lane.b32.xlu0 %v5720_v1, %s5599_s24 }
  0x66   :  { %142 = vrot.lane.b32.xlu1 %v5726_v2, %s5599_s24  ;;  %140 = vrot.lane.b32.xlu0 %v5718_v0, %s5599_s24 }
  0x6a   :  { %171 = vrot.lane.b32.xlu1 %v5728_v3, %s5600_s22  ;;  %169 = vrot.lane.b32.xlu0 %v5720_v1, %s5600_s22 }
  0x6e   :  { %175 = vrot.lane.b32.xlu1 %v5726_v2, %s5600_s22  ;;  %173 = vrot.lane.b32.xlu0 %v5718_v0, %s5600_s22 }
  0x72   :  { %564 = vrot.lane.b32.xlu1 %v5728_v3, %s5601_s25  ;;  %562 = vrot.lane.b32.xlu0 %v5720_v1, %s5601_s25 }
  0x76   :  { %568 = vrot.lane.b32.xlu1 %v5726_v2, %s5601_s25  ;;  %566 = vrot.lane.b32.xlu0 %v5718_v0, %s5601_s25 }
  0x7a   :  { %597 = vrot.lane.b32.xlu1 %v5728_v3, %s5602_s26  ;;  %595 = vrot.lane.b32.xlu0 %v5720_v1, %s5602_s26 }
  0x7e   :  { %601 = vrot.lane.b32.xlu1 %v5726_v2, %s5602_s26  ;;  %599 = vrot.lane.b32.xlu0 %v5718_v0, %s5602_s26 }
  0x82   :  { %630 = vrot.lane.b32.xlu1 %v5728_v3, %s5604_s27  ;;  %628 = vrot.lane.b32.xlu0 %v5720_v1, %s5604_s27 }
  0x86   :  { %634 = vrot.lane.b32.xlu1 %v5726_v2, %s5604_s27  ;;  %632 = vrot.lane.b32.xlu0 %v5718_v0, %s5604_s27 }
  0x8a   :  { %815 = vperm.xlu0 %5461, %v812_v6  }
  0xbc   :  { %v208_v15 = vpop.permute.xlu1 %207  ;;  %v204_v16 = vpop.permute.xlu0 %203 }
  0xc0   :  { %v210_v21 = vpop.permute.xlu1 %209  ;;  %v206_v22 = vpop.permute.xlu0 %205 }
  0xc1   :  { %v215_v23 = vsel %vm211_vm0, %v210_v21, %v204_v16  ;;  %v213_v24 = vsel %vm211_vm0, %v206_v22, %v208_v15  ;;  %v214_v25 = vsel %vm211_vm0, %v204_v16, %v206_v22  ;;  %v212_v26 = vsel %vm211_vm0, %v208_v15, %v210_v21 }
  0xc2   :  { %v233_v27 = vmul.f32 %v5822_v17, %v214_v25  ;;  %v235_v28 = vmul.f32 %v5825_v18, %v212_v26  ;;  %v232_v29 = vmul.f32 %v5828_v19, %v215_v23  ;;  %v234_v30 = vmul.f32 %v5831_v20, %v213_v24 }
  0xc3   :  { %v5906_v21 = vrot.slane %v5813_v13, %v151_v56  ;;  %v5909_v22 = vrot.slane %v5818_v14, %v151_v56  ;;  %v5916_v26 = vrot.slane %v5808_v12, %v151_v56 }
  0xc4   :  { %v239_v32 = vpop.permute.xlu1 %238  ;;  %v237_v33 = vpop.permute.xlu0 %236  ;;  %v5228_v34 = vpack.c.bf16 %v5728_v3, %v233_v27  ;;  %v5232_v35 = vpack.c.bf16 %v5726_v2, %v235_v28  ;;  %v5230_v36 = vpack.c.bf16 %v5720_v1, %v232_v29  ;;  %v5234_v37 = vpack.c.bf16 %v5718_v0, %v234_v30 }
  0xc5   :  { %v247_v42 = vsel %vm244_vm1, %v237_v33, %v239_v32 }
  0xc6   :  { %5229 = vmatprep.subr.bf16.mxu0 %v5228_v34  ;;  %5233 = vmatprep.subr.bf16.mxu1 %v5232_v35  ;;  %v265_v51 = vmul.f32 %v5861_v41, %v247_v42 }
  0xc7   :  { %5231 = vmatpush1.bf16.msra.mxu0 %v5230_v36  ;;  %5235 = vmatpush1.bf16.msra.mxu1 %v5234_v37 }
  0xc8   :  { %v243_v43 = vpop.permute.xlu1 %242  ;;  %v241_v44 = vpop.permute.xlu0 %240 }
  0xc9   :  { %v248_v45 = vsel %vm244_vm1, %v243_v43, %v237_v33  ;;  %v245_v46 = vsel %vm244_vm1, %v241_v44, %v243_v43  ;;  %v246_v47 = vsel %vm244_vm1, %v239_v32, %v241_v44  ;;  %v5923_v32 = vrot.slane %v5802_v10, %v184_v11 }
  0xca   :  { %v266_v48 = vmul.f32 %v5852_v38, %v246_v47  ;;  %v268_v49 = vmul.f32 %v5855_v39, %v248_v45  ;;  %v267_v50 = vmul.f32 %v5858_v40, %v245_v46 }
  0xcc   :  { %v104_v53 = vpop.permute.xlu1 %103  ;;  %279 = vmatprep.subr.mxu0 %v266_v48  ;;  %350 = vmatprep.subr.mxu1 %v268_v49  ;;  %v102_v54 = vpop.permute.xlu0 %101 }
  0xcd   :  { %280 = vmatpush1.msra.mxu0 %v265_v51  ;;  %351 = vmatpush1.msra.mxu1 %v267_v50  ;;  %v114_v61 = vsel %vm111_vm3, %v102_v54, %v104_v53  ;;  %v5939_v51 = vrot.slane %v5813_v13, %v184_v11 }
  0xce   :  { %5162 = vmatmul.mubr.msk.f32.vlgmr.msra.gmra.mrb[0].mxu0 %vm271_vm2, %v270_v52  ;;  %5163 = vmatmul.mubr.msk.f32.vlgmr.msra.gmra.mrb[0].mxu1 %vm271_vm2, %v270_v52  ;;  %v133_v23 = vmul.f32 %v5884_v59, %v114_v61 }
  0xcf   :  { %484 = vmatprep.mubr.f32.mxu0 %v7057_v4  ;;  %555 = vmatprep.mubr.f32.mxu1 %v7057_v4 }
  0xd0   :  { %v108_v57 = vpop.permute.xlu1 %107  ;;  %v106_v58 = vpop.permute.xlu0 %105 }
  0xd1   :  { %v115_v15 = vsel %vm111_vm3, %v108_v57, %v102_v54  ;;  %v113_v24 = vsel %vm111_vm3, %v104_v53, %v106_v58  ;;  %v112_v27 = vsel %vm111_vm3, %v106_v58, %v108_v57  ;;  %v5943_v53 = vrot.slane %v5818_v14, %v184_v11 }
  0xd2   :  { %v132_v28 = vmul.f32 %v5892_v62, %v115_v15  ;;  %v134_v33 = vmul.f32 %v5895_v63, %v113_v24  ;;  %v135_v37 = vmul.f32 %v5898_v5, %v112_v27  ;;  %v5946_v54 = vrot.slane %v5808_v12, %v184_v11  ;;  %v202_v15 = vld [vmem:[#allocation5] sm:$0xff] }
  0xd3   :  { %v610_v27 = vsub.s32 7, %v5795_v8 }
  0xd4   :  { %v139_v6 = vpop.permute.xlu1 %138  ;;  %v137_v7 = vpop.permute.xlu0 %136 }
  0xd5   :  { %v147_v16 = vsel %vm144_vm4, %v137_v7, %v139_v6 }
  0xd6   :  { %v166_v25 = vmul.f32 %v5887_v60, %v147_v16 }
  0xd8   :  { %v143_v29 = vpop.permute.xlu1 %142  ;;  %v141_v30 = vpop.permute.xlu0 %140  ;;  %v5236_v31 = vpack.c.bf16 %v166_v25, %v133_v23 }
  0xd9   :  { %v148_v34 = vsel %vm144_vm4, %v143_v29, %v137_v7  ;;  %v145_v35 = vsel %vm144_vm4, %v141_v30, %v143_v29  ;;  %v146_v36 = vsel %vm144_vm4, %v139_v6, %v141_v30 }
  0xda   :  { %v165_v42 = vmul.f32 %v5906_v21, %v148_v34  ;;  %v167_v43 = vmul.f32 %v5909_v22, %v146_v36  ;;  %v168_v44 = vmul.f32 %v5916_v26, %v145_v35  ;;  %5237 = vmatprep.subr.bf16.mxu0 %v5236_v31  ;;  %v5979_v36 = vrot.slane %v5813_v13, %v610_v27 }
  0xdc   :  { %v5238_v45 = vpack.c.bf16 %v165_v42, %v132_v28  ;;  %v5242_v46 = vpack.c.bf16 %v167_v43, %v134_v33  ;;  %v172_v47 = vpop.permute.xlu1 %171  ;;  %v170_v48 = vpop.permute.xlu0 %169  ;;  %v5240_v49 = vpack.c.bf16 %v168_v44, %v135_v37  ;;  %v577_v28 = vsub.s32 6, %v5795_v8 }
  0xdd   :  { %v180_v50 = vsel %vm177_vm5, %v170_v48, %v172_v47  ;;  %v5984_v42 = vrot.slane %v5808_v12, %v610_v27  ;;  %v5987_v43 = vrot.slane %v5802_v10, %v610_v27  ;;  %v5990_v44 = vrot.slane %v5818_v14, %v610_v27  ;;  %v6027_v27 = vld [vmem:[%s7043_s1 + $0x38] ss:$0 sm:$0xff] }
  0xde   :  { %5239 = vmatpush1.bf16.msra.mxu0 %v5238_v45  ;;  %5241 = vmatprep.subr.bf16.mxu1 %v5240_v49  ;;  %v199_v52 = vmul.f32 %v5923_v32, %v180_v50  ;;  %v5966_v29 = vrot.slane %v5808_v12, %v577_v28  ;;  %v5969_v30 = vrot.slane %v5802_v10, %v577_v28 }
  0xdf   :  { %5243 = vmatpush1.bf16.msra.mxu1 %v5242_v46  ;;  %v5974_v35 = vrot.slane %v5818_v14, %v577_v28  ;;  %v5993_v45 = vrot.slane %v5813_v13, %v577_v28  ;;  %v6032_v28 = vld [vmem:[%s7043_s1 + $0x20] ss:$0 sm:$0xff] }
  0xe0   :  { %v176_v55 = vpop.permute.xlu1 %175  ;;  %424 = vmatprep.subr.mxu0 %v199_v52  ;;  %v174_v56 = vpop.permute.xlu0 %173 }
  0xe1   :  { %v181_v57 = vsel %vm177_vm5, %v176_v55, %v170_v48  ;;  %v178_v58 = vsel %vm177_vm5, %v174_v56, %v176_v55  ;;  %v179_v61 = vsel %vm177_vm5, %v172_v47, %v174_v56 }
  0xe2   :  { %v198_v6 = vmul.f32 %v5939_v51, %v181_v57  ;;  %v200_v7 = vmul.f32 %v5943_v53, %v179_v61  ;;  %v201_v11 = vmul.f32 %v5946_v54, %v178_v58 }
  0xe4   :  { %v565_v16 = vpop.permute.xlu1 %564  ;;  %425 = vmatpush1.msra.mxu0 %v198_v6  ;;  %495 = vmatprep.subr.mxu1 %v201_v11  ;;  %v563_v23 = vpop.permute.xlu0 %562 }
  0xe5   :  { %496 = vmatpush1.msra.mxu1 %v200_v7  ;;  %5164 = vmatmul.mubr.msk.f32.vlgmr.msra.gmra.mrb[0].mxu0 %vm271_vm2, %v202_v15  ;;  %v573_v47 = vsel %vm570_vm7, %v563_v23, %v565_v16 }
  0xe6   :  { %5165 = vmatmul.mubr.msk.f32.vlgmr.msra.gmra.mrb[0].mxu1 %vm271_vm2, %v202_v15  ;;  %730 = vmatprep.mubr.f32.mxu0 %v7057_v4  ;;  %v591_v61 = vmul.f32 %v5993_v45, %v573_v47 }
  0xe7   :  { %801 = vmatprep.mubr.f32.mxu1 %v7057_v4 }
  0xe8   :  { %v569_v24 = vpop.permute.xlu1 %568  ;;  %v567_v25 = vpop.permute.xlu0 %566 }
  0xe9   :  { %v574_v34 = vsel %vm570_vm7, %v569_v24, %v563_v23  ;;  %v572_v8 = vsel %vm570_vm7, %v565_v16, %v567_v25  ;;  %v571_v46 = vsel %vm570_vm7, %v567_v25, %v569_v24  ;;  %v6017_v24 = vld [vmem:[%s7043_s1 + $0x30] ss:$0 sm:$0xff]  ;;  %v6022_v25 = vld [vmem:[%s7043_s1 + $0x28] ss:$0 sm:$0xff] }
  0xea   :  { %v594_v48 = vmul.f32 %v5966_v29, %v574_v34  ;;  %v592_v12 = vmul.f32 %v5969_v30, %v572_v8  ;;  %v593_v55 = vmul.f32 %v5974_v35, %v571_v46 }
  0xec   :  { %v598_v31 = vpop.permute.xlu1 %597  ;;  %v596_v33 = vpop.permute.xlu0 %595 }
  0xed   :  { %v606_v37 = vsel %vm603_vm6, %v596_v33, %v598_v31 }
  0xee   :  { %v624_v10 = vmul.f32 %v5979_v36, %v606_v37 }
  0xf0   :  { %v602_v49 = vpop.permute.xlu1 %601  ;;  %v600_v50 = vpop.permute.xlu0 %599  ;;  %v5246_v23 = vpack.c.bf16 %v624_v10, %v591_v61 }
  0xf1   :  { %v607_v14 = vsel %vm603_vm6, %v602_v49, %v596_v33  ;;  %v604_v13 = vsel %vm603_vm6, %v600_v50, %v602_v49  ;;  %v605_v52 = vsel %vm603_vm6, %v598_v31, %v600_v50  ;;  %v662_v50 = vld [vmem:[#allocation5 + $0x10] sm:$0xff] }
  0xf2   :  { %v627_v56 = vmul.f32 %v5984_v42, %v607_v14  ;;  %v625_v57 = vmul.f32 %v5987_v43, %v605_v52  ;;  %v626_v58 = vmul.f32 %v5990_v44, %v604_v13 }
  0xf4   :  { %v5250_v6 = vpack.c.bf16 %v626_v58, %v593_v55  ;;  %v631_v7 = vpop.permute.xlu1 %630  ;;  %v629_v11 = vpop.permute.xlu0 %628  ;;  %v5244_v15 = vpack.c.bf16 %v625_v57, %v592_v12  ;;  %v5248_v16 = vpack.c.bf16 %v627_v56, %v594_v48 }
  0xf5   :  { %v639_v31 = vsel %vm636_vm8, %v629_v11, %v631_v7 }
  0xf6   :  { %5245 = vmatprep.subr.bf16.mxu0 %v5244_v15  ;;  %5249 = vmatprep.subr.bf16.mxu1 %v5248_v16  ;;  %v657_v49 = vmul.f32 %v6032_v28, %v639_v31  ;;  %v5178_v16 = vld [vmem:[%s7045_s3 + $0x8] sm:$0xff] }
  0xf7   :  { %5247 = vmatpush1.bf16.msra.mxu0 %v5246_v23  ;;  %5251 = vmatpush1.bf16.msra.mxu1 %v5250_v6 }
  0xf8   :  { %v635_v33 = vpop.permute.xlu1 %634  ;;  %v633_v34 = vpop.permute.xlu0 %632 }
  0xf9   :  { %v640_v8 = vsel %vm636_vm8, %v635_v33, %v629_v11  ;;  %v637_v37 = vsel %vm636_vm8, %v633_v34, %v635_v33  ;;  %v638_v46 = vsel %vm636_vm8, %v631_v7, %v633_v34 }
  0xfa   :  { %v659_v47 = vmul.f32 %v6017_v24, %v637_v37  ;;  %v658_v48 = vmul.f32 %v6022_v25, %v638_v46  ;;  %v660_v12 = vmul.f32 %v6027_v27, %v640_v8 }
  0xfc   :  { %670 = vmatprep.subr.mxu0 %v658_v48  ;;  %741 = vmatprep.subr.mxu1 %v660_v12 }
  0xfd   :  { %671 = vmatpush1.msra.mxu0 %v657_v49  ;;  %742 = vmatpush1.msra.mxu1 %v659_v47 }
  0xfe   :  { %5170 = vmatmul.mubr.msk.f32.vlgmr.msra.gmra.mrb[0].mxu0 %vm271_vm2, %v662_v50  ;;  %5171 = vmatmul.mubr.msk.f32.vlgmr.msra.gmra.mrb[0].mxu1 %vm271_vm2, %v662_v50 }
  0xff   :  { %977 = vmatprep.mubr.f32.mxu0 %v7057_v4  ;;  %1048 = vmatprep.mubr.f32.mxu1 %v7057_v4 }
 0x109   :  { %v816_v10 = vpop.permute.xlu0 %815 }
 0x1d1   :  { %v732_v14 = vpop.f32.mrb[0].mxu0  ;;  %v803_v13 = vpop.f32.mrb[0].mxu1 }
 0x1d2   :  { %v818_v52 = vadd.f32 %v816_v10, %v732_v14  ;;  %v820_v55 = vadd.f32 %v816_v10, %v803_v13  ;;  %v734_v56 = vpop.f32.mrb[1].mxu0  ;;  %v805_v57 = vpop.f32.mrb[1].mxu1 }
 0x1d3   :  { %v819_v6 = vadd.f32 %v816_v10, %v734_v56  ;;  %v821_v11 = vadd.f32 %v816_v10, %v805_v57 }
 0x1d4   :  { %v6050_v58 = vmax.f32 %v818_v52, 0.0  ;;  %v6052_v61 = vmax.f32 %v820_v55, 0.0 }
 0x1d5   :  { %v823_v7 = vmax.f32 %v819_v6, 0.0  ;;  %v825_v15 = vmax.f32 %v821_v11, 0.0 }
 0x1d6   :  { %880 = vrot.lane.b32.xlu0 %v6052_v61, %s5595_s21  ;;  %876 = vrot.lane.b32.xlu1 %v6050_v58, %s5595_s21 }
 0x1da   :  { %892 = vrot.lane.b32.xlu0 %v6050_v58, %s5596_s6  ;;  %878 = vrot.lane.b32.xlu1 %v823_v7, %s5595_s21 }
 0x1de   :  { %896 = vrot.lane.b32.xlu0 %v6052_v61, %s5596_s6  ;;  %882 = vrot.lane.b32.xlu1 %v825_v15, %s5595_s21 }
 0x1e2   :  { %826 = vrot.lane.b32.xlu0 %v6050_v58, %s5597_s23  ;;  %894 = vrot.lane.b32.xlu1 %v823_v7, %s5596_s6 }
 0x1e6   :  { %830 = vrot.lane.b32.xlu0 %v6052_v61, %s5597_s23  ;;  %898 = vrot.lane.b32.xlu1 %v825_v15, %s5596_s6 }
 0x1ea   :  { %842 = vrot.lane.b32.xlu0 %v6050_v58, %s5599_s24  ;;  %828 = vrot.lane.b32.xlu1 %v823_v7, %s5597_s23 }
 0x1ee   :  { %846 = vrot.lane.b32.xlu0 %v6052_v61, %s5599_s24  ;;  %832 = vrot.lane.b32.xlu1 %v825_v15, %s5597_s23 }
 0x1f2   :  { %858 = vrot.lane.b32.xlu0 %v6050_v58, %s5600_s22  ;;  %844 = vrot.lane.b32.xlu1 %v823_v7, %s5599_s24 }
 0x1f6   :  { %862 = vrot.lane.b32.xlu0 %v6052_v61, %s5600_s22  ;;  %848 = vrot.lane.b32.xlu1 %v825_v15, %s5599_s24 }
 0x1fa   :  { %1200 = vrot.lane.b32.xlu0 %v6050_v58, %s5601_s25  ;;  %860 = vrot.lane.b32.xlu1 %v823_v7, %s5600_s22 }
 0x1fe   :  { %1204 = vrot.lane.b32.xlu0 %v6052_v61, %s5601_s25  ;;  %864 = vrot.lane.b32.xlu1 %v825_v15, %s5600_s22 }
 0x202   :  { %1216 = vrot.lane.b32.xlu0 %v6050_v58, %s5602_s26  ;;  %1202 = vrot.lane.b32.xlu1 %v823_v7, %s5601_s25 }
 0x206   :  { %1220 = vrot.lane.b32.xlu0 %v6052_v61, %s5602_s26  ;;  %1206 = vrot.lane.b32.xlu1 %v825_v15, %s5601_s25 }
 0x20a   :  { %1232 = vrot.lane.b32.xlu0 %v6050_v58, %s5604_s27  ;;  %1218 = vrot.lane.b32.xlu1 %v823_v7, %s5602_s26 }
 0x20e   :  { %1236 = vrot.lane.b32.xlu0 %v6052_v61, %s5604_s27  ;;  %1222 = vrot.lane.b32.xlu1 %v825_v15, %s5602_s26 }
 0x212   :  { %1403 = vperm.xlu0 %5461, %v5178_v16   ;;  %1234 = vrot.lane.b32.xlu1 %v823_v7, %s5604_s27 }
 0x216   :  { %1238 = vrot.lane.b32.xlu1 %v825_v15, %s5604_s27 }
 0x248   :  { %v881_v23 = vpop.permute.xlu0 %880  ;;  %v877_v31 = vpop.permute.xlu1 %876 }
 0x24c   :  { %v893_v33 = vpop.permute.xlu0 %892  ;;  %v879_v34 = vpop.permute.xlu1 %878 }
 0x24d   :  { %v886_v8 = vsel %vm211_vm0, %v877_v31, %v879_v34  ;;  %v885_v37 = vsel %vm211_vm0, %v879_v34, %v881_v23  ;;  %v909_v34 = vld [vmem:[#allocation5 + $0x20] sm:$0xff] }
 0x24e   :  { %v889_v46 = vmul.f32 %v886_v8, %v5822_v17  ;;  %v890_v49 = vmul.f32 %v885_v37, %v5831_v20 }
 0x250   :  { %v897_v47 = vpop.permute.xlu0 %896  ;;  %v883_v48 = vpop.permute.xlu1 %882  ;;  %v5252_v12 = vpack.c.bf16 %v823_v7, %v889_v46  ;;  %v5258_v6 = vpack.c.bf16 %v6052_v61, %v890_v49 }
 0x251   :  { %v884_v50 = vsel %vm211_vm0, %v881_v23, %v883_v48  ;;  %v887_v10 = vsel %vm211_vm0, %v883_v48, %v877_v31 }
 0x252   :  { %v888_v14 = vmul.f32 %v887_v10, %v5828_v19  ;;  %v891_v13 = vmul.f32 %v884_v50, %v5825_v18  ;;  %5253 = vmatprep.subr.bf16.mxu0 %v5252_v12 }
 0x254   :  { %v5254_v52 = vpack.c.bf16 %v6050_v58, %v888_v14  ;;  %v827_v55 = vpop.permute.xlu0 %826  ;;  %v895_v56 = vpop.permute.xlu1 %894  ;;  %v5256_v57 = vpack.c.bf16 %v825_v15, %v891_v13 }
 0x255   :  { %v901_v7 = vsel %vm244_vm1, %v895_v56, %v897_v47  ;;  %v902_v11 = vsel %vm244_vm1, %v893_v33, %v895_v56 }
 0x256   :  { %5255 = vmatpush1.bf16.msra.mxu0 %v5254_v52  ;;  %5257 = vmatprep.subr.bf16.mxu1 %v5256_v57  ;;  %v905_v16 = vmul.f32 %v901_v7, %v5852_v38  ;;  %v904_v23 = vmul.f32 %v902_v11, %v5861_v41 }
 0x257   :  { %5259 = vmatpush1.bf16.msra.mxu1 %v5258_v6 }
 0x258   :  { %v831_v31 = vpop.permute.xlu0 %830  ;;  %917 = vmatprep.subr.mxu0 %v905_v16  ;;  %v899_v58 = vpop.permute.xlu1 %898 }
 0x259   :  { %v900_v61 = vsel %vm244_vm1, %v897_v47, %v899_v58  ;;  %v903_v15 = vsel %vm244_vm1, %v899_v58, %v893_v33 }
 0x25a   :  { %v906_v8 = vmul.f32 %v900_v61, %v5858_v40  ;;  %918 = vmatpush1.msra.mxu0 %v904_v23  ;;  %v907_v37 = vmul.f32 %v903_v15, %v5855_v39 }
 0x25b   :  { %5172 = vmatmul.mubr.msk.f32.vlgmr.msra.gmra.mrb[2].mxu0 %vm271_vm2, %v909_v34 }
 0x25c   :  { %v843_v46 = vpop.permute.xlu0 %842  ;;  %988 = vmatprep.subr.mxu1 %v907_v37  ;;  %v829_v48 = vpop.permute.xlu1 %828  ;;  %1122 = vmatprep.mubr.f32.mxu0 %v7057_v4 }
 0x25d   :  { %989 = vmatpush1.msra.mxu1 %v906_v8  ;;  %v836_v33 = vsel %vm111_vm3, %v827_v55, %v829_v48  ;;  %v835_v6 = vsel %vm111_vm3, %v829_v48, %v831_v31 }
 0x25e   :  { %5173 = vmatmul.mubr.msk.f32.vlgmr.msra.gmra.mrb[2].mxu1 %vm271_vm2, %v909_v34  ;;  %v839_v14 = vmul.f32 %v836_v33, %v5884_v59 }
 0x25f   :  { %1193 = vmatprep.mubr.f32.mxu1 %v7057_v4 }
 0x260   :  { %v847_v47 = vpop.permute.xlu0 %846  ;;  %v833_v12 = vpop.permute.xlu1 %832 }
 0x261   :  { %v834_v56 = vsel %vm111_vm3, %v831_v31, %v833_v12  ;;  %v837_v57 = vsel %vm111_vm3, %v833_v12, %v827_v55  ;;  %v840_v31 = vmul.f32 %v835_v6, %v5895_v63 }
 0x262   :  { %v838_v61 = vmul.f32 %v837_v57, %v5892_v62  ;;  %v841_v15 = vmul.f32 %v834_v56, %v5898_v5 }
 0x264   :  { %v859_v49 = vpop.permute.xlu0 %858  ;;  %v845_v50 = vpop.permute.xlu1 %844 }
 0x265   :  { %v852_v10 = vsel %vm144_vm4, %v843_v46, %v845_v50  ;;  %v851_v13 = vsel %vm144_vm4, %v845_v50, %v847_v47 }
 0x266   :  { %v855_v52 = vmul.f32 %v852_v10, %v5887_v60  ;;  %v856_v23 = vmul.f32 %v851_v13, %v5909_v22 }
 0x268   :  { %v863_v7 = vpop.permute.xlu0 %862  ;;  %v849_v11 = vpop.permute.xlu1 %848  ;;  %v5260_v16 = vpack.c.bf16 %v855_v52, %v839_v14  ;;  %v5266_v50 = vpack.c.bf16 %v856_v23, %v840_v31 }
 0x269   :  { %v850_v58 = vsel %vm144_vm4, %v847_v47, %v849_v11  ;;  %v853_v34 = vsel %vm144_vm4, %v849_v11, %v843_v46  ;;  %v875_v11 = vld [vmem:[#allocation5 + $0x18] sm:$0xff] }
 0x26a   :  { %v854_v55 = vmul.f32 %v853_v34, %v5906_v21  ;;  %v857_v8 = vmul.f32 %v850_v58, %v5916_v26  ;;  %5261 = vmatprep.subr.bf16.mxu0 %v5260_v16 }
 0x26c   :  { %v5262_v37 = vpack.c.bf16 %v854_v55, %v838_v61  ;;  %v1201_v48 = vpop.permute.xlu0 %1200  ;;  %v861_v12 = vpop.permute.xlu1 %860  ;;  %v5264_v33 = vpack.c.bf16 %v857_v8, %v841_v15 }
 0x26d   :  { %v868_v47 = vsel %vm177_vm5, %v859_v49, %v861_v12  ;;  %v867_v10 = vsel %vm177_vm5, %v861_v12, %v863_v7 }
 0x26e   :  { %5263 = vmatpush1.bf16.msra.mxu0 %v5262_v37  ;;  %5265 = vmatprep.subr.bf16.mxu1 %v5264_v33  ;;  %v871_v46 = vmul.f32 %v868_v47, %v5923_v32  ;;  %v872_v16 = vmul.f32 %v867_v10, %v5943_v53 }
 0x26f   :  { %5267 = vmatpush1.bf16.msra.mxu1 %v5266_v50 }
 0x270   :  { %v1205_v14 = vpop.permute.xlu0 %1204  ;;  %1062 = vmatprep.subr.mxu0 %v871_v46  ;;  %v865_v13 = vpop.permute.xlu1 %864 }
 0x271   :  { %v866_v52 = vsel %vm177_vm5, %v863_v7, %v865_v13  ;;  %v869_v56 = vsel %vm177_vm5, %v865_v13, %v859_v49 }
 0x272   :  { %v870_v57 = vmul.f32 %v869_v56, %v5939_v51  ;;  %v873_v6 = vmul.f32 %v866_v52, %v5946_v54 }
 0x274   :  { %v1217_v23 = vpop.permute.xlu0 %1216  ;;  %1063 = vmatpush1.msra.mxu0 %v870_v57  ;;  %1133 = vmatprep.subr.mxu1 %v873_v6  ;;  %v1203_v58 = vpop.permute.xlu1 %1202 }
 0x275   :  { %1134 = vmatpush1.msra.mxu1 %v872_v16  ;;  %5174 = vmatmul.mubr.msk.f32.vlgmr.msra.gmra.mrb[2].mxu0 %vm271_vm2, %v875_v11  ;;  %v1209_v34 = vsel %vm570_vm7, %v1203_v58, %v1205_v14  ;;  %v1210_v61 = vsel %vm570_vm7, %v1201_v48, %v1203_v58 }
 0x276   :  { %5175 = vmatmul.mubr.msk.f32.vlgmr.msra.gmra.mrb[2].mxu1 %vm271_vm2, %v875_v11  ;;  %1317 = vmatprep.mubr.f32.mxu0 %v7057_v4  ;;  %v1212_v31 = vmul.f32 %v1210_v61, %v5993_v45  ;;  %v1213_v37 = vmul.f32 %v1209_v34, %v5969_v30 }
 0x277   :  { %1388 = vmatprep.mubr.f32.mxu1 %v7057_v4 }
 0x278   :  { %v1221_v49 = vpop.permute.xlu0 %1220  ;;  %v1207_v7 = vpop.permute.xlu1 %1206 }
 0x279   :  { %v1208_v47 = vsel %vm570_vm7, %v1205_v14, %v1207_v7  ;;  %v1211_v46 = vsel %vm570_vm7, %v1207_v7, %v1201_v48 }
 0x27a   :  { %v1214_v6 = vmul.f32 %v1208_v47, %v5974_v35  ;;  %v1215_v11 = vmul.f32 %v1211_v46, %v5966_v29  ;;  %v1712_v47 = vld [vmem:[%s7047_s5] sm:$0xff]  ;;  %s5151_s5 = sshll.u32 %s5605_s13, 4  ;;  %s5152_s5 = int_to_ptr.vmem [resolvable:$true] %s5151_s5 }
 0x27b   :  { %1715 = vperm.xlu1 %5462, %v1712_v47   ;;  %p5564_p5 = scmp.lt.s32.totalorder %s5152_s5, %s5152_s5 }
 0x27c   :  { %v1219_v15 = vpop.permute.xlu1 %1218  ;;  %v1233_v12 = vpop.permute.xlu0 %1232 }
 0x27d   :  { %v1225_v55 = vsel %vm603_vm6, %v1219_v15, %v1221_v49  ;;  %v1226_v8 = vsel %vm603_vm6, %v1217_v23, %v1219_v15 }
 0x27e   :  { %v1228_v33 = vmul.f32 %v1226_v8, %v5979_v36  ;;  %v1229_v50 = vmul.f32 %v1225_v55, %v5987_v43  ;;  %v1249_v55 = vld [vmem:[#allocation5 + $0x28] sm:$0xff] }
 0x280   :  { %v5270_v10 = vpack.c.bf16 %v1228_v33, %v1212_v31  ;;  %v1223_v13 = vpop.permute.xlu1 %1222  ;;  %v5268_v52 = vpack.c.bf16 %v1229_v50, %v1213_v37  ;;  %v1237_v48 = vpop.permute.xlu0 %1236 }
 0x281   :  { %v1224_v56 = vsel %vm603_vm6, %v1221_v49, %v1223_v13  ;;  %v1227_v57 = vsel %vm603_vm6, %v1223_v13, %v1217_v23 }
 0x282   :  { %v1230_v16 = vmul.f32 %v1224_v56, %v5990_v44  ;;  %v1231_v14 = vmul.f32 %v1227_v57, %v5984_v42  ;;  %5269 = vmatprep.subr.bf16.mxu0 %v5268_v52 }
 0x283   :  { %5271 = vmatpush1.bf16.msra.mxu0 %v5270_v10 }
 0x284   :  { %v5274_v58 = vpack.c.bf16 %v1230_v16, %v1214_v6  ;;  %v1235_v7 = vpop.permute.xlu1 %1234  ;;  %v5272_v34 = vpack.c.bf16 %v1231_v14, %v1215_v11 }
 0x285   :  { %v1241_v49 = vsel %vm636_vm8, %v1235_v7, %v1237_v48  ;;  %v1242_v23 = vsel %vm636_vm8, %v1233_v12, %v1235_v7 }
 0x286   :  { %v1244_v61 = vmul.f32 %v6032_v28, %v1242_v23  ;;  %5273 = vmatprep.subr.bf16.mxu1 %v5272_v34  ;;  %v1245_v15 = vmul.f32 %v6022_v25, %v1241_v49  ;;  %v1420_v34 = vld [vmem:[#allocation7 + $0x8] sm:$0xff] }
 0x287   :  { %5275 = vmatpush1.bf16.msra.mxu1 %v5274_v58 }
 0x288   :  { %1257 = vmatprep.subr.mxu0 %v1245_v15  ;;  %v1239_v8 = vpop.permute.xlu1 %1238  ;;  %v1418_v15 = vld [vmem:[#allocation7] sm:$0xff] }
 0x289   :  { %v1240_v31 = vsel %vm636_vm8, %v1237_v48, %v1239_v8  ;;  %v1243_v37 = vsel %vm636_vm8, %v1239_v8, %v1233_v12  ;;  %1258 = vmatpush1.msra.mxu0 %v1244_v61 }
 0x28a   :  { %v1246_v33 = vmul.f32 %v6017_v24, %v1240_v31  ;;  %5176 = vmatmul.mubr.msk.f32.vlgmr.msra.gmra.mrb[2].mxu0 %vm271_vm2, %v1249_v55  ;;  %v1247_v50 = vmul.f32 %v6027_v27, %v1243_v37 }
 0x28b   :  { %1489 = vmatprep.mubr.f32.mxu0 %v7057_v4 }
 0x28c   :  { %1328 = vmatprep.subr.mxu1 %v1247_v50  ;;  %v5189_v50 = vld [vmem:[%s7045_s3 + $0x10] sm:$0xff] }
 0x28d   :  { %1329 = vmatpush1.msra.mxu1 %v1246_v33 }
 0x28e   :  { %5177 = vmatmul.mubr.msk.f32.vlgmr.msra.gmra.mrb[2].mxu1 %vm271_vm2, %v1249_v55 }
 0x28f   :  { %1560 = vmatprep.mubr.f32.mxu1 %v7057_v4 }
 0x291   :  { %v1404_v12 = vpop.permute.xlu0 %1403 }
 0x35d   :  { %v1319_v46 = vpop.f32.mrb[2].mxu0 }
 0x35e   :  { %v1406_v10 = vadd.f32 %v1404_v12, %v1319_v46  ;;  %v1321_v13 = vpop.f32.mrb[3].mxu0 }
 0x35f   :  { %v1407_v52 = vadd.f32 %v1404_v12, %v1321_v13 }
 0x360   :  { %v1410_v56 = vadd.f32 %v1406_v10, %v5720_v1 }
 0x361   :  { %v1411_v57 = vadd.f32 %v1407_v52, %v5728_v3  ;;  %v1390_v6 = vpop.f32.mrb[2].mxu1 }
 0x362   :  { %v1408_v11 = vadd.f32 %v1404_v12, %v1390_v6  ;;  %v1392_v16 = vpop.f32.mrb[3].mxu1  ;;  %v6222_v58 = vmax.f32 %v1410_v56, 0.0 }
 0x363   :  { %v6220_v14 = vmax.f32 %v1411_v57, 0.0  ;;  %v1409_v48 = vadd.f32 %v1404_v12, %v1392_v16 }
 0x364   :  { %v1412_v7 = vadd.f32 %v1408_v11, %v5718_v0 }
 0x365   :  { %v1413_v49 = vadd.f32 %v1409_v48, %v5726_v2  ;;  %1425 = vmatprep.subr.mxu0 %v6220_v14 }
 0x366   :  { %1426 = vmatpush1.msra.mxu0 %v6222_v58  ;;  %v6232_v61 = vmax.f32 %v1412_v7, 0.0 }
 0x367   :  { %v6228_v23 = vmax.f32 %v1413_v49, 0.0  ;;  %5179 = vmatmul.mubr.msk.f32.vlgmr.msra.gmra.mrb[4].mxu0 %vm1421_vm9, %v1420_v34  ;;  %1570 = vmatprep.subr.mxu0 %v5728_v3 }
 0x368   :  { %1571 = vmatpush1.msra.mxu0 %v5720_v1  ;;  %1634 = vmatprep.mubr.f32.mxu0 %v7057_v4  ;;  %v1716_v1 = vpop.permute.xlu1 %1715 }
 0x369   :  { %1496 = vmatprep.subr.mxu1 %v6228_v23 }
 0x36a   :  { %1497 = vmatpush1.msra.mxu1 %v6232_v61 }
 0x36b   :  { %5180 = vmatmul.mubr.msk.f32.vlgmr.msra.gmra.mrb[4].mxu1 %vm1421_vm9, %v1420_v34  ;;  %1641 = vmatprep.subr.mxu1 %v5726_v2 }
 0x36c   :  { %1642 = vmatpush1.msra.mxu1 %v5718_v0  ;;  %1705 = vmatprep.mubr.f32.mxu1 %v7057_v4 }
 0x36f   :  { %5181 = vmatmul.mubr.msk.f32.vlgmr.msra.gmra.mrb[4].mxu0 %vm1421_vm9, %v1418_v15 }
 0x370   :  { %1873 = vmatprep.mubr.f32.mxu0 %v7057_v4 }
 0x373   :  { %5182 = vmatmul.mubr.msk.f32.vlgmr.msra.gmra.mrb[4].mxu1 %vm1421_vm9, %v1418_v15 }
 0x374   :  { %1944 = vmatprep.mubr.f32.mxu1 %v7057_v4 }
 0x442   :  { %v1636_v3 = vpop.f32.mrb[4].mxu0 }
 0x443   :  { %v6246_v55 = vadd.f32 %v1716_v1, %v1636_v3  ;;  %v1638_v8 = vpop.f32.mrb[5].mxu0 }
 0x444   :  { %v6248_v31 = vadd.f32 %v1716_v1, %v1638_v8 }
 0x445   :  { %1772 = vrot.lane.b32.xlu0 %v6246_v55, %s5595_s21 }
 0x446   :  { %v1707_v0 = vpop.f32.mrb[4].mxu1  ;;  %1774 = vrot.lane.b32.xlu1 %v6248_v31, %s5595_s21 }
 0x447   :  { %v6254_v2 = vadd.f32 %v1716_v1, %v1707_v0  ;;  %v1709_v37 = vpop.f32.mrb[5].mxu1 }
 0x448   :  { %v6256_v33 = vadd.f32 %v1716_v1, %v1709_v37 }
 0x449   :  { %1776 = vrot.lane.b32.xlu0 %v6254_v2, %s5595_s21 }
 0x44a   :  { %1778 = vrot.lane.b32.xlu1 %v6256_v33, %s5595_s21 }
 0x44d   :  { %1788 = vrot.lane.b32.xlu0 %v6246_v55, %s5596_s6 }
 0x44e   :  { %1790 = vrot.lane.b32.xlu1 %v6248_v31, %s5596_s6 }
 0x451   :  { %1792 = vrot.lane.b32.xlu0 %v6254_v2, %s5596_s6 }
 0x452   :  { %1794 = vrot.lane.b32.xlu1 %v6256_v33, %s5596_s6 }
 0x455   :  { %1722 = vrot.lane.b32.xlu0 %v6246_v55, %s5597_s23 }
 0x456   :  { %1724 = vrot.lane.b32.xlu1 %v6248_v31, %s5597_s23 }
 0x459   :  { %1726 = vrot.lane.b32.xlu0 %v6254_v2, %s5597_s23 }
 0x45a   :  { %1728 = vrot.lane.b32.xlu1 %v6256_v33, %s5597_s23 }
 0x45d   :  { %1738 = vrot.lane.b32.xlu0 %v6246_v55, %s5599_s24 }
 0x45e   :  { %1740 = vrot.lane.b32.xlu1 %v6248_v31, %s5599_s24 }
 0x461   :  { %1742 = vrot.lane.b32.xlu0 %v6254_v2, %s5599_s24 }
 0x462   :  { %1744 = vrot.lane.b32.xlu1 %v6256_v33, %s5599_s24 }
 0x465   :  { %1754 = vrot.lane.b32.xlu0 %v6246_v55, %s5600_s22 }
 0x466   :  { %1756 = vrot.lane.b32.xlu1 %v6248_v31, %s5600_s22 }
 0x469   :  { %1758 = vrot.lane.b32.xlu0 %v6254_v2, %s5600_s22 }
 0x46a   :  { %1760 = vrot.lane.b32.xlu1 %v6256_v33, %s5600_s22 }
 0x46d   :  { %2096 = vrot.lane.b32.xlu0 %v6246_v55, %s5601_s25 }
 0x46e   :  { %2098 = vrot.lane.b32.xlu1 %v6248_v31, %s5601_s25 }
 0x471   :  { %2100 = vrot.lane.b32.xlu0 %v6254_v2, %s5601_s25 }
 0x472   :  { %2102 = vrot.lane.b32.xlu1 %v6256_v33, %s5601_s25 }
 0x475   :  { %2112 = vrot.lane.b32.xlu0 %v6246_v55, %s5602_s26 }
 0x476   :  { %2114 = vrot.lane.b32.xlu1 %v6248_v31, %s5602_s26 }
 0x479   :  { %2116 = vrot.lane.b32.xlu0 %v6254_v2, %s5602_s26 }
 0x47a   :  { %2118 = vrot.lane.b32.xlu1 %v6256_v33, %s5602_s26 }
 0x47d   :  { %2128 = vrot.lane.b32.xlu0 %v6246_v55, %s5604_s27 }
 0x47e   :  { %2130 = vrot.lane.b32.xlu1 %v6248_v31, %s5604_s27 }
 0x481   :  { %2132 = vrot.lane.b32.xlu0 %v6254_v2, %s5604_s27 }
 0x482   :  { %2134 = vrot.lane.b32.xlu1 %v6256_v33, %s5604_s27 }
 0x485   :  { %2299 = vperm.xlu0 %5461, %v5189_v50  }
 0x4b7   :  { %v1773_v47 = vpop.permute.xlu0 %1772 }
 0x4b8   :  { %v1775_v12 = vpop.permute.xlu1 %1774 }
 0x4b9   :  { %v1782_v46 = vsel %vm211_vm0, %v1773_v47, %v1775_v12 }
 0x4ba   :  { %v1785_v10 = vmul.f32 %v1782_v46, %v5822_v17 }
 0x4bb   :  { %v1777_v13 = vpop.permute.xlu0 %1776 }
 0x4bc   :  { %v1781_v52 = vsel %vm211_vm0, %v1775_v12, %v1777_v13  ;;  %v1779_v56 = vpop.permute.xlu1 %1778  ;;  %v5276_v57 = vpack.c.bf16 %v6248_v31, %v1785_v10 }
 0x4bd   :  { %v1786_v6 = vmul.f32 %v1781_v52, %v5831_v20  ;;  %v1780_v11 = vsel %vm211_vm0, %v1777_v13, %v1779_v56  ;;  %v1783_v16 = vsel %vm211_vm0, %v1779_v56, %v1773_v47  ;;  %v1805_v56 = vld [vmem:[#allocation5 + $0x38] sm:$0xff] }
 0x4be   :  { %v1784_v48 = vmul.f32 %v1783_v16, %v5828_v19  ;;  %v1787_v7 = vmul.f32 %v1780_v11, %v5825_v18  ;;  %5277 = vmatprep.subr.bf16.mxu0 %v5276_v57 }
 0x4bf   :  { %v1789_v34 = vpop.permute.xlu0 %1788  ;;  %v5282_v3 = vpack.c.bf16 %v6254_v2, %v1786_v6 }
 0x4c0   :  { %v5278_v49 = vpack.c.bf16 %v6246_v55, %v1784_v48  ;;  %v1791_v15 = vpop.permute.xlu1 %1790  ;;  %v5280_v1 = vpack.c.bf16 %v6256_v33, %v1787_v7 }
 0x4c1   :  { %v1798_v8 = vsel %vm244_vm1, %v1789_v34, %v1791_v15 }
 0x4c2   :  { %5279 = vmatpush1.bf16.msra.mxu0 %v5278_v49  ;;  %5281 = vmatprep.subr.bf16.mxu1 %v5280_v1  ;;  %v1800_v10 = vmul.f32 %v1798_v8, %v5861_v41 }
 0x4c3   :  { %5283 = vmatpush1.bf16.msra.mxu1 %v5282_v3  ;;  %v1793_v0 = vpop.permute.xlu0 %1792 }
 0x4c4   :  { %v1797_v37 = vsel %vm244_vm1, %v1791_v15, %v1793_v0  ;;  %v1795_v50 = vpop.permute.xlu1 %1794 }
 0x4c5   :  { %v1796_v47 = vsel %vm244_vm1, %v1793_v0, %v1795_v50  ;;  %v1799_v12 = vsel %vm244_vm1, %v1795_v50, %v1789_v34  ;;  %v1801_v46 = vmul.f32 %v1797_v37, %v5852_v38 }
 0x4c6   :  { %v1802_v13 = vmul.f32 %v1796_v47, %v5858_v40  ;;  %v1803_v52 = vmul.f32 %v1799_v12, %v5855_v39 }
 0x4c7   :  { %1813 = vmatprep.subr.mxu0 %v1801_v46  ;;  %v1723_v57 = vpop.permute.xlu0 %1722 }
 0x4c8   :  { %v1725_v6 = vpop.permute.xlu1 %1724  ;;  %1814 = vmatpush1.msra.mxu0 %v1800_v10  ;;  %1884 = vmatprep.subr.mxu1 %v1803_v52 }
 0x4c9   :  { %1885 = vmatpush1.msra.mxu1 %v1802_v13  ;;  %5183 = vmatmul.mubr.msk.f32.vlgmr.msra.gmra.mrb[6].mxu0 %vm271_vm2, %v1805_v56  ;;  %v1732_v48 = vsel %vm111_vm3, %v1723_v57, %v1725_v6 }
 0x4ca   :  { %5184 = vmatmul.mubr.msk.f32.vlgmr.msra.gmra.mrb[6].mxu1 %vm271_vm2, %v1805_v56  ;;  %2018 = vmatprep.mubr.f32.mxu0 %v7057_v4  ;;  %v1735_v15 = vmul.f32 %v1732_v48, %v5884_v59 }
 0x4cb   :  { %v1727_v11 = vpop.permute.xlu0 %1726  ;;  %2089 = vmatprep.mubr.f32.mxu1 %v7057_v4 }
 0x4cc   :  { %v1729_v16 = vpop.permute.xlu1 %1728  ;;  %v1731_v37 = vsel %vm111_vm3, %v1725_v6, %v1727_v11 }
 0x4cd   :  { %v1730_v3 = vsel %vm111_vm3, %v1727_v11, %v1729_v16  ;;  %v1733_v8 = vsel %vm111_vm3, %v1729_v16, %v1723_v57  ;;  %v1736_v11 = vmul.f32 %v1731_v37, %v5895_v63 }
 0x4ce   :  { %v1734_v52 = vmul.f32 %v1733_v8, %v5892_v62  ;;  %v1737_v56 = vmul.f32 %v1730_v3, %v5898_v5 }
 0x4cf   :  { %v1739_v7 = vpop.permute.xlu0 %1738 }
 0x4d0   :  { %v1741_v34 = vpop.permute.xlu1 %1740 }
 0x4d1   :  { %v1748_v49 = vsel %vm144_vm4, %v1739_v7, %v1741_v34 }
 0x4d2   :  { %v1751_v1 = vmul.f32 %v1748_v49, %v5887_v60 }
 0x4d3   :  { %v1743_v0 = vpop.permute.xlu0 %1742 }
 0x4d4   :  { %v1747_v50 = vsel %vm144_vm4, %v1741_v34, %v1743_v0  ;;  %v1745_v47 = vpop.permute.xlu1 %1744  ;;  %v5284_v12 = vpack.c.bf16 %v1751_v1, %v1735_v15 }
 0x4d5   :  { %v1752_v46 = vmul.f32 %v1747_v50, %v5909_v22  ;;  %v1746_v10 = vsel %vm144_vm4, %v1743_v0, %v1745_v47  ;;  %v1749_v13 = vsel %vm144_vm4, %v1745_v47, %v1739_v7 }
 0x4d6   :  { %v1750_v57 = vmul.f32 %v1749_v13, %v5906_v21  ;;  %v1753_v6 = vmul.f32 %v1746_v10, %v5916_v26  ;;  %5285 = vmatprep.subr.bf16.mxu0 %v5284_v12 }
 0x4d7   :  { %v1755_v16 = vpop.permute.xlu0 %1754  ;;  %v5290_v15 = vpack.c.bf16 %v1752_v46, %v1736_v11  ;;  %v1771_v46 = vld [vmem:[#allocation5 + $0x30] sm:$0xff] }
 0x4d8   :  { %v5286_v48 = vpack.c.bf16 %v1750_v57, %v1734_v52  ;;  %v1757_v34 = vpop.permute.xlu1 %1756  ;;  %v5288_v49 = vpack.c.bf16 %v1753_v6, %v1737_v56 }
 0x4d9   :  { %v1764_v1 = vsel %vm177_vm5, %v1755_v16, %v1757_v34 }
 0x4da   :  { %5287 = vmatpush1.bf16.msra.mxu0 %v5286_v48  ;;  %5289 = vmatprep.subr.bf16.mxu1 %v5288_v49  ;;  %v1767_v7 = vmul.f32 %v1764_v1, %v5923_v32 }
 0x4db   :  { %5291 = vmatpush1.bf16.msra.mxu1 %v5290_v15  ;;  %v1759_v3 = vpop.permute.xlu0 %1758 }
 0x4dc   :  { %v1763_v8 = vsel %vm177_vm5, %v1757_v34, %v1759_v3  ;;  %v1761_v0 = vpop.permute.xlu1 %1760  ;;  %1958 = vmatprep.subr.mxu0 %v1767_v7 }
 0x4dd   :  { %v1762_v37 = vsel %vm177_vm5, %v1759_v3, %v1761_v0  ;;  %v1765_v50 = vsel %vm177_vm5, %v1761_v0, %v1755_v16  ;;  %v1768_v10 = vmul.f32 %v1763_v8, %v5943_v53 }
 0x4de   :  { %v1766_v47 = vmul.f32 %v1765_v50, %v5939_v51  ;;  %v1769_v12 = vmul.f32 %v1762_v37, %v5946_v54 }
 0x4df   :  { %v2097_v13 = vpop.permute.xlu0 %2096 }
 0x4e0   :  { %v2099_v52 = vpop.permute.xlu1 %2098  ;;  %1959 = vmatpush1.msra.mxu0 %v1766_v47  ;;  %2029 = vmatprep.subr.mxu1 %v1769_v12 }
 0x4e1   :  { %2030 = vmatpush1.msra.mxu1 %v1768_v10  ;;  %5185 = vmatmul.mubr.msk.f32.vlgmr.msra.gmra.mrb[6].mxu0 %vm271_vm2, %v1771_v46  ;;  %v2106_v16 = vsel %vm570_vm7, %v2097_v13, %v2099_v52 }
 0x4e2   :  { %5186 = vmatmul.mubr.msk.f32.vlgmr.msra.gmra.mrb[6].mxu1 %vm271_vm2, %v1771_v46  ;;  %2213 = vmatprep.mubr.f32.mxu0 %v7057_v4  ;;  %v2108_v7 = vmul.f32 %v2106_v16, %v5993_v45 }
 0x4e3   :  { %v2101_v56 = vpop.permute.xlu0 %2100  ;;  %2284 = vmatprep.mubr.f32.mxu1 %v7057_v4 }
 0x4e4   :  { %v2103_v57 = vpop.permute.xlu1 %2102  ;;  %v2105_v34 = vsel %vm570_vm7, %v2099_v52, %v2101_v56 }
 0x4e5   :  { %v2104_v49 = vsel %vm570_vm7, %v2101_v56, %v2103_v57  ;;  %v2107_v15 = vsel %vm570_vm7, %v2103_v57, %v2097_v13  ;;  %v2109_v37 = vmul.f32 %v2105_v34, %v5969_v30 }
 0x4e6   :  { %v2110_v46 = vmul.f32 %v2104_v49, %v5974_v35  ;;  %v2111_v10 = vmul.f32 %v2107_v15, %v5966_v29 }
 0x4e7   :  { %v2113_v6 = vpop.permute.xlu0 %2112 }
 0x4e8   :  { %v2115_v11 = vpop.permute.xlu1 %2114 }
 0x4e9   :  { %v2122_v48 = vsel %vm603_vm6, %v2113_v6, %v2115_v11 }
 0x4ea   :  { %v2124_v3 = vmul.f32 %v2122_v48, %v5979_v36 }
 0x4eb   :  { %v2117_v1 = vpop.permute.xlu0 %2116 }
 0x4ec   :  { %v2121_v8 = vsel %vm603_vm6, %v2115_v11, %v2117_v1  ;;  %v2119_v0 = vpop.permute.xlu1 %2118  ;;  %v5294_v11 = vpack.c.bf16 %v2124_v3, %v2108_v7 }
 0x4ed   :  { %v2125_v50 = vmul.f32 %v2121_v8, %v5987_v43  ;;  %v2120_v47 = vsel %vm603_vm6, %v2117_v1, %v2119_v0  ;;  %v2123_v12 = vsel %vm603_vm6, %v2119_v0, %v2113_v6 }
 0x4ee   :  { %v2126_v13 = vmul.f32 %v2120_v47, %v5990_v44  ;;  %v2127_v52 = vmul.f32 %v2123_v12, %v5984_v42  ;;  %v2145_v47 = vld [vmem:[#allocation5 + $0x40] sm:$0xff] }
 0x4ef   :  { %v2129_v56 = vpop.permute.xlu0 %2128  ;;  %v5292_v57 = vpack.c.bf16 %v2125_v50, %v2109_v37 }
 0x4f0   :  { %v5298_v16 = vpack.c.bf16 %v2126_v13, %v2110_v46  ;;  %v2131_v48 = vpop.permute.xlu1 %2130  ;;  %v5296_v34 = vpack.c.bf16 %v2127_v52, %v2111_v10 }
 0x4f1   :  { %5293 = vmatprep.subr.bf16.mxu0 %v5292_v57  ;;  %v2138_v6 = vsel %vm636_vm8, %v2129_v56, %v2131_v48 }
 0x4f2   :  { %5295 = vmatpush1.bf16.msra.mxu0 %v5294_v11  ;;  %5297 = vmatprep.subr.bf16.mxu1 %v5296_v34  ;;  %v2140_v0 = vmul.f32 %v6032_v28, %v2138_v6  ;;  %v3346_v34 = vld [vmem:[%s7049_s7] sm:$0xff] }
 0x4f3   :  { %5299 = vmatpush1.bf16.msra.mxu1 %v5298_v16  ;;  %v2133_v49 = vpop.permute.xlu0 %2132 }
 0x4f4   :  { %v2137_v15 = vsel %vm636_vm8, %v2131_v48, %v2133_v49  ;;  %v2135_v1 = vpop.permute.xlu1 %2134  ;;  %v5196_v48 = vld [vmem:[%s7045_s3 + $0x18] sm:$0xff] }
 0x4f5   :  { %v2136_v8 = vsel %vm636_vm8, %v2133_v49, %v2135_v1  ;;  %v2139_v7 = vsel %vm636_vm8, %v2135_v1, %v2129_v56  ;;  %v2141_v3 = vmul.f32 %v6022_v25, %v2137_v15 }
 0x4f6   :  { %v2142_v37 = vmul.f32 %v6017_v24, %v2136_v8  ;;  %v2143_v50 = vmul.f32 %v6027_v27, %v2139_v7 }
 0x4f7   :  { %2153 = vmatprep.subr.mxu0 %v2141_v3 }
 0x4f8   :  { %2154 = vmatpush1.msra.mxu0 %v2140_v0  ;;  %2224 = vmatprep.subr.mxu1 %v2143_v50 }
 0x4f9   :  { %5187 = vmatmul.mubr.msk.f32.vlgmr.msra.gmra.mrb[6].mxu0 %vm271_vm2, %v2145_v47  ;;  %2225 = vmatpush1.msra.mxu1 %v2142_v37 }
 0x4fa   :  { %5188 = vmatmul.mubr.msk.f32.vlgmr.msra.gmra.mrb[6].mxu1 %vm271_vm2, %v2145_v47  ;;  %2461 = vmatprep.mubr.f32.mxu0 %v7057_v4 }
 0x4fb   :  { %2532 = vmatprep.mubr.f32.mxu1 %v7057_v4 }
 0x504   :  { %v2300_v25 = vpop.permute.xlu0 %2299 }
 0x5cc   :  { %v2215_v12 = vpop.f32.mrb[6].mxu0 }
 0x5cd   :  { %v2302_v28 = vadd.f32 %v2300_v25, %v2215_v12  ;;  %v2217_v46 = vpop.f32.mrb[7].mxu0  ;;  %v2286_v24 = vpop.f32.mrb[6].mxu1 }
 0x5ce   :  { %v2303_v10 = vadd.f32 %v2300_v25, %v2217_v46  ;;  %v2288_v27 = vpop.f32.mrb[7].mxu1  ;;  %v2304_v52 = vadd.f32 %v2300_v25, %v2286_v24 }
 0x5cf   :  { %v2306_v13 = vmax.f32 %v2302_v28, 0.0  ;;  %v2305_v57 = vadd.f32 %v2300_v25, %v2288_v27 }
 0x5d0   :  { %v2307_v56 = vmax.f32 %v2303_v10, 0.0  ;;  %v2308_v11 = vmax.f32 %v2304_v52, 0.0 }
 0x5d1   :  { %2360 = vrot.lane.b32.xlu1 %v2306_v13, %s5595_s21  ;;  %v2309_v16 = vmax.f32 %v2305_v57, 0.0 }
 0x5d2   :  { %2362 = vrot.lane.b32.xlu0 %v2307_v56, %s5595_s21 }
 0x5d5   :  { %2364 = vrot.lane.b32.xlu1 %v2308_v11, %s5595_s21 }
 0x5d6   :  { %2366 = vrot.lane.b32.xlu0 %v2309_v16, %s5595_s21 }
 0x5d9   :  { %2376 = vrot.lane.b32.xlu1 %v2306_v13, %s5596_s6 }
 0x5da   :  { %2378 = vrot.lane.b32.xlu0 %v2307_v56, %s5596_s6 }
 0x5dd   :  { %2380 = vrot.lane.b32.xlu1 %v2308_v11, %s5596_s6 }
 0x5de   :  { %2382 = vrot.lane.b32.xlu0 %v2309_v16, %s5596_s6 }
 0x5e1   :  { %2310 = vrot.lane.b32.xlu1 %v2306_v13, %s5597_s23 }
 0x5e2   :  { %2312 = vrot.lane.b32.xlu0 %v2307_v56, %s5597_s23 }
 0x5e5   :  { %2314 = vrot.lane.b32.xlu1 %v2308_v11, %s5597_s23 }
 0x5e6   :  { %2316 = vrot.lane.b32.xlu0 %v2309_v16, %s5597_s23 }
 0x5e9   :  { %2326 = vrot.lane.b32.xlu1 %v2306_v13, %s5599_s24 }
 0x5ea   :  { %2328 = vrot.lane.b32.xlu0 %v2307_v56, %s5599_s24 }
 0x5ed   :  { %2330 = vrot.lane.b32.xlu1 %v2308_v11, %s5599_s24 }
 0x5ee   :  { %2332 = vrot.lane.b32.xlu0 %v2309_v16, %s5599_s24 }
 0x5f1   :  { %2342 = vrot.lane.b32.xlu1 %v2306_v13, %s5600_s22 }
 0x5f2   :  { %2344 = vrot.lane.b32.xlu0 %v2307_v56, %s5600_s22 }
 0x5f5   :  { %2346 = vrot.lane.b32.xlu1 %v2308_v11, %s5600_s22 }
 0x5f6   :  { %2348 = vrot.lane.b32.xlu0 %v2309_v16, %s5600_s22 }
 0x5f9   :  { %2684 = vrot.lane.b32.xlu1 %v2306_v13, %s5601_s25 }
 0x5fa   :  { %2686 = vrot.lane.b32.xlu0 %v2307_v56, %s5601_s25 }
 0x5fd   :  { %2688 = vrot.lane.b32.xlu1 %v2308_v11, %s5601_s25 }
 0x5fe   :  { %2690 = vrot.lane.b32.xlu0 %v2309_v16, %s5601_s25 }
 0x601   :  { %2700 = vrot.lane.b32.xlu1 %v2306_v13, %s5602_s26 }
 0x602   :  { %2702 = vrot.lane.b32.xlu0 %v2307_v56, %s5602_s26 }
 0x605   :  { %2704 = vrot.lane.b32.xlu1 %v2308_v11, %s5602_s26 }
 0x606   :  { %2706 = vrot.lane.b32.xlu0 %v2309_v16, %s5602_s26 }
 0x609   :  { %2716 = vrot.lane.b32.xlu1 %v2306_v13, %s5604_s27 }
 0x60a   :  { %2718 = vrot.lane.b32.xlu0 %v2307_v56, %s5604_s27 }
 0x60d   :  { %2720 = vrot.lane.b32.xlu1 %v2308_v11, %s5604_s27 }
 0x60e   :  { %2722 = vrot.lane.b32.xlu0 %v2309_v16, %s5604_s27 }
 0x611   :  { %2887 = vperm.xlu1 %5462, %v5196_v48  }
 0x612   :  { %3349 = vperm.xlu0 %5461, %v3346_v34  }
 0x643   :  { %v2361_v6 = vpop.permute.xlu1 %2360 }
 0x644   :  { %v2363_v49 = vpop.permute.xlu0 %2362 }
 0x645   :  { %v2370_v15 = vsel %vm211_vm0, %v2361_v6, %v2363_v49 }
 0x646   :  { %v2373_v1 = vmul.f32 %v2370_v15, %v5822_v17  ;;  %v2393_v15 = vld [vmem:[#allocation5 + $0x50] sm:$0xff] }
 0x647   :  { %v2365_v8 = vpop.permute.xlu1 %2364 }
 0x648   :  { %v2369_v7 = vsel %vm211_vm0, %v2363_v49, %v2365_v8  ;;  %v2367_v3 = vpop.permute.xlu0 %2366  ;;  %v5300_v0 = vpack.c.bf16 %v2307_v56, %v2373_v1 }
 0x649   :  { %v2374_v37 = vmul.f32 %v2369_v7, %v5831_v20  ;;  %v2368_v50 = vsel %vm211_vm0, %v2365_v8, %v2367_v3  ;;  %v2371_v47 = vsel %vm211_vm0, %v2367_v3, %v2361_v6 }
 0x64a   :  { %v2372_v25 = vmul.f32 %v2371_v47, %v5828_v19  ;;  %v2375_v12 = vmul.f32 %v2368_v50, %v5825_v18  ;;  %5301 = vmatprep.subr.bf16.mxu0 %v5300_v0 }
 0x64b   :  { %v2377_v28 = vpop.permute.xlu1 %2376  ;;  %v5306_v27 = vpack.c.bf16 %v2308_v11, %v2374_v37 }
 0x64c   :  { %v5302_v46 = vpack.c.bf16 %v2306_v13, %v2372_v25  ;;  %v2379_v24 = vpop.permute.xlu0 %2378  ;;  %v5304_v10 = vpack.c.bf16 %v2309_v16, %v2375_v12 }
 0x64d   :  { %v2386_v52 = vsel %vm244_vm1, %v2377_v28, %v2379_v24 }
 0x64e   :  { %5303 = vmatpush1.bf16.msra.mxu0 %v5302_v46  ;;  %5305 = vmatprep.subr.bf16.mxu1 %v5304_v10  ;;  %v2388_v11 = vmul.f32 %v2386_v52, %v5861_v41 }
 0x64f   :  { %5307 = vmatpush1.bf16.msra.mxu1 %v5306_v27  ;;  %v2381_v56 = vpop.permute.xlu1 %2380 }
 0x650   :  { %v2385_v57 = vsel %vm244_vm1, %v2379_v24, %v2381_v56  ;;  %v2383_v48 = vpop.permute.xlu0 %2382 }
 0x651   :  { %v2389_v34 = vmul.f32 %v2385_v57, %v5852_v38  ;;  %v2384_v6 = vsel %vm244_vm1, %v2381_v56, %v2383_v48  ;;  %v2387_v13 = vsel %vm244_vm1, %v2383_v48, %v2377_v28 }
 0x652   :  { %v2390_v16 = vmul.f32 %v2384_v6, %v5858_v40  ;;  %v2391_v49 = vmul.f32 %v2387_v13, %v5855_v39 }
 0x653   :  { %2401 = vmatprep.subr.mxu0 %v2389_v34  ;;  %v2311_v1 = vpop.permute.xlu1 %2310 }
 0x654   :  { %v2313_v8 = vpop.permute.xlu0 %2312  ;;  %2402 = vmatpush1.msra.mxu0 %v2388_v11  ;;  %2472 = vmatprep.subr.mxu1 %v2391_v49 }
 0x655   :  { %2473 = vmatpush1.msra.mxu1 %v2390_v16  ;;  %5190 = vmatmul.mubr.msk.f32.vlgmr.msra.gmra.mrb[8].mxu0 %vm271_vm2, %v2393_v15  ;;  %v2320_v0 = vsel %vm111_vm3, %v2311_v1, %v2313_v8 }
 0x656   :  { %5191 = vmatmul.mubr.msk.f32.vlgmr.msra.gmra.mrb[8].mxu1 %vm271_vm2, %v2393_v15  ;;  %2606 = vmatprep.mubr.f32.mxu0 %v7057_v4  ;;  %v2323_v25 = vmul.f32 %v2320_v0, %v5884_v59 }
 0x657   :  { %v2315_v7 = vpop.permute.xlu1 %2314  ;;  %2677 = vmatprep.mubr.f32.mxu1 %v7057_v4 }
 0x658   :  { %v2317_v3 = vpop.permute.xlu0 %2316  ;;  %v2319_v10 = vsel %vm111_vm3, %v2313_v8, %v2315_v7 }
 0x659   :  { %v2318_v28 = vsel %vm111_vm3, %v2315_v7, %v2317_v3  ;;  %v2321_v46 = vsel %vm111_vm3, %v2317_v3, %v2311_v1  ;;  %v2324_v49 = vmul.f32 %v2319_v10, %v5895_v63  ;;  %v2359_v10 = vld [vmem:[#allocation5 + $0x48] sm:$0xff] }
 0x65a   :  { %v2322_v6 = vmul.f32 %v2321_v46, %v5892_v62  ;;  %v2325_v13 = vmul.f32 %v2318_v28, %v5898_v5 }
 0x65b   :  { %v2327_v37 = vpop.permute.xlu1 %2326 }
 0x65c   :  { %v2329_v50 = vpop.permute.xlu0 %2328 }
 0x65d   :  { %v2336_v47 = vsel %vm144_vm4, %v2327_v37, %v2329_v50 }
 0x65e   :  { %v2339_v12 = vmul.f32 %v2336_v47, %v5887_v60 }
 0x65f   :  { %v2331_v24 = vpop.permute.xlu1 %2330 }
 0x660   :  { %v2335_v27 = vsel %vm144_vm4, %v2329_v50, %v2331_v24  ;;  %v2333_v52 = vpop.permute.xlu0 %2332  ;;  %v5308_v56 = vpack.c.bf16 %v2339_v12, %v2323_v25 }
 0x661   :  { %v2340_v57 = vmul.f32 %v2335_v27, %v5909_v22  ;;  %v2334_v48 = vsel %vm144_vm4, %v2331_v24, %v2333_v52  ;;  %v2337_v34 = vsel %vm144_vm4, %v2333_v52, %v2327_v37 }
 0x662   :  { %v2338_v11 = vmul.f32 %v2337_v34, %v5906_v21  ;;  %v2341_v16 = vmul.f32 %v2334_v48, %v5916_v26  ;;  %5309 = vmatprep.subr.bf16.mxu0 %v5308_v56 }
 0x663   :  { %v2343_v15 = vpop.permute.xlu1 %2342  ;;  %v5314_v3 = vpack.c.bf16 %v2340_v57, %v2324_v49 }
 0x664   :  { %v5310_v1 = vpack.c.bf16 %v2338_v11, %v2322_v6  ;;  %v2345_v8 = vpop.permute.xlu0 %2344  ;;  %v5312_v7 = vpack.c.bf16 %v2341_v16, %v2325_v13 }
 0x665   :  { %v2352_v0 = vsel %vm177_vm5, %v2343_v15, %v2345_v8 }
 0x666   :  { %v2355_v37 = vmul.f32 %v2352_v0, %v5923_v32  ;;  %5311 = vmatpush1.bf16.msra.mxu0 %v5310_v1  ;;  %5313 = vmatprep.subr.bf16.mxu1 %v5312_v7 }
 0x667   :  { %5315 = vmatpush1.bf16.msra.mxu1 %v5314_v3  ;;  %v2347_v50 = vpop.permute.xlu1 %2346 }
 0x668   :  { %v2351_v47 = vsel %vm177_vm5, %v2345_v8, %v2347_v50  ;;  %v2349_v25 = vpop.permute.xlu0 %2348  ;;  %2546 = vmatprep.subr.mxu0 %v2355_v37 }
 0x669   :  { %v2350_v12 = vsel %vm177_vm5, %v2347_v50, %v2349_v25  ;;  %v2353_v28 = vsel %vm177_vm5, %v2349_v25, %v2343_v15  ;;  %v2356_v27 = vmul.f32 %v2351_v47, %v5943_v53 }
 0x66a   :  { %v2354_v46 = vmul.f32 %v2353_v28, %v5939_v51  ;;  %v2357_v24 = vmul.f32 %v2350_v12, %v5946_v54 }
 0x66b   :  { %v2685_v52 = vpop.permute.xlu1 %2684 }
 0x66c   :  { %v2687_v56 = vpop.permute.xlu0 %2686  ;;  %2547 = vmatpush1.msra.mxu0 %v2354_v46  ;;  %2617 = vmatprep.subr.mxu1 %v2357_v24 }
 0x66d   :  { %2618 = vmatpush1.msra.mxu1 %v2356_v27  ;;  %5192 = vmatmul.mubr.msk.f32.vlgmr.msra.gmra.mrb[8].mxu0 %vm271_vm2, %v2359_v10  ;;  %v2694_v13 = vsel %vm570_vm7, %v2685_v52, %v2687_v56 }
 0x66e   :  { %5193 = vmatmul.mubr.msk.f32.vlgmr.msra.gmra.mrb[8].mxu1 %vm271_vm2, %v2359_v10  ;;  %2801 = vmatprep.mubr.f32.mxu0 %v7057_v4  ;;  %v2696_v8 = vmul.f32 %v2694_v13, %v5993_v45 }
 0x66f   :  { %v2689_v57 = vpop.permute.xlu1 %2688  ;;  %2872 = vmatprep.mubr.f32.mxu1 %v7057_v4 }
 0x670   :  { %v2691_v48 = vpop.permute.xlu0 %2690  ;;  %v2693_v16 = vsel %vm570_vm7, %v2687_v56, %v2689_v57 }
 0x671   :  { %v2692_v49 = vsel %vm570_vm7, %v2689_v57, %v2691_v48  ;;  %v2695_v15 = vsel %vm570_vm7, %v2691_v48, %v2685_v52  ;;  %v2697_v37 = vmul.f32 %v2693_v16, %v5969_v30  ;;  %v6570_v16 = vld [vmem:[%s7043_s1 + $0x28] ss:$0 sm:$0xff] }
 0x672   :  { %v2698_v12 = vmul.f32 %v2692_v49, %v5974_v35  ;;  %v2699_v28 = vmul.f32 %v2695_v15, %v5966_v29 }
 0x673   :  { %v2701_v34 = vpop.permute.xlu1 %2700 }
 0x674   :  { %v2703_v6 = vpop.permute.xlu0 %2702 }
 0x675   :  { %v2710_v11 = vsel %vm603_vm6, %v2701_v34, %v2703_v6 }
 0x676   :  { %v2712_v7 = vmul.f32 %v2710_v11, %v5979_v36 }
 0x677   :  { %v2705_v1 = vpop.permute.xlu1 %2704 }
 0x678   :  { %v2709_v3 = vsel %vm603_vm6, %v2703_v6, %v2705_v1  ;;  %v2707_v0 = vpop.permute.xlu0 %2706  ;;  %v5318_v52 = vpack.c.bf16 %v2712_v7, %v2696_v8  ;;  %v6580_v8 = vld [vmem:[%s7043_s1 + $0x20] ss:$0 sm:$0xff] }
 0x679   :  { %v2713_v50 = vmul.f32 %v2709_v3, %v5987_v43  ;;  %v2708_v47 = vsel %vm603_vm6, %v2705_v1, %v2707_v0  ;;  %v2711_v25 = vsel %vm603_vm6, %v2707_v0, %v2701_v34  ;;  %v6586_v3 = vld [vmem:[%s7043_s1 + $0x30] ss:$0 sm:$0xff] }
 0x67a   :  { %v2714_v46 = vmul.f32 %v2708_v47, %v5990_v44  ;;  %v2715_v24 = vmul.f32 %v2711_v25, %v5984_v42  ;;  %v2733_v47 = vld [vmem:[#allocation5 + $0x58] sm:$0xff]  ;;  %v2904_v25 = vld [vmem:[#allocation8 + $0x8] sm:$0xff] }
 0x67b   :  { %v2717_v10 = vpop.permute.xlu1 %2716  ;;  %v5316_v27 = vpack.c.bf16 %v2713_v50, %v2697_v37  ;;  %v6592_v37 = vld [vmem:[%s7043_s1 + $0x38] ss:$0 sm:$0xff] }
 0x67c   :  { %v5322_v56 = vpack.c.bf16 %v2714_v46, %v2698_v12  ;;  %v2719_v57 = vpop.permute.xlu0 %2718  ;;  %v5320_v48 = vpack.c.bf16 %v2715_v24, %v2699_v28  ;;  %v6605_v12 = vld [vmem:[#allocation2 + $0x8] sm:$0xff]  ;;  %v6608_v28 = vld [vmem:[#allocation2] sm:$0xff]  ;;  %v6612_v46 = vld [vmem:[#allocation2 + $0x18] sm:$0xff] }
 0x67d   :  { %5317 = vmatprep.subr.bf16.mxu0 %v5316_v27  ;;  %v2726_v34 = vsel %vm636_vm8, %v2717_v10, %v2719_v57  ;;  %v6616_v24 = vld [vmem:[#allocation2 + $0x10] sm:$0xff] }
 0x67e   :  { %5319 = vmatpush1.bf16.msra.mxu0 %v5318_v52  ;;  %5321 = vmatprep.subr.bf16.mxu1 %v5320_v48  ;;  %v2728_v7 = vmul.f32 %v6580_v8, %v2726_v34 }
 0x67f   :  { %5323 = vmatpush1.bf16.msra.mxu1 %v5322_v56  ;;  %v2721_v6 = vpop.permute.xlu1 %2720 }
 0x680   :  { %v2725_v13 = vsel %vm636_vm8, %v2719_v57, %v2721_v6  ;;  %v2723_v11 = vpop.permute.xlu0 %2722 }
 0x681   :  { %v2729_v49 = vmul.f32 %v6570_v16, %v2725_v13  ;;  %v2724_v15 = vsel %vm636_vm8, %v2721_v6, %v2723_v11  ;;  %v2727_v1 = vsel %vm636_vm8, %v2723_v11, %v2717_v10  ;;  %v2902_v10 = vld [vmem:[#allocation8] sm:$0xff] }
 0x682   :  { %v2730_v0 = vmul.f32 %v6586_v3, %v2724_v15  ;;  %v2731_v50 = vmul.f32 %v6592_v37, %v2727_v1 }
 0x683   :  { %2741 = vmatprep.subr.mxu0 %v2729_v49 }
 0x684   :  { %2742 = vmatpush1.msra.mxu0 %v2728_v7  ;;  %2812 = vmatprep.subr.mxu1 %v2731_v50 }
 0x685   :  { %5194 = vmatmul.mubr.msk.f32.vlgmr.msra.gmra.mrb[8].mxu0 %vm271_vm2, %v2733_v47  ;;  %2813 = vmatpush1.msra.mxu1 %v2730_v0 }
 0x686   :  { %2908 = vmatprep.subr.mxu0 %v6220_v14  ;;  %5195 = vmatmul.mubr.msk.f32.vlgmr.msra.gmra.mrb[8].mxu1 %vm271_vm2, %v2733_v47 }
 0x687   :  { %2909 = vmatpush1.msra.mxu0 %v6222_v58  ;;  %2979 = vmatprep.subr.mxu1 %v6228_v23 }
 0x688   :  { %2980 = vmatpush1.msra.mxu1 %v6232_v61  ;;  %2972 = vmatprep.mubr.f32.mxu0 %v7057_v4 }
 0x689   :  { %5197 = vmatmul.mubr.msk.f32.vlgmr.msra.gmra.mrb[10].mxu0 %vm1421_vm9, %v2904_v25  ;;  %3043 = vmatprep.mubr.f32.mxu1 %v7057_v4 }
 0x68a   :  { %5198 = vmatmul.mubr.msk.f32.vlgmr.msra.gmra.mrb[10].mxu1 %vm1421_vm9, %v2904_v25  ;;  %3053 = vmatprep.subr.mxu0 %v6605_v12  ;;  %v3196_v25 = vld [vmem:[#allocation8 + $0x10] sm:$0xff] }
 0x68b   :  { %3054 = vmatpush1.msra.mxu0 %v6608_v28  ;;  %3117 = vmatprep.mubr.f32.mxu0 %v7057_v4 }
 0x68c   :  { %3124 = vmatprep.subr.mxu1 %v6612_v46  ;;  %3188 = vmatprep.mubr.f32.mxu1 %v7057_v4 }
 0x68d   :  { %3125 = vmatpush1.msra.mxu1 %v6616_v24 }
 0x690   :  { %v2888_v27 = vpop.permute.xlu1 %2887 }
 0x691   :  { %5199 = vmatmul.mubr.msk.f32.vlgmr.msra.gmra.mrb[10].mxu0 %vm1421_vm9, %v2902_v10 }
 0x692   :  { %5200 = vmatmul.mubr.msk.f32.vlgmr.msra.gmra.mrb[10].mxu1 %vm1421_vm9, %v2902_v10  ;;  %3264 = vmatprep.mubr.f32.mxu0 %v7057_v4 }
 0x693   :  { %3335 = vmatprep.mubr.f32.mxu1 %v7057_v4 }
 0x758   :  { %v2803_v52 = vpop.f32.mrb[8].mxu0 }
 0x759   :  { %v2890_v56 = vadd.f32 %v2888_v27, %v2803_v52  ;;  %v2805_v57 = vpop.f32.mrb[9].mxu0  ;;  %v2874_v48 = vpop.f32.mrb[8].mxu1 }
 0x75a   :  { %v2891_v34 = vadd.f32 %v2888_v27, %v2805_v57  ;;  %v2892_v6 = vadd.f32 %v2888_v27, %v2874_v48  ;;  %v2876_v13 = vpop.f32.mrb[9].mxu1 }
 0x75b   :  { %v6624_v11 = vadd.f32 %v2890_v56, %v6246_v55  ;;  %v2893_v49 = vadd.f32 %v2888_v27, %v2876_v13 }
 0x75c   :  { %v6627_v15 = vadd.f32 %v2891_v34, %v6248_v31  ;;  %v6630_v1 = vadd.f32 %v2892_v6, %v6254_v2  ;;  %v3350_v31 = vpop.permute.xlu0 %3349  ;;  %v5209_v34 = vld [vmem:[%s7045_s3 + $0x20] sm:$0xff] }
 0x75d   :  { %7066 = vst [vmem:[#allocation15_spill] sm:$0xff] %v6624_v11  ;;  %v6633_v7 = vadd.f32 %v2893_v49, %v6256_v33  ;;  %v7054_v50 = vmax.f32 %v6624_v11, 0.0 }
 0x75e   :  { %7067 = vst [vmem:[#allocation16_spill] sm:$0xff] %v6630_v1  ;;  %v7056_v0 = vmax.f32 %v6627_v15, 0.0  ;;  %v7053_v55 = vmax.f32 %v6630_v1, 0.0 }
 0x75f   :  { %7068 = vst [vmem:[#allocation17_spill] sm:$0xff] %v6633_v7  ;;  %v7055_v47 = vmax.f32 %v6633_v7, 0.0 }
 0x760   :  { %3200 = vmatprep.subr.mxu0 %v7056_v0 }
 0x761   :  { %3201 = vmatpush1.msra.mxu0 %v7054_v50  ;;  %3271 = vmatprep.subr.mxu1 %v7055_v47 }
 0x762   :  { %5201 = vmatmul.mubr.msk.f32.vlgmr.msra.gmra.mrb[10].mxu0 %vm1421_vm9, %v3196_v25  ;;  %3272 = vmatpush1.msra.mxu1 %v7053_v55 }
 0x763   :  { %5202 = vmatmul.mubr.msk.f32.vlgmr.msra.gmra.mrb[10].mxu1 %vm1421_vm9, %v3196_v25  ;;  %3507 = vmatprep.mubr.f32.mxu0 %v7057_v4 }
 0x764   :  { %3578 = vmatprep.mubr.f32.mxu1 %v7057_v4 }
 0x835   :  { %v3266_v2 = vpop.f32.mrb[10].mxu0 }
 0x836   :  { %v6651_v33 = vadd.f32 %v3350_v31, %v3266_v2  ;;  %v3268_v10 = vpop.f32.mrb[11].mxu0  ;;  %v3337_v27 = vpop.f32.mrb[10].mxu1 }
 0x837   :  { %v6653_v52 = vadd.f32 %v3350_v31, %v3268_v10  ;;  %v3339_v56 = vpop.f32.mrb[11].mxu1  ;;  %v6659_v57 = vadd.f32 %v3350_v31, %v3337_v27 }
 0x838   :  { %7069 = vst [vmem:[#allocation18_spill] sm:$0xff] %v6651_v33  ;;  %3406 = vrot.lane.b32.xlu1 %v6651_v33, %s5595_s21  ;;  %v6661_v48 = vadd.f32 %v3350_v31, %v3339_v56 }
 0x839   :  { %7070 = vst [vmem:[#allocation19_spill] sm:$0xff] %v6653_v52  ;;  %3408 = vrot.lane.b32.xlu0 %v6653_v52, %s5595_s21  ;;  %7071 = vst [vmem:[#allocation20_spill] sm:$0xff] %v6659_v57 }
 0x83a   :  { %7072 = vst [vmem:[#allocation21_spill] sm:$0xff] %v6661_v48 }
 0x83c   :  { %3410 = vrot.lane.b32.xlu1 %v6659_v57, %s5595_s21 }
 0x83d   :  { %3412 = vrot.lane.b32.xlu0 %v6661_v48, %s5595_s21 }
 0x840   :  { %3422 = vrot.lane.b32.xlu1 %v6651_v33, %s5596_s6 }
 0x841   :  { %3424 = vrot.lane.b32.xlu0 %v6653_v52, %s5596_s6 }
 0x844   :  { %3426 = vrot.lane.b32.xlu1 %v6659_v57, %s5596_s6 }
 0x845   :  { %3428 = vrot.lane.b32.xlu0 %v6661_v48, %s5596_s6 }
 0x848   :  { %3356 = vrot.lane.b32.xlu1 %v6651_v33, %s5597_s23 }
 0x849   :  { %3358 = vrot.lane.b32.xlu0 %v6653_v52, %s5597_s23 }
 0x84c   :  { %3360 = vrot.lane.b32.xlu1 %v6659_v57, %s5597_s23 }
 0x84d   :  { %3362 = vrot.lane.b32.xlu0 %v6661_v48, %s5597_s23 }
 0x850   :  { %3372 = vrot.lane.b32.xlu1 %v6651_v33, %s5599_s24 }
 0x851   :  { %3374 = vrot.lane.b32.xlu0 %v6653_v52, %s5599_s24 }
 0x854   :  { %3376 = vrot.lane.b32.xlu1 %v6659_v57, %s5599_s24 }
 0x855   :  { %3378 = vrot.lane.b32.xlu0 %v6661_v48, %s5599_s24 }
 0x858   :  { %3388 = vrot.lane.b32.xlu1 %v6651_v33, %s5600_s22 }
 0x859   :  { %3390 = vrot.lane.b32.xlu0 %v6653_v52, %s5600_s22 }
 0x85c   :  { %3392 = vrot.lane.b32.xlu1 %v6659_v57, %s5600_s22 }
 0x85d   :  { %3394 = vrot.lane.b32.xlu0 %v6661_v48, %s5600_s22 }
 0x860   :  { %3730 = vrot.lane.b32.xlu1 %v6651_v33, %s5601_s25 }
 0x861   :  { %3732 = vrot.lane.b32.xlu0 %v6653_v52, %s5601_s25 }
 0x864   :  { %3734 = vrot.lane.b32.xlu1 %v6659_v57, %s5601_s25 }
 0x865   :  { %3736 = vrot.lane.b32.xlu0 %v6661_v48, %s5601_s25 }
 0x868   :  { %3746 = vrot.lane.b32.xlu1 %v6651_v33, %s5602_s26 }
 0x869   :  { %3748 = vrot.lane.b32.xlu0 %v6653_v52, %s5602_s26 }
 0x86c   :  { %3750 = vrot.lane.b32.xlu1 %v6659_v57, %s5602_s26 }
 0x86d   :  { %3752 = vrot.lane.b32.xlu0 %v6661_v48, %s5602_s26 }
 0x870   :  { %3762 = vrot.lane.b32.xlu1 %v6651_v33, %s5604_s27 }
 0x871   :  { %3764 = vrot.lane.b32.xlu0 %v6653_v52, %s5604_s27 }
 0x874   :  { %3766 = vrot.lane.b32.xlu1 %v6659_v57, %s5604_s27 }
 0x875   :  { %3768 = vrot.lane.b32.xlu0 %v6661_v48, %s5604_s27 }
 0x878   :  { %3933 = vperm.xlu1 %5462, %v5209_v34  }
 0x8aa   :  { %v3407_v6 = vpop.permute.xlu1 %3406 }
 0x8ab   :  { %v3409_v13 = vpop.permute.xlu0 %3408 }
 0x8ac   :  { %v3416_v49 = vsel %vm211_vm0, %v3407_v6, %v3409_v13 }
 0x8ad   :  { %v3419_v25 = vmul.f32 %v3416_v49, %v5822_v17 }
 0x8ae   :  { %v3411_v31 = vpop.permute.xlu1 %3410 }
 0x8af   :  { %v3415_v2 = vsel %vm211_vm0, %v3409_v13, %v3411_v31  ;;  %v3413_v10 = vpop.permute.xlu0 %3412  ;;  %v5324_v27 = vpack.c.bf16 %v6653_v52, %v3419_v25 }
 0x8b0   :  { %v3420_v56 = vmul.f32 %v3415_v2, %v5831_v20  ;;  %v3414_v55 = vsel %vm211_vm0, %v3411_v31, %v3413_v10  ;;  %v3417_v34 = vsel %vm211_vm0, %v3413_v10, %v3407_v6 }
 0x8b1   :  { %v3418_v50 = vmul.f32 %v3417_v34, %v5828_v19  ;;  %v3421_v47 = vmul.f32 %v3414_v55, %v5825_v18  ;;  %5325 = vmatprep.subr.bf16.mxu0 %v5324_v27 }
 0x8b2   :  { %v3423_v49 = vpop.permute.xlu1 %3422  ;;  %v5330_v25 = vpack.c.bf16 %v6659_v57, %v3420_v56  ;;  %v3439_v56 = vld [vmem:[#allocation5 + $0x68] sm:$0xff] }
 0x8b3   :  { %v5326_v0 = vpack.c.bf16 %v6651_v33, %v3418_v50  ;;  %v3425_v13 = vpop.permute.xlu0 %3424  ;;  %v5328_v4 = vpack.c.bf16 %v6661_v48, %v3421_v47 }
 0x8b4   :  { %v3432_v31 = vsel %vm244_vm1, %v3423_v49, %v3425_v13 }
 0x8b5   :  { %5327 = vmatpush1.bf16.msra.mxu0 %v5326_v0  ;;  %5329 = vmatprep.subr.bf16.mxu1 %v5328_v4  ;;  %v3434_v0 = vmul.f32 %v3432_v31, %v5861_v41 }
 0x8b6   :  { %v3427_v2 = vpop.permute.xlu1 %3426  ;;  %5331 = vmatpush1.bf16.msra.mxu1 %v5330_v25  ;;  %v7073_v25 = vmov 0.0  }
 0x8b7   :  { %v3431_v6 = vsel %vm244_vm1, %v3425_v13, %v3427_v2  ;;  %v3429_v55 = vpop.permute.xlu0 %3428 }
 0x8b8   :  { %v3435_v10 = vmul.f32 %v3431_v6, %v5852_v38  ;;  %v3430_v50 = vsel %vm244_vm1, %v3427_v2, %v3429_v55  ;;  %v3433_v47 = vsel %vm244_vm1, %v3429_v55, %v3423_v49 }
 0x8b9   :  { %v3436_v4 = vmul.f32 %v3430_v50, %v5858_v40  ;;  %v3437_v27 = vmul.f32 %v3433_v47, %v5855_v39 }
 0x8ba   :  { %v3357_v34 = vpop.permute.xlu1 %3356  ;;  %3447 = vmatprep.subr.mxu0 %v3435_v10 }
 0x8bb   :  { %3448 = vmatpush1.msra.mxu0 %v3434_v0  ;;  %3518 = vmatprep.subr.mxu1 %v3437_v27  ;;  %v3359_v13 = vpop.permute.xlu0 %3358 }
 0x8bc   :  { %3519 = vmatpush1.msra.mxu1 %v3436_v4  ;;  %5203 = vmatmul.mubr.msk.f32.vlgmr.msra.gmra.mrb[12].mxu0 %vm271_vm2, %v3439_v56  ;;  %v3366_v2 = vsel %vm111_vm3, %v3357_v34, %v3359_v13 }
 0x8bd   :  { %5204 = vmatmul.mubr.msk.f32.vlgmr.msra.gmra.mrb[12].mxu1 %vm271_vm2, %v3439_v56  ;;  %3652 = vmatprep.mubr.f32.mxu0 %v7073_v25  ;;  %v3369_v50 = vmul.f32 %v3366_v2, %v5884_v59 }
 0x8be   :  { %v3361_v49 = vpop.permute.xlu1 %3360  ;;  %3723 = vmatprep.mubr.f32.mxu1 %v7073_v25 }
 0x8bf   :  { %v3363_v31 = vpop.permute.xlu0 %3362  ;;  %v3365_v56 = vsel %vm111_vm3, %v3359_v13, %v3361_v49 }
 0x8c0   :  { %v3364_v0 = vsel %vm111_vm3, %v3361_v49, %v3363_v31  ;;  %v3367_v4 = vsel %vm111_vm3, %v3363_v31, %v3357_v34  ;;  %v3370_v49 = vmul.f32 %v3365_v56, %v5895_v63 }
 0x8c1   :  { %v3368_v1 = vmul.f32 %v3367_v4, %v5892_v62  ;;  %v3371_v34 = vmul.f32 %v3364_v0, %v5898_v5 }
 0x8c2   :  { %v3373_v6 = vpop.permute.xlu1 %3372 }
 0x8c3   :  { %v3375_v55 = vpop.permute.xlu0 %3374 }
 0x8c4   :  { %v3382_v10 = vsel %vm144_vm4, %v3373_v6, %v3375_v55 }
 0x8c5   :  { %v3385_v47 = vmul.f32 %v3382_v10, %v5887_v60 }
 0x8c6   :  { %v3377_v27 = vpop.permute.xlu1 %3376 }
 0x8c7   :  { %v3381_v48 = vsel %vm144_vm4, %v3375_v55, %v3377_v27  ;;  %v3379_v57 = vpop.permute.xlu0 %3378  ;;  %v5332_v52 = vpack.c.bf16 %v3385_v47, %v3369_v50 }
 0x8c8   :  { %v3386_v33 = vmul.f32 %v3381_v48, %v5909_v22  ;;  %v3380_v2 = vsel %vm144_vm4, %v3377_v27, %v3379_v57  ;;  %v3383_v10 = vsel %vm144_vm4, %v3379_v57, %v3373_v6 }
 0x8c9   :  { %v3384_v31 = vmul.f32 %v3383_v10, %v5906_v21  ;;  %v3387_v13 = vmul.f32 %v3380_v2, %v5916_v26  ;;  %5333 = vmatprep.subr.bf16.mxu0 %v5332_v52  ;;  %v3405_v2 = vld [vmem:[#allocation5 + $0x60] sm:$0xff] }
 0x8ca   :  { %v3389_v55 = vpop.permute.xlu1 %3388  ;;  %v5338_v11 = vpack.c.bf16 %v3386_v33, %v3370_v49 }
 0x8cb   :  { %v5334_v50 = vpack.c.bf16 %v3384_v31, %v3368_v1  ;;  %v3391_v48 = vpop.permute.xlu0 %3390  ;;  %v5336_v47 = vpack.c.bf16 %v3387_v13, %v3371_v34 }
 0x8cc   :  { %v3398_v27 = vsel %vm177_vm5, %v3389_v55, %v3391_v48 }
 0x8cd   :  { %v3401_v57 = vmul.f32 %v3398_v27, %v5923_v32  ;;  %5335 = vmatpush1.bf16.msra.mxu0 %v5334_v50  ;;  %5337 = vmatprep.subr.bf16.mxu1 %v5336_v47 }
 0x8ce   :  { %v3393_v6 = vpop.permute.xlu1 %3392  ;;  %5339 = vmatpush1.bf16.msra.mxu1 %v5338_v11 }
 0x8cf   :  { %v3397_v0 = vsel %vm177_vm5, %v3391_v48, %v3393_v6  ;;  %3592 = vmatprep.subr.mxu0 %v3401_v57  ;;  %v3395_v52 = vpop.permute.xlu0 %3394 }
 0x8d0   :  { %v3396_v1 = vsel %vm177_vm5, %v3393_v6, %v3395_v52  ;;  %v3399_v33 = vsel %vm177_vm5, %v3395_v52, %v3389_v55  ;;  %v3402_v10 = vmul.f32 %v3397_v0, %v5943_v53 }
 0x8d1   :  { %v3400_v4 = vmul.f32 %v3399_v33, %v5939_v51  ;;  %v3403_v56 = vmul.f32 %v3396_v1, %v5946_v54 }
 0x8d2   :  { %v3731_v34 = vpop.permute.xlu1 %3730 }
 0x8d3   :  { %3593 = vmatpush1.msra.mxu0 %v3400_v4  ;;  %3663 = vmatprep.subr.mxu1 %v3403_v56  ;;  %v3733_v11 = vpop.permute.xlu0 %3732 }
 0x8d4   :  { %3664 = vmatpush1.msra.mxu1 %v3402_v10  ;;  %5205 = vmatmul.mubr.msk.f32.vlgmr.msra.gmra.mrb[12].mxu0 %vm271_vm2, %v3405_v2  ;;  %v3740_v50 = vsel %vm570_vm7, %v3731_v34, %v3733_v11 }
 0x8d5   :  { %5206 = vmatmul.mubr.msk.f32.vlgmr.msra.gmra.mrb[12].mxu1 %vm271_vm2, %v3405_v2  ;;  %3847 = vmatprep.mubr.f32.mxu0 %v7073_v25  ;;  %v3742_v0 = vmul.f32 %v3740_v50, %v5993_v45 }
 0x8d6   :  { %v3735_v31 = vpop.permute.xlu1 %3734  ;;  %3918 = vmatprep.mubr.f32.mxu1 %v7073_v25 }
 0x8d7   :  { %v3737_v13 = vpop.permute.xlu0 %3736  ;;  %v3739_v47 = vsel %vm570_vm7, %v3733_v11, %v3735_v31 }
 0x8d8   :  { %v3738_v27 = vsel %vm570_vm7, %v3735_v31, %v3737_v13  ;;  %v3741_v57 = vsel %vm570_vm7, %v3737_v13, %v3731_v34  ;;  %v3743_v4 = vmul.f32 %v3739_v47, %v5969_v30 }
 0x8d9   :  { %v3744_v34 = vmul.f32 %v3738_v27, %v5974_v35  ;;  %v3745_v11 = vmul.f32 %v3741_v57, %v5966_v29 }
 0x8da   :  { %v3747_v49 = vpop.permute.xlu1 %3746 }
 0x8db   :  { %v3749_v55 = vpop.permute.xlu0 %3748 }
 0x8dc   :  { %v3756_v48 = vsel %vm603_vm6, %v3747_v49, %v3749_v55 }
 0x8dd   :  { %v3758_v52 = vmul.f32 %v3756_v48, %v5979_v36 }
 0x8de   :  { %v3751_v6 = vpop.permute.xlu1 %3750 }
 0x8df   :  { %v3755_v1 = vsel %vm603_vm6, %v3749_v55, %v3751_v6  ;;  %v3753_v33 = vpop.permute.xlu0 %3752  ;;  %v5342_v48 = vpack.c.bf16 %v3758_v52, %v3742_v0 }
 0x8e0   :  { %v3759_v56 = vmul.f32 %v3755_v1, %v5987_v43  ;;  %v3754_v2 = vsel %vm603_vm6, %v3751_v6, %v3753_v33  ;;  %v3757_v10 = vsel %vm603_vm6, %v3753_v33, %v3747_v49 }
 0x8e1   :  { %v3760_v31 = vmul.f32 %v3754_v2, %v5990_v44  ;;  %v3761_v13 = vmul.f32 %v3757_v10, %v5984_v42  ;;  %v3779_v10 = vld [vmem:[#allocation5 + $0x70] sm:$0xff] }
 0x8e2   :  { %v3763_v55 = vpop.permute.xlu1 %3762  ;;  %v5340_v50 = vpack.c.bf16 %v3759_v56, %v3743_v4 }
 0x8e3   :  { %v5346_v47 = vpack.c.bf16 %v3760_v31, %v3744_v34  ;;  %v3765_v7 = vpop.permute.xlu0 %3764  ;;  %v5344_v1 = vpack.c.bf16 %v3761_v13, %v3745_v11 }
 0x8e4   :  { %5341 = vmatprep.subr.bf16.mxu0 %v5340_v50  ;;  %v3772_v49 = vsel %vm636_vm8, %v3763_v55, %v3765_v7 }
 0x8e5   :  { %5343 = vmatpush1.bf16.msra.mxu0 %v5342_v48  ;;  %5345 = vmatprep.subr.bf16.mxu1 %v5344_v1  ;;  %v3774_v4 = vmul.f32 %v6580_v8, %v3772_v49 }
 0x8e6   :  { %v3767_v6 = vpop.permute.xlu1 %3766  ;;  %5347 = vmatpush1.bf16.msra.mxu1 %v5346_v47 }
 0x8e7   :  { %v3771_v27 = vsel %vm636_vm8, %v3765_v7, %v3767_v6  ;;  %v3769_v57 = vpop.permute.xlu0 %3768 }
 0x8e8   :  { %v3775_v33 = vmul.f32 %v6570_v16, %v3771_v27  ;;  %v3770_v0 = vsel %vm636_vm8, %v3767_v6, %v3769_v57  ;;  %v3773_v52 = vsel %vm636_vm8, %v3769_v57, %v3763_v55  ;;  %v5216_v57 = vld [vmem:[%s7045_s3 + $0x28] sm:$0xff] }
 0x8e9   :  { %v3776_v56 = vmul.f32 %v6586_v3, %v3770_v0  ;;  %v3777_v2 = vmul.f32 %v6592_v37, %v3773_v52 }
 0x8ea   :  { %3787 = vmatprep.subr.mxu0 %v3775_v33  ;;  %v5131_v33 = vld [vmem:[%s7051_s9] sm:$0xff] }
 0x8eb   :  { %3788 = vmatpush1.msra.mxu0 %v3774_v4  ;;  %3858 = vmatprep.subr.mxu1 %v3777_v2 }
 0x8ec   :  { %5207 = vmatmul.mubr.msk.f32.vlgmr.msra.gmra.mrb[12].mxu0 %vm271_vm2, %v3779_v10  ;;  %3859 = vmatpush1.msra.mxu1 %v3776_v56 }
 0x8ed   :  { %5208 = vmatmul.mubr.msk.f32.vlgmr.msra.gmra.mrb[12].mxu1 %vm271_vm2, %v3779_v10  ;;  %4095 = vmatprep.mubr.f32.mxu0 %v7073_v25 }
 0x8ee   :  { %4166 = vmatprep.mubr.f32.mxu1 %v7073_v25 }
 0x8f7   :  { %v3934_v7 = vpop.permute.xlu1 %3933 }
 0x9bf   :  { %v3849_v34 = vpop.f32.mrb[12].mxu0 }
 0x9c0   :  { %v3936_v11 = vadd.f32 %v3934_v7, %v3849_v34  ;;  %v3851_v31 = vpop.f32.mrb[13].mxu0  ;;  %v3920_v13 = vpop.f32.mrb[12].mxu1 }
 0x9c1   :  { %v3937_v55 = vadd.f32 %v3934_v7, %v3851_v31  ;;  %v3922_v50 = vpop.f32.mrb[13].mxu1  ;;  %v3938_v47 = vadd.f32 %v3934_v7, %v3920_v13 }
 0x9c2   :  { %v3940_v48 = vmax.f32 %v3936_v11, 0.0  ;;  %v3939_v49 = vadd.f32 %v3934_v7, %v3922_v50 }
 0x9c3   :  { %v3941_v1 = vmax.f32 %v3937_v55, 0.0  ;;  %v3942_v6 = vmax.f32 %v3938_v47, 0.0 }
 0x9c4   :  { %3994 = vrot.lane.b32.xlu0 %v3940_v48, %s5595_s21  ;;  %v3943_v27 = vmax.f32 %v3939_v49, 0.0 }
 0x9c5   :  { %3996 = vrot.lane.b32.xlu1 %v3941_v1, %s5595_s21 }
 0x9c8   :  { %3998 = vrot.lane.b32.xlu0 %v3942_v6, %s5595_s21 }
 0x9c9   :  { %4000 = vrot.lane.b32.xlu1 %v3943_v27, %s5595_s21 }
 0x9cc   :  { %4010 = vrot.lane.b32.xlu0 %v3940_v48, %s5596_s6 }
 0x9cd   :  { %4012 = vrot.lane.b32.xlu1 %v3941_v1, %s5596_s6 }
 0x9d0   :  { %4014 = vrot.lane.b32.xlu0 %v3942_v6, %s5596_s6 }
 0x9d1   :  { %4016 = vrot.lane.b32.xlu1 %v3943_v27, %s5596_s6 }
 0x9d4   :  { %3944 = vrot.lane.b32.xlu0 %v3940_v48, %s5597_s23 }
 0x9d5   :  { %3946 = vrot.lane.b32.xlu1 %v3941_v1, %s5597_s23 }
 0x9d8   :  { %3948 = vrot.lane.b32.xlu0 %v3942_v6, %s5597_s23 }
 0x9d9   :  { %3950 = vrot.lane.b32.xlu1 %v3943_v27, %s5597_s23 }
 0x9dc   :  { %3960 = vrot.lane.b32.xlu0 %v3940_v48, %s5599_s24 }
 0x9dd   :  { %3962 = vrot.lane.b32.xlu1 %v3941_v1, %s5599_s24 }
 0x9e0   :  { %3964 = vrot.lane.b32.xlu0 %v3942_v6, %s5599_s24 }
 0x9e1   :  { %3966 = vrot.lane.b32.xlu1 %v3943_v27, %s5599_s24 }
 0x9e4   :  { %3976 = vrot.lane.b32.xlu0 %v3940_v48, %s5600_s22 }
 0x9e5   :  { %3978 = vrot.lane.b32.xlu1 %v3941_v1, %s5600_s22 }
 0x9e8   :  { %3980 = vrot.lane.b32.xlu0 %v3942_v6, %s5600_s22 }
 0x9e9   :  { %3982 = vrot.lane.b32.xlu1 %v3943_v27, %s5600_s22 }
 0x9ec   :  { %4318 = vrot.lane.b32.xlu0 %v3940_v48, %s5601_s25 }
 0x9ed   :  { %4320 = vrot.lane.b32.xlu1 %v3941_v1, %s5601_s25 }
 0x9f0   :  { %4322 = vrot.lane.b32.xlu0 %v3942_v6, %s5601_s25 }
 0x9f1   :  { %4324 = vrot.lane.b32.xlu1 %v3943_v27, %s5601_s25 }
 0x9f4   :  { %4334 = vrot.lane.b32.xlu0 %v3940_v48, %s5602_s26 }
 0x9f5   :  { %4336 = vrot.lane.b32.xlu1 %v3941_v1, %s5602_s26 }
 0x9f8   :  { %4338 = vrot.lane.b32.xlu0 %v3942_v6, %s5602_s26 }
 0x9f9   :  { %4340 = vrot.lane.b32.xlu1 %v3943_v27, %s5602_s26 }
 0x9fc   :  { %4350 = vrot.lane.b32.xlu0 %v3940_v48, %s5604_s27 }
 0x9fd   :  { %4352 = vrot.lane.b32.xlu1 %v3941_v1, %s5604_s27 }
 0xa00   :  { %4354 = vrot.lane.b32.xlu0 %v3942_v6, %s5604_s27 }
 0xa01   :  { %4356 = vrot.lane.b32.xlu1 %v3943_v27, %s5604_s27 }
 0xa04   :  { %4521 = vperm.xlu0 %5461, %v5216_v57  }
 0xa05   :  { %5134 = vperm.xlu1 %5462, %v5131_v33  }
 0xa36   :  { %v3995_v0 = vpop.permute.xlu0 %3994 }
 0xa37   :  { %v3997_v52 = vpop.permute.xlu1 %3996 }
 0xa38   :  { %v4004_v4 = vsel %vm211_vm0, %v3995_v0, %v3997_v52 }
 0xa39   :  { %v4007_v56 = vmul.f32 %v4004_v4, %v5822_v17 }
 0xa3a   :  { %v3999_v2 = vpop.permute.xlu0 %3998 }
 0xa3b   :  { %v4003_v10 = vsel %vm211_vm0, %v3997_v52, %v3999_v2  ;;  %v4001_v7 = vpop.permute.xlu1 %4000  ;;  %v5348_v34 = vpack.c.bf16 %v3941_v1, %v4007_v56  ;;  %v4027_v56 = vld [vmem:[#allocation5 + $0x80] sm:$0xff] }
 0xa3c   :  { %v4008_v11 = vmul.f32 %v4003_v10, %v5831_v20  ;;  %v4002_v31 = vsel %vm211_vm0, %v3999_v2, %v4001_v7  ;;  %v4005_v13 = vsel %vm211_vm0, %v4001_v7, %v3995_v0 }
 0xa3d   :  { %v4006_v55 = vmul.f32 %v4005_v13, %v5828_v19  ;;  %v4009_v50 = vmul.f32 %v4002_v31, %v5825_v18  ;;  %5349 = vmatprep.subr.bf16.mxu0 %v5348_v34 }
 0xa3e   :  { %v4011_v17 = vpop.permute.xlu0 %4010  ;;  %v5354_v33 = vpack.c.bf16 %v3942_v6, %v4008_v11 }
 0xa3f   :  { %v5350_v47 = vpack.c.bf16 %v3940_v48, %v4006_v55  ;;  %v4013_v49 = vpop.permute.xlu1 %4012  ;;  %v5352_v57 = vpack.c.bf16 %v3943_v27, %v4009_v50 }
 0xa40   :  { %v4020_v20 = vsel %vm244_vm1, %v4011_v17, %v4013_v49 }
 0xa41   :  { %5351 = vmatpush1.bf16.msra.mxu0 %v5350_v47  ;;  %5353 = vmatprep.subr.bf16.mxu1 %v5352_v57  ;;  %v4022_v6 = vmul.f32 %v4020_v20, %v5861_v41 }
 0xa42   :  { %5355 = vmatpush1.bf16.msra.mxu1 %v5354_v33  ;;  %v4015_v1 = vpop.permute.xlu0 %4014 }
 0xa43   :  { %v4019_v0 = vsel %vm244_vm1, %v4013_v49, %v4015_v1  ;;  %v4017_v52 = vpop.permute.xlu1 %4016 }
 0xa44   :  { %v4023_v19 = vmul.f32 %v4019_v0, %v5852_v38  ;;  %v4018_v18 = vsel %vm244_vm1, %v4015_v1, %v4017_v52  ;;  %v4021_v48 = vsel %vm244_vm1, %v4017_v52, %v4011_v17 }
 0xa45   :  { %v4024_v27 = vmul.f32 %v4018_v18, %v5858_v40  ;;  %v4025_v4 = vmul.f32 %v4021_v48, %v5855_v39 }
 0xa46   :  { %4035 = vmatprep.subr.mxu0 %v4023_v19  ;;  %v3945_v2 = vpop.permute.xlu0 %3944 }
 0xa47   :  { %v3947_v10 = vpop.permute.xlu1 %3946  ;;  %4036 = vmatpush1.msra.mxu0 %v4022_v6  ;;  %4106 = vmatprep.subr.mxu1 %v4025_v4 }
 0xa48   :  { %4107 = vmatpush1.msra.mxu1 %v4024_v27  ;;  %5210 = vmatmul.mubr.msk.f32.vlgmr.msra.gmra.mrb[14].mxu0 %vm271_vm2, %v4027_v56  ;;  %v3954_v39 = vsel %vm111_vm3, %v3945_v2, %v3947_v10 }
 0xa49   :  { %5211 = vmatmul.mubr.msk.f32.vlgmr.msra.gmra.mrb[14].mxu1 %vm271_vm2, %v4027_v56  ;;  %4240 = vmatprep.mubr.f32.mxu0 %v7073_v25  ;;  %v3957_v11 = vmul.f32 %v3954_v39, %v5884_v59 }
 0xa4a   :  { %v3949_v38 = vpop.permute.xlu0 %3948  ;;  %4311 = vmatprep.mubr.f32.mxu1 %v7073_v25 }
 0xa4b   :  { %v3951_v41 = vpop.permute.xlu1 %3950  ;;  %v3953_v17 = vsel %vm111_vm3, %v3947_v10, %v3949_v38 }
 0xa4c   :  { %v3952_v13 = vsel %vm111_vm3, %v3949_v38, %v3951_v41  ;;  %v3955_v55 = vsel %vm111_vm3, %v3951_v41, %v3945_v2  ;;  %v3958_v19 = vmul.f32 %v3953_v17, %v5895_v63 }
 0xa4d   :  { %v3956_v20 = vmul.f32 %v3955_v55, %v5892_v62  ;;  %v3959_v1 = vmul.f32 %v3952_v13, %v5898_v5 }
 0xa4e   :  { %v3961_v40 = vpop.permute.xlu0 %3960 }
 0xa4f   :  { %v3963_v7 = vpop.permute.xlu1 %3962 }
 0xa50   :  { %v3970_v34 = vsel %vm144_vm4, %v3961_v40, %v3963_v7 }
 0xa51   :  { %v3973_v31 = vmul.f32 %v3970_v34, %v5887_v60 }
 0xa52   :  { %v3965_v50 = vpop.permute.xlu0 %3964 }
 0xa53   :  { %v3969_v47 = vsel %vm144_vm4, %v3963_v7, %v3965_v50  ;;  %v3967_v49 = vpop.permute.xlu1 %3966  ;;  %v5356_v57 = vpack.c.bf16 %v3973_v31, %v3957_v11 }
 0xa54   :  { %v3974_v33 = vmul.f32 %v3969_v47, %v5909_v22  ;;  %v3968_v59 = vsel %vm144_vm4, %v3965_v50, %v3967_v49  ;;  %v3971_v60 = vsel %vm144_vm4, %v3967_v49, %v3961_v40 }
 0xa55   :  { %v3972_v0 = vmul.f32 %v3971_v60, %v5906_v21  ;;  %v3975_v52 = vmul.f32 %v3968_v59, %v5916_v26  ;;  %5357 = vmatprep.subr.bf16.mxu0 %v5356_v57 }
 0xa56   :  { %v3977_v18 = vpop.permute.xlu0 %3976  ;;  %v5362_v27 = vpack.c.bf16 %v3974_v33, %v3958_v19 }
 0xa57   :  { %v5358_v48 = vpack.c.bf16 %v3972_v0, %v3956_v20  ;;  %v3979_v22 = vpop.permute.xlu1 %3978  ;;  %v5360_v6 = vpack.c.bf16 %v3975_v52, %v3959_v1 }
 0xa58   :  { %v3986_v4 = vsel %vm177_vm5, %v3977_v18, %v3979_v22 }
 0xa59   :  { %v3989_v56 = vmul.f32 %v3986_v4, %v5923_v32  ;;  %5359 = vmatpush1.bf16.msra.mxu0 %v5358_v48  ;;  %5361 = vmatprep.subr.bf16.mxu1 %v5360_v6  ;;  %v3993_v32 = vld [vmem:[#allocation5 + $0x78] sm:$0xff] }
 0xa5a   :  { %5363 = vmatpush1.bf16.msra.mxu1 %v5362_v27  ;;  %v3981_v62 = vpop.permute.xlu0 %3980 }
 0xa5b   :  { %v3985_v5 = vsel %vm177_vm5, %v3979_v22, %v3981_v62  ;;  %v3983_v21 = vpop.permute.xlu1 %3982  ;;  %4180 = vmatprep.subr.mxu0 %v3989_v56 }
 0xa5c   :  { %v3984_v63 = vsel %vm177_vm5, %v3981_v62, %v3983_v21  ;;  %v3987_v26 = vsel %vm177_vm5, %v3983_v21, %v3977_v18  ;;  %v3990_v38 = vmul.f32 %v3985_v5, %v5943_v53  ;;  %v4367_v62 = vld [vmem:[#allocation5 + $0x88] sm:$0xff] }
 0xa5d   :  { %v3988_v2 = vmul.f32 %v3987_v26, %v5939_v51  ;;  %v3991_v10 = vmul.f32 %v3984_v63, %v5946_v54 }
 0xa5e   :  { %v4319_v41 = vpop.permute.xlu0 %4318 }
 0xa5f   :  { %v4321_v39 = vpop.permute.xlu1 %4320  ;;  %4181 = vmatpush1.msra.mxu0 %v3988_v2  ;;  %4251 = vmatprep.subr.mxu1 %v3991_v10  ;;  %v7081_v2 = vld [vmem:[#allocation18_spill] sm:$0xff] }
 0xa60   :  { %4252 = vmatpush1.msra.mxu1 %v3990_v38  ;;  %5212 = vmatmul.mubr.msk.f32.vlgmr.msra.gmra.mrb[14].mxu0 %vm271_vm2, %v3993_v32  ;;  %v4328_v53 = vsel %vm570_vm7, %v4319_v41, %v4321_v39  ;;  %v7082_v38 = vld [vmem:[#allocation19_spill] sm:$0xff] }
 0xa61   :  { %5213 = vmatmul.mubr.msk.f32.vlgmr.msra.gmra.mrb[14].mxu1 %vm271_vm2, %v3993_v32  ;;  %4435 = vmatprep.mubr.f32.mxu0 %v7073_v25  ;;  %v4330_v50 = vmul.f32 %v4328_v53, %v5993_v45 }
 0xa62   :  { %v4323_v40 = vpop.permute.xlu0 %4322  ;;  %4506 = vmatprep.mubr.f32.mxu1 %v7073_v25 }
 0xa63   :  { %v4325_v51 = vpop.permute.xlu1 %4324  ;;  %v4327_v11 = vsel %vm570_vm7, %v4321_v39, %v4323_v40  ;;  %v7083_v39 = vld [vmem:[#allocation20_spill] sm:$0xff] }
 0xa64   :  { %v4326_v31 = vsel %vm570_vm7, %v4323_v40, %v4325_v51  ;;  %v4329_v13 = vsel %vm570_vm7, %v4325_v51, %v4319_v41  ;;  %v4331_v57 = vmul.f32 %v4327_v11, %v5969_v30  ;;  %v7084_v51 = vld [vmem:[#allocation21_spill] sm:$0xff] }
 0xa65   :  { %v4332_v20 = vmul.f32 %v4326_v31, %v5974_v35  ;;  %v4333_v45 = vmul.f32 %v4329_v13, %v5966_v29 }
 0xa66   :  { %v4335_v7 = vpop.permute.xlu0 %4334 }
 0xa67   :  { %v4337_v54 = vpop.permute.xlu1 %4336 }
 0xa68   :  { %v4344_v34 = vsel %vm603_vm6, %v4335_v7, %v4337_v54 }
 0xa69   :  { %v4346_v17 = vmul.f32 %v4344_v34, %v5979_v36  ;;  %v5225_v34 = vld [vmem:[%s7050_s8 + $0x18] sm:$0xff] }
 0xa6a   :  { %v4339_v55 = vpop.permute.xlu0 %4338 }
 0xa6b   :  { %v4343_v47 = vsel %vm603_vm6, %v4337_v54, %v4339_v55  ;;  %v4341_v49 = vpop.permute.xlu1 %4340  ;;  %v5366_v19 = vpack.c.bf16 %v4346_v17, %v4330_v50 }
 0xa6c   :  { %v4347_v33 = vmul.f32 %v4343_v47, %v5987_v43  ;;  %v4342_v59 = vsel %vm603_vm6, %v4339_v55, %v4341_v49  ;;  %v4345_v60 = vsel %vm603_vm6, %v4341_v49, %v4335_v7 }
 0xa6d   :  { %v4348_v36 = vmul.f32 %v4342_v59, %v5990_v44  ;;  %v4349_v1 = vmul.f32 %v4345_v60, %v5984_v42 }
 0xa6e   :  { %v4351_v0 = vpop.permute.xlu0 %4350  ;;  %v5364_v52 = vpack.c.bf16 %v4347_v33, %v4331_v57 }
 0xa6f   :  { %v5370_v30 = vpack.c.bf16 %v4348_v36, %v4332_v20  ;;  %v4353_v18 = vpop.permute.xlu1 %4352  ;;  %v5368_v43 = vpack.c.bf16 %v4349_v1, %v4333_v45 }
 0xa70   :  { %5365 = vmatprep.subr.bf16.mxu0 %v5364_v52  ;;  %v4360_v48 = vsel %vm636_vm8, %v4351_v0, %v4353_v18 }
 0xa71   :  { %5367 = vmatpush1.bf16.msra.mxu0 %v5366_v19  ;;  %5369 = vmatprep.subr.bf16.mxu1 %v5368_v43  ;;  %v4362_v27 = vmul.f32 %v6580_v8, %v4360_v48 }
 0xa72   :  { %5371 = vmatpush1.bf16.msra.mxu1 %v5370_v30  ;;  %v4355_v35 = vpop.permute.xlu0 %4354 }
 0xa73   :  { %v4359_v29 = vsel %vm636_vm8, %v4353_v18, %v4355_v35  ;;  %v4357_v44 = vpop.permute.xlu1 %4356 }
 0xa74   :  { %v4363_v42 = vmul.f32 %v6570_v16, %v4359_v29  ;;  %v4358_v22 = vsel %vm636_vm8, %v4355_v35, %v4357_v44  ;;  %v4361_v6 = vsel %vm636_vm8, %v4357_v44, %v4351_v0  ;;  %v7077_v16 = vld [vmem:[#allocation15_spill] sm:$0xff] }
 0xa75   :  { %v4364_v4 = vmul.f32 %v6586_v3, %v4358_v22  ;;  %v4365_v56 = vmul.f32 %v6592_v37, %v4361_v6  ;;  %v7078_v8 = vmax.f32 %v7077_v16, 0.0  ;;  %v7079_v3 = vld [vmem:[#allocation16_spill] sm:$0xff] }
 0xa76   :  { %4375 = vmatprep.subr.mxu0 %v4363_v42  ;;  %v7080_v37 = vmax.f32 %v7079_v3, 0.0 }
 0xa77   :  { %4376 = vmatpush1.msra.mxu0 %v4362_v27  ;;  %4446 = vmatprep.subr.mxu1 %v4365_v56 }
 0xa78   :  { %5214 = vmatmul.mubr.msk.f32.vlgmr.msra.gmra.mrb[14].mxu0 %vm271_vm2, %v4367_v62  ;;  %4447 = vmatpush1.msra.mxu1 %v4364_v4 }
 0xa79   :  { %4542 = vmatprep.subr.mxu0 %v6220_v14  ;;  %5215 = vmatmul.mubr.msk.f32.vlgmr.msra.gmra.mrb[14].mxu1 %vm271_vm2, %v4367_v62  ;;  %v7074_v14 = vmax.f32 %v6627_v15, 0.0 }
 0xa7a   :  { %4543 = vmatpush1.msra.mxu0 %v6222_v58  ;;  %4613 = vmatprep.subr.mxu1 %v6228_v23  ;;  %v7075_v58 = vld [vmem:[#allocation17_spill] sm:$0xff] }
 0xa7b   :  { %4614 = vmatpush1.msra.mxu1 %v6232_v61  ;;  %4606 = vmatprep.mubr.f32.mxu0 %v7073_v25  ;;  %v7076_v23 = vmax.f32 %v7075_v58, 0.0  ;;  %v4536_v61 = vld [vmem:[%s7050_s8] sm:$0xff] }
 0xa7c   :  { %4687 = vmatprep.subr.mxu0 %v6605_v12  ;;  %5218 = vmatmul.mubr.msk.f32.vlgmr.msra.gmra.mrb[16].mxu0 %vm1421_vm9, %v5217_v9  ;;  %v5222_v12 = vld [vmem:[%s7050_s8 + $0x10] sm:$0xff]  ;;  %s5559_s8 = scalar_lea.vmem %s5152_s5, 512 }
 0xa7d   :  { %4677 = vmatprep.mubr.f32.mxu1 %v7073_v25  ;;  %4688 = vmatpush1.msra.mxu0 %v6608_v28  ;;  %p5560_p4 = scmp.ne.s32.totalorder %s5152_s5, %s5559_s8  ;;  %p5565_p6 = scmp.lt.s32.totalorder %s5559_s8, %s5559_s8 }
 0xa7e   :  { %4758 = vmatprep.subr.mxu1 %v6612_v46  ;;  %5219 = vmatmul.mubr.msk.f32.vlgmr.msra.gmra.mrb[16].mxu1 %vm1421_vm9, %v5217_v9 }
 0xa7f   :  { %4759 = vmatpush1.msra.mxu1 %v6616_v24  ;;  %4834 = vmatprep.subr.mxu0 %v7074_v14  ;;  %p5566_p7 = por %p5565_p6, %p5564_p5 }
 0xa80   :  { %4905 = vmatprep.subr.mxu1 %v7076_v23  ;;  %4751 = vmatprep.mubr.f32.mxu0 %v7073_v25 }
 0xa81   :  { %4822 = vmatprep.mubr.f32.mxu1 %v7073_v25  ;;  %p5567_p8 = pnand %p5566_p7, %p5560_p4 }
 0xa83   :  { %v4522_v28 = vpop.permute.xlu0 %4521 }
 0xa84   :  { %5220 = vmatmul.mubr.msk.f32.vlgmr.msra.gmra.mrb[16].mxu0 %vm1421_vm9, %v4536_v61  ;;  %v5135_v31 = vpop.permute.xlu1 %5134 }
 0xa85   :  { %4835 = vmatpush1.msra.mxu0 %v7078_v8  ;;  %4898 = vmatprep.mubr.f32.mxu0 %v7073_v25 }
 0xa86   :  { %5221 = vmatmul.mubr.msk.f32.vlgmr.msra.gmra.mrb[16].mxu1 %vm1421_vm9, %v4536_v61 }
 0xa87   :  { %4906 = vmatpush1.msra.mxu1 %v7080_v37  ;;  %4969 = vmatprep.mubr.f32.mxu1 %v7073_v25 }
 0xa8c   :  { %5223 = vmatmul.mubr.msk.f32.vlgmr.msra.gmra.mrb[16].mxu0 %vm1421_vm9, %v5222_v12 }
 0xa8d   :  { %5049 = vmatprep.mubr.f32.mxu0 %v7073_v25 }
 0xa8e   :  { %5224 = vmatmul.mubr.msk.f32.vlgmr.msra.gmra.mrb[16].mxu1 %vm1421_vm9, %v5222_v12 }
 0xa8f   :  { %5120 = vmatprep.mubr.f32.mxu1 %v7073_v25 }
 0xb4b   :  { %v4437_v46 = vpop.f32.mrb[14].mxu0 }
 0xb4c   :  { %v4524_v24 = vadd.f32 %v4522_v28, %v4437_v46  ;;  %v4439_v15 = vpop.f32.mrb[15].mxu0  ;;  %v4508_v5 = vpop.f32.mrb[14].mxu1 }
 0xb4d   :  { %v4525_v21 = vadd.f32 %v4522_v28, %v4439_v15  ;;  %v4526_v63 = vadd.f32 %v4522_v28, %v4508_v5  ;;  %v4510_v26 = vpop.f32.mrb[15].mxu1 }
 0xb4e   :  { %v4528_v10 = vadd.f32 %v4524_v24, %v7081_v2  ;;  %v4527_v32 = vadd.f32 %v4522_v28, %v4510_v26 }
 0xb4f   :  { %v4529_v41 = vadd.f32 %v4525_v21, %v7082_v38  ;;  %v4530_v40 = vadd.f32 %v4526_v63, %v7083_v39 }
 0xb50   :  { %v4531_v7 = vadd.f32 %v4527_v32, %v7084_v51  ;;  %v4532_v53 = vmax.f32 %v4528_v10, 0.0 }
 0xb51   :  { %v4533_v54 = vmax.f32 %v4529_v41, 0.0  ;;  %v4534_v11 = vmax.f32 %v4530_v40, 0.0 }
 0xb52   :  { %v4535_v25 = vmax.f32 %v4531_v7, 0.0 }
 0xb53   :  { %4985 = vmatprep.subr.mxu0 %v4533_v54 }
 0xb54   :  { %4986 = vmatpush1.msra.mxu0 %v4532_v53  ;;  %5056 = vmatprep.subr.mxu1 %v4535_v25 }
 0xb55   :  { %5226 = vmatmul.mubr.msk.f32.vlgmr.msra.gmra.mrb[16].mxu0 %vm1421_vm9, %v5225_v34  ;;  %5057 = vmatpush1.msra.mxu1 %v4534_v11 }
 0xb56   :  { %5227 = vmatmul.mubr.msk.f32.vlgmr.msra.gmra.mrb[16].mxu1 %vm1421_vm9, %v5225_v34 }
 0xc28   :  { %v5051_v13 = vpop.f32.mrb[16].mxu0 }
 0xc29   :  { %v5137_v55 = vadd.f32 %v5135_v31, %v5051_v13  ;;  %v5053_v50 = vpop.f32.mrb[17].mxu0  ;;  %v5122_v17 = vpop.f32.mrb[16].mxu1 }
 0xc2a   :  { %v5138_v47 = vadd.f32 %v5135_v31, %v5053_v50  ;;  %v5139_v49 = vadd.f32 %v5135_v31, %v5122_v17  ;;  %v5124_v57 = vpop.f32.mrb[17].mxu1 }
 0xc2b   :  { %5141 = vst [vmem:[#allocation10] sm:$0xff] %v5137_v55  ;;  %v5140_v33 = vadd.f32 %v5135_v31, %v5124_v57 }
 0xc2c   :  { %5142 = vst [vmem:[#allocation10 + $0x8] sm:$0xff] %v5138_v47  ;;  %5143 = vst [vmem:[#allocation10 + $0x10] sm:$0xff] %v5139_v49 }
 0xc2d   :  { %5144 = vst [vmem:[#allocation10 + $0x18] sm:$0xff] %v5140_v33 }
 0xc2e   :  { %5570 = shalt.err (!%p5567_p8)
}
 0xc2f   :  { %s5571_s17 = scalar_lea.hbm %s7052_s10, 512 }
 0xc30   :  { %p5572_p9 = scmp.ne.s32.totalorder %s7052_s10, %s5571_s17  ;;  %p5575_p10 = scmp.lt.u32.totalorder %s5571_s17, %s7052_s10 }
 0xc32   :  { %p5577_p11 = pnand %p5575_p10, %p5572_p9 }
 0xc34   :  { %5580 = shalt.err (!%p5577_p11)
}
 0xc35   :  { %5154 = dma.vmem_to_hbm [thread:$0]  %s5152_s5, 512, %s7052_s10, [#allocation4]  }
 0xc36   :  { %5587 = dma.done.wait [#allocation4], 512  }
 0xc37   :  { %5588 = vsyncadd [#allocation4], 4294966784 }
 0xc38   :  { %5158 = vsyncpa [#allocation3], 1 }
 0xc39   :  { %5159 = vsyncpa [#allocation6], 1 }
 0xc3a   :  { %5160 = vsyncpa [#allocation9], 1 }
 0xc3b   :  { %5161 = vsyncpa [#allocation4], 1 }

</bundles_post_ra>
